<compile_context>
chip_gen: v7x
topology: tpu7x:2x2x1
jax: 0.10.0
libtpu: 0.0.40
codegen_flags: <defaults>
</compile_context>

<pallas_src>
import functools

import jax
import jax.numpy as jnp
from jax import lax
from jax.experimental import pallas as pl
from jax.experimental.pallas import tpu as pltpu

# ----------------------------- config (small, deterministic) -----------------------------
VOCAB = 50          # stand-in for word2vec-google-news-300 vocab
VEC = 32            # stand-in for vector_size=300
MAX_LENGTH = 16
FILTER_SIZES = [2, 3, 4, 5]
NUM_FILTERS = 8
HIDDEN = len(FILTER_SIZES) * NUM_FILTERS   # 32 (LSTM input size == hidden size)
NUM_LAYERS = 2
NUM_CLASSES = 4


def _round_up(x, m):
    return (x + m - 1) // m * m


# ----------------------------- fused CLSTM kernel -----------------------------
def _clstm_kernel(num_layers, hidden, t_max, b_pad,
                  xcat_ref,   # (T*B, max_fs*V) bf16  im2col'd embeddings (time-major, padded)
                  wconv_ref,  # (max_fs*V, H)   bf16  combined conv weights (all filter sizes)
                  bconv_ref,  # (1, H)          f32   concatenated conv biases
                  thr_ref,    # (1, H)          i32   conv validity row threshold = (L-fs+1)*b_pad
                  len_ref,    # (b_pad, 1)      i32   per-row valid length (sorted desc, 0 for pad)
                  wih_ref,    # (Lyr, H, 4H)    bf16  gate order [i,f,o,g]
                  whh_ref,    # (Lyr, H, 4H)    bf16  gate order [i,f,o,g]
                  blstm_ref,  # (Lyr, 1, 4H)    f32   b_ih + b_hh, gate order [i,f,o,g]
                  wout_ref,   # (H, C)          f32
                  bout_ref,   # (1, C)          f32
                  out_ref,    # (b_pad, C)      f32
                  seq_ref,    # (T*B, H)  f32 scratch: current layer input/output sequence
                  gx_ref):    # (T*B, 4H) f32 scratch: hoisted gate projection + bias
    tb = t_max * b_pad

    # ---- Conv2d(1, F, (fs, V)) + bias + ReLU for all filter sizes: ONE MXU push (K=max_fs*V) ----
    conv = jnp.dot(xcat_ref[...], wconv_ref[...], preferred_element_type=jnp.float32)
    conv = jnp.maximum(conv + bconv_ref[...], 0.0)
    # F.pad-with-zeros semantics: channel group of filter size fs is zero for t >= L-fs+1.
    # row = t*b_pad + b with 0 <= b < b_pad, so (t < thr) <=> (row < thr*b_pad).
    row_idx = lax.broadcasted_iota(jnp.int32, (tb, hidden), 0)
    seq_ref[...] = jnp.where(row_idx < thr_ref[...], conv, 0.0)

    lengths = len_ref[...]                                   # (b_pad, 1) int32

    # ---- multi-layer LSTM with packed-sequence (freeze past length) semantics ----
    h_final = jnp.zeros((b_pad, hidden), jnp.float32)
    for l in range(num_layers):                              # static unroll over layers
        # hoisted input projection for the whole sequence: one big matmul per layer
        gx_ref[...] = (jnp.dot(seq_ref[...].astype(jnp.bfloat16), wih_ref[l],
                               preferred_element_type=jnp.float32)
                       + blstm_ref[l])
        whh = whh_ref[l]                                     # (H, 4H) bf16
        last_layer = (l == num_layers - 1)

        def step(t, carry, whh=whh, last_layer=last_layer):
            h, c = carry
            r0 = pl.multiple_of(t * b_pad, b_pad)            # sublane-aligned dynamic offset
            gates = gx_ref[pl.ds(r0, b_pad), :] + jnp.dot(
                h.astype(jnp.bfloat16), whh, preferred_element_type=jnp.float32)
            sig = jax.nn.sigmoid(gates[:, :3 * hidden])      # one EUP push for [i | f | o]
            i_g = sig[:, 0 * hidden:1 * hidden]
            f_g = sig[:, 1 * hidden:2 * hidden]
            o_g = sig[:, 2 * hidden:3 * hidden]
            g_g = jnp.tanh(gates[:, 3 * hidden:4 * hidden])  # one EUP push for g
            c_new = f_g * c + i_g * g_g
            h_new = o_g * jnp.tanh(c_new)
            valid = lengths > t                              # (b_pad,1) bool: t < length[b]
            c = jnp.where(valid, c_new, c)                   # single vsel per state
            h = jnp.where(valid, h_new, h)
            if not last_layer:                               # feed next layer's sequence
                seq_ref[pl.ds(r0, b_pad), :] = h
            return h, c

        zeros = jnp.zeros((b_pad, hidden), jnp.float32)
        h_final, _ = lax.fori_loop(0, t_max, step, (zeros, zeros), unroll=True)
        # TODO(synk): inter-layer LSTM dropout is identity (inference mode)

    # pad_packed_sequence -> output[:, -1, :]: h_{Tmax-1} for batch-max-length rows, else 0
    max_len = jnp.max(lengths, axis=0, keepdims=True)        # (1, 1)
    temp = jnp.where(lengths == max_len, h_final, 0.0)       # (b_pad, H)
    logits = jnp.dot(temp, wout_ref[...], preferred_element_type=jnp.float32) + bout_ref[...]
    mx = jnp.max(logits, axis=-1, keepdims=True)
    e = jnp.exp(logits - mx)
    out_ref[...] = e / jnp.sum(e, axis=-1, keepdims=True)    # exact softmax over classes
    # TODO(synk): at production NUM_CLASSES pad the classifier to 128 lanes (mask pads to -inf)


def _full_spec(shape):
    zeros = (0,) * len(shape)
    return pl.BlockSpec(shape, lambda i: zeros)


def clstm_fused(xcat, wconv, bconv, thr, lens, wih, whh, blstm, wout, bout, *, t_max, b_pad):
    tb = t_max * b_pad
    n_classes = wout.shape[1]
    kernel = functools.partial(_clstm_kernel, NUM_LAYERS, HIDDEN, t_max, b_pad)
    ins = (xcat, wconv, bconv, thr, lens, wih, whh, blstm, wout, bout)
    # TODO(synk): for production sizes: batch-tiled BlockSpecs + dimension_semantics "parallel"
    # (v7x second TensorCore) and explicit vmem_limit_bytes / pl.Buffered(1) for 64 MiB VMEM.
    return pl.pallas_call(
        kernel,
        out_shape=jax.ShapeDtypeStruct((b_pad, n_classes), jnp.float32),
        grid=(1,),
        in_specs=[_full_spec(a.shape) for a in ins],
        out_specs=_full_spec((b_pad, n_classes)),
        scratch_shapes=[
            pltpu.VMEM((tb, HIDDEN), jnp.float32),       # layer input/output sequence
            pltpu.VMEM((tb, 4 * HIDDEN), jnp.float32),   # hoisted gate projection
        ],
        compiler_params=pltpu.CompilerParams(dimension_semantics=("arbitrary",)),
    )(*ins)


# ----------------------------- parameters (deterministic, synthetic) -----------------------------
def init_params(key):
    n_keys = 4 + 2 * len(FILTER_SIZES) + 6
    keys = list(jax.random.split(key, n_keys))
    kit = iter(keys)

    emb = jax.random.normal(next(kit), (VOCAB, VEC), jnp.float32)
    emb = emb / jnp.linalg.norm(emb, axis=1, keepdims=True)          # get_normed_vectors()

    convs = []
    for fs in FILTER_SIZES:
        w = 0.1 * jax.random.normal(next(kit), (NUM_FILTERS, fs, VEC), jnp.float32)
        b = 0.1 * jax.random.normal(next(kit), (NUM_FILTERS,), jnp.float32)
        convs.append((w, b))

    H = HIDDEN
    wih_t = 0.1 * jax.random.normal(next(kit), (NUM_LAYERS, H, 4 * H), jnp.float32)
    whh_t = 0.1 * jax.random.normal(next(kit), (NUM_LAYERS, H, 4 * H), jnp.float32)
    b_ih = 0.1 * jax.random.normal(next(kit), (NUM_LAYERS, 1, 4 * H), jnp.float32)
    b_hh = 0.1 * jax.random.normal(next(kit), (NUM_LAYERS, 1, 4 * H), jnp.float32)
    wout_t = 0.1 * jax.random.normal(next(kit), (H, NUM_CLASSES), jnp.float32)
    bout = 0.1 * jax.random.normal(next(kit), (1, NUM_CLASSES), jnp.float32)

    return {"embedding": emb, "convs": convs, "wih_t": wih_t, "whh_t": whh_t,
            "lstm_b": b_ih + b_hh, "wout_t": wout_t, "bout": bout}


def _permute_gates(a):
    # PyTorch LSTM gate order [i, f, g, o] -> kernel order [i, f, o, g] (sigmoid block | tanh block)
    i, f, g, o = jnp.split(a, 4, axis=-1)
    return jnp.concatenate([i, f, o, g], axis=-1)


def pack_params(params):
    """One-time repacking into kernel-ready layouts (flattened conv weight, permuted gates, bf16)."""
    F, H = NUM_FILTERS, HIDDEN
    max_fs = max(FILTER_SIZES)
    w_shift = jnp.zeros((max_fs, VEC, H), jnp.float32)   # W[i, v, g*F+f] = w_g[f, i, v]
    biases = []
    for g, (fs, (w, b)) in enumerate(zip(FILTER_SIZES, params["convs"])):
        for i in range(fs):
            w_shift = w_shift.at[i, :, g * F:(g + 1) * F].set(w[:, i, :].T)
        biases.append(b)
    bconv = jnp.concatenate(biases).reshape(1, H)
    return {
        "embedding": params["embedding"],
        "wconv": w_shift.reshape(max_fs * VEC, H).astype(jnp.bfloat16),
        "bconv": bconv,
        "wih": _permute_gates(params["wih_t"]).astype(jnp.bfloat16),
        "whh": _permute_gates(params["whh_t"]).astype(jnp.bfloat16),
        "blstm": _permute_gates(params["lstm_b"]),
        "wout": params["wout_t"],
        "bout": params["bout"],
    }


# ----------------------------- forward -----------------------------
def clstm_forward(packed, input_ids, lengths):
    emb = packed["embedding"][input_ids]          # (B, L, V) frozen embedding lookup (XLA glue)
    B, L, V = emb.shape
    min_fs, max_fs = min(FILTER_SIZES), max(FILTER_SIZES)
    t_max = L - min_fs + 1                        # conv-shortened sequence length (15)
    l_pad = L + max_fs - min_fs                   # room for the largest filter window (19)
    b_pad = _round_up(B, 8)                       # full sublane groups

    # lengths.sort(descending=True) + gather (pack_padded_sequence ordering); applied to emb,
    # which is equivalent since the conv acts on each batch row independently.
    order = jnp.argsort(-lengths)
    emb_s = emb[order]
    len_s = lengths[order].astype(jnp.int32)

    # batch + time zero padding
    emb_p = jnp.zeros((b_pad, l_pad, V), jnp.float32).at[:B, :L, :].set(emb_s)
    len_p = jnp.zeros((b_pad,), jnp.int32).at[:B].set(len_s)

    # wrapper-side im2col (layout glue): lane-concat the max_fs shifted windows so the kernel's
    # conv is ONE (T*B, max_fs*V) x (max_fs*V, H) bf16 matmul with f32 accumulation.
    widx = jnp.arange(t_max)[:, None] + jnp.arange(max_fs)[None, :]      # (T, max_fs)
    win = emb_p[:, widx, :]                                              # (b_pad, T, max_fs, V)
    xcat = jnp.transpose(win, (1, 0, 2, 3)).reshape(t_max * b_pad, max_fs * V)
    xcat = xcat.astype(jnp.bfloat16)

    # tiny inputs for in-kernel mask generation (replaces the old (T*B,H)/(T*B,1) f32 masks)
    thr = jnp.concatenate([jnp.full((NUM_FILTERS,), (L - fs + 1) * b_pad, dtype=jnp.int32)
                           for fs in FILTER_SIZES]).reshape(1, HIDDEN)   # row-index threshold
    lens2d = len_p.reshape(b_pad, 1)

    probs = clstm_fused(xcat, packed["wconv"], packed["bconv"], thr, lens2d,
                        packed["wih"], packed["whh"], packed["blstm"],
                        packed["wout"], packed["bout"], t_max=t_max, b_pad=b_pad)
    # TODO(synk): nn.Dropout after concat is identity at inference; l2_loss (training-only) omitted
    return probs[:B]                              # rows in length-sorted order (as in the module)


# ----------------------------- main -----------------------------
if __name__ == "__main__":
    key = jax.random.PRNGKey(0)
    pkey, ikey = jax.random.split(key, 2)
    params = init_params(pkey)
    packed = pack_params(params)

    B, L = 4, MAX_LENGTH
    input_ids = jax.random.randint(ikey, (B, L), 0, VOCAB, dtype=jnp.int32)
    # valid lengths must be <= L - min(filter_size) + 1 = 15 (conv-shortened sequence)
    lengths = jnp.array([10, 15, 7, 12], dtype=jnp.int32)

    out = clstm_forward(packed, input_ids, lengths)
    out = jax.block_until_ready(out)

    assert out.shape == (B, NUM_CLASSES)
    assert bool(jnp.all(jnp.isfinite(out)))
    # rows are softmax distributions
    assert bool(jnp.allclose(jnp.sum(out, axis=-1), 1.0, atol=1e-5))
    print("KERNEL_OK")
</pallas_src>

<mosaic_0001>
module attributes {stable_mosaic.version = 11 : i64} {
  func.func @_clstm_kernel(%arg0: i32, %arg1: memref<120x160xbf16, #tpu.memory_space<vmem>>, %arg2: memref<160x32xbf16, #tpu.memory_space<vmem>>, %arg3: memref<1x32xf32, #tpu.memory_space<vmem>>, %arg4: memref<1x32xi32, #tpu.memory_space<vmem>>, %arg5: memref<8x1xi32, #tpu.memory_space<vmem>>, %arg6: memref<2x32x128xbf16, #tpu.memory_space<vmem>>, %arg7: memref<2x32x128xbf16, #tpu.memory_space<vmem>>, %arg8: memref<2x1x128xf32, #tpu.memory_space<vmem>>, %arg9: memref<32x4xf32, #tpu.memory_space<vmem>>, %arg10: memref<1x4xf32, #tpu.memory_space<vmem>>, %arg11: memref<8x4xf32, #tpu.memory_space<vmem>>, %arg12: memref<120x32xf32, #tpu.memory_space<vmem>>, %arg13: memref<120x128xf32, #tpu.memory_space<vmem>>) attributes {dimension_semantics = [#tpu.dimension_semantics<arbitrary>], iteration_bounds = array<i64: 1>, scalar_prefetch = 0 : i64, scratch_operands = 2 : i64, tpu.core_type = #tpu.core_type<tc>, window_params = [{pipeline_mode = #tpu.pipeline_mode<synchronous>, transform_indices = @transform_0, window_bounds = array<i64: 120, 160>}, {pipeline_mode = #tpu.pipeline_mode<synchronous>, transform_indices = @transform_1, window_bounds = array<i64: 160, 32>}, {pipeline_mode = #tpu.pipeline_mode<synchronous>, transform_indices = @transform_2, window_bounds = array<i64: 1, 32>}, {pipeline_mode = #tpu.pipeline_mode<synchronous>, transform_indices = @transform_3, window_bounds = array<i64: 1, 32>}, {pipeline_mode = #tpu.pipeline_mode<synchronous>, transform_indices = @transform_4, window_bounds = array<i64: 8, 1>}, {pipeline_mode = #tpu.pipeline_mode<synchronous>, transform_indices = @transform_5, window_bounds = array<i64: 2, 32, 128>}, {pipeline_mode = #tpu.pipeline_mode<synchronous>, transform_indices = @transform_6, window_bounds = array<i64: 2, 32, 128>}, {pipeline_mode = #tpu.pipeline_mode<synchronous>, transform_indices = @transform_7, window_bounds = array<i64: 2, 1, 128>}, {pipeline_mode = #tpu.pipeline_mode<synchronous>, transform_indices = @transform_8, window_bounds = array<i64: 32, 4>}, {pipeline_mode = #tpu.pipeline_mode<synchronous>, transform_indices = @transform_9, window_bounds = array<i64: 1, 4>}, {pipeline_mode = #tpu.pipeline_mode<synchronous>, transform_indices = @transform_10, window_bounds = array<i64: 8, 4>}]} {
    %c0 = arith.constant 0 : index
    %c0_0 = arith.constant 0 : index
    %0 = vector.load %arg1[%c0, %c0_0] : memref<120x160xbf16, #tpu.memory_space<vmem>>, vector<120x160xbf16>
    %c0_1 = arith.constant 0 : index
    %c0_2 = arith.constant 0 : index
    %1 = vector.load %arg2[%c0_1, %c0_2] : memref<160x32xbf16, #tpu.memory_space<vmem>>, vector<160x32xbf16>
    %cst = arith.constant dense<0.000000e+00> : vector<120x32xf32>
    %2 = tpu.matmul %0, %1, %cst {dimension_numbers = #tpu.dot_dimension_numbers<[1], [0], [0], [1], [0, 0, 1, 1], [], []>} : vector<120x160xbf16>, vector<160x32xbf16>, vector<120x32xf32> -> vector<120x32xf32>
    %c0_3 = arith.constant 0 : index
    %c0_4 = arith.constant 0 : index
    %3 = vector.load %arg3[%c0_3, %c0_4] : memref<1x32xf32, #tpu.memory_space<vmem>>, vector<1x32xf32>
    %4 = vector.broadcast %3 : vector<1x32xf32> to vector<120x32xf32>
    %5 = arith.addf %2, %4 : vector<120x32xf32>
    %cst_5 = arith.constant 0.000000e+00 : f32
    %6 = vector.broadcast %cst_5 : f32 to vector<120x32xf32>
    %7 = arith.maximumf %5, %6 : vector<120x32xf32>
    %8 = tpu.iota {dimensions = array<i32: 0>} : vector<120x32xi32>
    %c0_6 = arith.constant 0 : index
    %c0_7 = arith.constant 0 : index
    %9 = vector.load %arg4[%c0_6, %c0_7] : memref<1x32xi32, #tpu.memory_space<vmem>>, vector<1x32xi32>
    %10 = vector.broadcast %9 : vector<1x32xi32> to vector<120x32xi32>
    %11 = arith.cmpi slt, %8, %10 : vector<120x32xi32>
    %cst_8 = arith.constant 0.000000e+00 : f32
    %12 = vector.broadcast %cst_8 : f32 to vector<120x32xf32>
    %13 = arith.select %11, %7, %12 : vector<120x32xi1>, vector<120x32xf32>
    %c0_9 = arith.constant 0 : index
    %c0_10 = arith.constant 0 : index
    %14 = vector.load %arg12[%c0_9, %c0_10] : memref<120x32xf32, #tpu.memory_space<vmem>>, vector<120x32xf32>
    tpu.vector_store %arg12[%c0_9, %c0_10], %13 {strides = array<i32>} : memref<120x32xf32, #tpu.memory_space<vmem>>, vector<120x32xf32>,
    %c0_11 = arith.constant 0 : index
    %c0_12 = arith.constant 0 : index
    %15 = vector.load %arg5[%c0_11, %c0_12] : memref<8x1xi32, #tpu.memory_space<vmem>>, vector<8x1xi32>
    %c0_13 = arith.constant 0 : index
    %c0_14 = arith.constant 0 : index
    %16 = vector.load %arg12[%c0_13, %c0_14] : memref<120x32xf32, #tpu.memory_space<vmem>>, vector<120x32xf32>
    %17 = arith.truncf %16 : vector<120x32xf32> to vector<120x32xbf16>
    %c0_15 = arith.constant 0 : index
    %c0_16 = arith.constant 0 : index
    %c0_17 = arith.constant 0 : index
    %18 = vector.load %arg6[%c0_15, %c0_16, %c0_17] : memref<2x32x128xbf16, #tpu.memory_space<vmem>>, vector<1x32x128xbf16>
    %19 = vector.shape_cast %18 : vector<1x32x128xbf16> to vector<32x128xbf16>
    %cst_18 = arith.constant dense<0.000000e+00> : vector<120x128xf32>
    %20 = tpu.matmul %17, %19, %cst_18 {dimension_numbers = #tpu.dot_dimension_numbers<[1], [0], [0], [1], [0, 0, 1, 1], [], []>} : vector<120x32xbf16>, vector<32x128xbf16>, vector<120x128xf32> -> vector<120x128xf32>
    %c0_19 = arith.constant 0 : index
    %c0_20 = arith.constant 0 : index
    %c0_21 = arith.constant 0 : index
    %21 = vector.load %arg8[%c0_19, %c0_20, %c0_21] : memref<2x1x128xf32, #tpu.memory_space<vmem>>, vector<1x1x128xf32>
    %22 = vector.shape_cast %21 : vector<1x1x128xf32> to vector<1x128xf32>
    %23 = vector.broadcast %22 : vector<1x128xf32> to vector<120x128xf32>
    %24 = arith.addf %20, %23 : vector<120x128xf32>
    %c0_22 = arith.constant 0 : index
    %c0_23 = arith.constant 0 : index
    %25 = vector.load %arg13[%c0_22, %c0_23] : memref<120x128xf32, #tpu.memory_space<vmem>>, vector<120x128xf32>
    tpu.vector_store %arg13[%c0_22, %c0_23], %24 {strides = array<i32>} : memref<120x128xf32, #tpu.memory_space<vmem>>, vector<120x128xf32>,
    %c0_24 = arith.constant 0 : index
    %c0_25 = arith.constant 0 : index
    %c0_26 = arith.constant 0 : index
    %26 = vector.load %arg7[%c0_24, %c0_25, %c0_26] : memref<2x32x128xbf16, #tpu.memory_space<vmem>>, vector<1x32x128xbf16>
    %27 = vector.shape_cast %26 : vector<1x32x128xbf16> to vector<32x128xbf16>
    %cst_27 = arith.constant 0.000000e+00 : f32
    %28 = vector.broadcast %cst_27 : f32 to vector<8x32xf32>
    %c0_i32 = arith.constant 0 : i32
    %c8_i32 = arith.constant 8 : i32
    %29 = arith.muli %c0_i32, %c8_i32 : i32
    %30 = tpu.assume_multiple %29, 8 : i32
    %31 = arith.index_cast %30 : i32 to index
    %c0_28 = arith.constant 0 : index
    %32 = vector.load %arg13[%31, %c0_28] : memref<120x128xf32, #tpu.memory_space<vmem>>, vector<8x128xf32>
    %33 = arith.truncf %28 : vector<8x32xf32> to vector<8x32xbf16>
    %cst_29 = arith.constant dense<0.000000e+00> : vector<8x128xf32>
    %34 = tpu.matmul %33, %27, %cst_29 {dimension_numbers = #tpu.dot_dimension_numbers<[1], [0], [0], [1], [0, 0, 1, 1], [], []>} : vector<8x32xbf16>, vector<32x128xbf16>, vector<8x128xf32> -> vector<8x128xf32>
    %35 = arith.addf %32, %34 : vector<8x128xf32>
    %36 = vector.extract_strided_slice %35 {offsets = [0, 0], sizes = [8, 96], strides = [1, 1]} : vector<8x128xf32> to vector<8x96xf32>
    %37 = arith.negf %36 : vector<8x96xf32>
    %38 = math.exp %37 : vector<8x96xf32>
    %cst_30 = arith.constant 1.000000e+00 : f32
    %39 = vector.broadcast %cst_30 : f32 to vector<8x96xf32>
    %40 = arith.addf %39, %38 : vector<8x96xf32>
    %41 = arith.divf %39, %40 : vector<8x96xf32>
    %42 = vector.extract_strided_slice %41 {offsets = [0, 0], sizes = [8, 32], strides = [1, 1]} : vector<8x96xf32> to vector<8x32xf32>
    %43 = vector.extract_strided_slice %41 {offsets = [0, 32], sizes = [8, 32], strides = [1, 1]} : vector<8x96xf32> to vector<8x32xf32>
    %44 = vector.extract_strided_slice %41 {offsets = [0, 64], sizes = [8, 32], strides = [1, 1]} : vector<8x96xf32> to vector<8x32xf32>
    %45 = vector.extract_strided_slice %35 {offsets = [0, 96], sizes = [8, 32], strides = [1, 1]} : vector<8x128xf32> to vector<8x32xf32>
    %46 = math.tanh %45 : vector<8x32xf32>
    %47 = arith.mulf %43, %28 : vector<8x32xf32>
    %48 = arith.mulf %42, %46 : vector<8x32xf32>
    %49 = arith.addf %47, %48 : vector<8x32xf32>
    %50 = math.tanh %49 : vector<8x32xf32>
    %51 = arith.mulf %44, %50 : vector<8x32xf32>
    %52 = vector.broadcast %c0_i32 : i32 to vector<8x1xi32>
    %53 = arith.cmpi sgt, %15, %52 : vector<8x1xi32>
    %54 = vector.shape_cast %53 : vector<8x1xi1> to vector<8x1xi1>
    %55 = vector.broadcast %54 : vector<8x1xi1> to vector<8x32xi1>
    %56 = arith.select %55, %49, %28 : vector<8x32xi1>, vector<8x32xf32>
    %57 = vector.shape_cast %53 : vector<8x1xi1> to vector<8x1xi1>
    %58 = vector.broadcast %57 : vector<8x1xi1> to vector<8x32xi1>
    %59 = arith.select %58, %51, %28 : vector<8x32xi1>, vector<8x32xf32>
    %60 = arith.index_cast %30 : i32 to index
    %c0_31 = arith.constant 0 : index
    %61 = vector.load %arg12[%60, %c0_31] : memref<120x32xf32, #tpu.memory_space<vmem>>, vector<8x32xf32>
    tpu.vector_store %arg12[%60, %c0_31], %59 {strides = array<i32>} : memref<120x32xf32, #tpu.memory_space<vmem>>, vector<8x32xf32>,
    %c1_i32 = arith.constant 1 : i32
    %c8_i32_32 = arith.constant 8 : i32
    %62 = arith.muli %c1_i32, %c8_i32_32 : i32
    %63 = tpu.assume_multiple %62, 8 : i32
    %64 = arith.index_cast %63 : i32 to index
    %c0_33 = arith.constant 0 : index
    %65 = vector.load %arg13[%64, %c0_33] : memref<120x128xf32, #tpu.memory_space<vmem>>, vector<8x128xf32>
    %66 = arith.truncf %59 : vector<8x32xf32> to vector<8x32xbf16>
    %cst_34 = arith.constant dense<0.000000e+00> : vector<8x128xf32>
    %67 = tpu.matmul %66, %27, %cst_34 {dimension_numbers = #tpu.dot_dimension_numbers<[1], [0], [0], [1], [0, 0, 1, 1], [], []>} : vector<8x32xbf16>, vector<32x128xbf16>, vector<8x128xf32> -> vector<8x128xf32>
    %68 = arith.addf %65, %67 : vector<8x128xf32>
    %69 = vector.extract_strided_slice %68 {offsets = [0, 0], sizes = [8, 96], strides = [1, 1]} : vector<8x128xf32> to vector<8x96xf32>
    %70 = arith.negf %69 : vector<8x96xf32>
    %71 = math.exp %70 : vector<8x96xf32>
    %cst_35 = arith.constant 1.000000e+00 : f32
    %72 = vector.broadcast %cst_35 : f32 to vector<8x96xf32>
    %73 = arith.addf %72, %71 : vector<8x96xf32>
    %74 = arith.divf %72, %73 : vector<8x96xf32>
    %75 = vector.extract_strided_slice %74 {offsets = [0, 0], sizes = [8, 32], strides = [1, 1]} : vector<8x96xf32> to vector<8x32xf32>
    %76 = vector.extract_strided_slice %74 {offsets = [0, 32], sizes = [8, 32], strides = [1, 1]} : vector<8x96xf32> to vector<8x32xf32>
    %77 = vector.extract_strided_slice %74 {offsets = [0, 64], sizes = [8, 32], strides = [1, 1]} : vector<8x96xf32> to vector<8x32xf32>
    %78 = vector.extract_strided_slice %68 {offsets = [0, 96], sizes = [8, 32], strides = [1, 1]} : vector<8x128xf32> to vector<8x32xf32>
    %79 = math.tanh %78 : vector<8x32xf32>
    %80 = arith.mulf %76, %56 : vector<8x32xf32>
    %81 = arith.mulf %75, %79 : vector<8x32xf32>
    %82 = arith.addf %80, %81 : vector<8x32xf32>
    %83 = math.tanh %82 : vector<8x32xf32>
    %84 = arith.mulf %77, %83 : vector<8x32xf32>
    %85 = vector.broadcast %c1_i32 : i32 to vector<8x1xi32>
    %86 = arith.cmpi sgt, %15, %85 : vector<8x1xi32>
    %87 = vector.shape_cast %86 : vector<8x1xi1> to vector<8x1xi1>
    %88 = vector.broadcast %87 : vector<8x1xi1> to vector<8x32xi1>
    %89 = arith.select %88, %82, %56 : vector<8x32xi1>, vector<8x32xf32>
    %90 = vector.shape_cast %86 : vector<8x1xi1> to vector<8x1xi1>
    %91 = vector.broadcast %90 : vector<8x1xi1> to vector<8x32xi1>
    %92 = arith.select %91, %84, %59 : vector<8x32xi1>, vector<8x32xf32>
    %93 = arith.index_cast %63 : i32 to index
    %c0_36 = arith.constant 0 : index
    %94 = vector.load %arg12[%93, %c0_36] : memref<120x32xf32, #tpu.memory_space<vmem>>, vector<8x32xf32>
    tpu.vector_store %arg12[%93, %c0_36], %92 {strides = array<i32>} : memref<120x32xf32, #tpu.memory_space<vmem>>, vector<8x32xf32>,
    %c2_i32 = arith.constant 2 : i32
    %c8_i32_37 = arith.constant 8 : i32
    %95 = arith.muli %c2_i32, %c8_i32_37 : i32
    %96 = tpu.assume_multiple %95, 8 : i32
    %97 = arith.index_cast %96 : i32 to index
    %c0_38 = arith.constant 0 : index
    %98 = vector.load %arg13[%97, %c0_38] : memref<120x128xf32, #tpu.memory_space<vmem>>, vector<8x128xf32>
    %99 = arith.truncf %92 : vector<8x32xf32> to vector<8x32xbf16>
    %cst_39 = arith.constant dense<0.000000e+00> : vector<8x128xf32>
    %100 = tpu.matmul %99, %27, %cst_39 {dimension_numbers = #tpu.dot_dimension_numbers<[1], [0], [0], [1], [0, 0, 1, 1], [], []>} : vector<8x32xbf16>, vector<32x128xbf16>, vector<8x128xf32> -> vector<8x128xf32>
    %101 = arith.addf %98, %100 : vector<8x128xf32>
    %102 = vector.extract_strided_slice %101 {offsets = [0, 0], sizes = [8, 96], strides = [1, 1]} : vector<8x128xf32> to vector<8x96xf32>
    %103 = arith.negf %102 : vector<8x96xf32>
    %104 = math.exp %103 : vector<8x96xf32>
    %cst_40 = arith.constant 1.000000e+00 : f32
    %105 = vector.broadcast %cst_40 : f32 to vector<8x96xf32>
    %106 = arith.addf %105, %104 : vector<8x96xf32>
    %107 = arith.divf %105, %106 : vector<8x96xf32>
    %108 = vector.extract_strided_slice %107 {offsets = [0, 0], sizes = [8, 32], strides = [1, 1]} : vector<8x96xf32> to vector<8x32xf32>
    %109 = vector.extract_strided_slice %107 {offsets = [0, 32], sizes = [8, 32], strides = [1, 1]} : vector<8x96xf32> to vector<8x32xf32>
    %110 = vector.extract_strided_slice %107 {offsets = [0, 64], sizes = [8, 32], strides = [1, 1]} : vector<8x96xf32> to vector<8x32xf32>
    %111 = vector.extract_strided_slice %101 {offsets = [0, 96], sizes = [8, 32], strides = [1, 1]} : vector<8x128xf32> to vector<8x32xf32>
    %112 = math.tanh %111 : vector<8x32xf32>
    %113 = arith.mulf %109, %89 : vector<8x32xf32>
    %114 = arith.mulf %108, %112 : vector<8x32xf32>
    %115 = arith.addf %113, %114 : vector<8x32xf32>
    %116 = math.tanh %115 : vector<8x32xf32>
    %117 = arith.mulf %110, %116 : vector<8x32xf32>
    %118 = vector.broadcast %c2_i32 : i32 to vector<8x1xi32>
    %119 = arith.cmpi sgt, %15, %118 : vector<8x1xi32>
    %120 = vector.shape_cast %119 : vector<8x1xi1> to vector<8x1xi1>
    %121 = vector.broadcast %120 : vector<8x1xi1> to vector<8x32xi1>
    %122 = arith.select %121, %115, %89 : vector<8x32xi1>, vector<8x32xf32>
    %123 = vector.shape_cast %119 : vector<8x1xi1> to vector<8x1xi1>
    %124 = vector.broadcast %123 : vector<8x1xi1> to vector<8x32xi1>
    %125 = arith.select %124, %117, %92 : vector<8x32xi1>, vector<8x32xf32>
    %126 = arith.index_cast %96 : i32 to index
    %c0_41 = arith.constant 0 : index
    %127 = vector.load %arg12[%126, %c0_41] : memref<120x32xf32, #tpu.memory_space<vmem>>, vector<8x32xf32>
    tpu.vector_store %arg12[%126, %c0_41], %125 {strides = array<i32>} : memref<120x32xf32, #tpu.memory_space<vmem>>, vector<8x32xf32>,
    %c3_i32 = arith.constant 3 : i32
    %c8_i32_42 = arith.constant 8 : i32
    %128 = arith.muli %c3_i32, %c8_i32_42 : i32
    %129 = tpu.assume_multiple %128, 8 : i32
    %130 = arith.index_cast %129 : i32 to index
    %c0_43 = arith.constant 0 : index
    %131 = vector.load %arg13[%130, %c0_43] : memref<120x128xf32, #tpu.memory_space<vmem>>, vector<8x128xf32>
    %132 = arith.truncf %125 : vector<8x32xf32> to vector<8x32xbf16>
    %cst_44 = arith.constant dense<0.000000e+00> : vector<8x128xf32>
    %133 = tpu.matmul %132, %27, %cst_44 {dimension_numbers = #tpu.dot_dimension_numbers<[1], [0], [0], [1], [0, 0, 1, 1], [], []>} : vector<8x32xbf16>, vector<32x128xbf16>, vector<8x128xf32> -> vector<8x128xf32>
    %134 = arith.addf %131, %133 : vector<8x128xf32>
    %135 = vector.extract_strided_slice %134 {offsets = [0, 0], sizes = [8, 96], strides = [1, 1]} : vector<8x128xf32> to vector<8x96xf32>
    %136 = arith.negf %135 : vector<8x96xf32>
    %137 = math.exp %136 : vector<8x96xf32>
    %cst_45 = arith.constant 1.000000e+00 : f32
    %138 = vector.broadcast %cst_45 : f32 to vector<8x96xf32>
    %139 = arith.addf %138, %137 : vector<8x96xf32>
    %140 = arith.divf %138, %139 : vector<8x96xf32>
    %141 = vector.extract_strided_slice %140 {offsets = [0, 0], sizes = [8, 32], strides = [1, 1]} : vector<8x96xf32> to vector<8x32xf32>
    %142 = vector.extract_strided_slice %140 {offsets = [0, 32], sizes = [8, 32], strides = [1, 1]} : vector<8x96xf32> to vector<8x32xf32>
    %143 = vector.extract_strided_slice %140 {offsets = [0, 64], sizes = [8, 32], strides = [1, 1]} : vector<8x96xf32> to vector<8x32xf32>
    %144 = vector.extract_strided_slice %134 {offsets = [0, 96], sizes = [8, 32], strides = [1, 1]} : vector<8x128xf32> to vector<8x32xf32>
    %145 = math.tanh %144 : vector<8x32xf32>
    %146 = arith.mulf %142, %122 : vector<8x32xf32>
    %147 = arith.mulf %141, %145 : vector<8x32xf32>
    %148 = arith.addf %146, %147 : vector<8x32xf32>
    %149 = math.tanh %148 : vector<8x32xf32>
    %150 = arith.mulf %143, %149 : vector<8x32xf32>
    %151 = vector.broadcast %c3_i32 : i32 to vector<8x1xi32>
    %152 = arith.cmpi sgt, %15, %151 : vector<8x1xi32>
    %153 = vector.shape_cast %152 : vector<8x1xi1> to vector<8x1xi1>
    %154 = vector.broadcast %153 : vector<8x1xi1> to vector<8x32xi1>
    %155 = arith.select %154, %148, %122 : vector<8x32xi1>, vector<8x32xf32>
    %156 = vector.shape_cast %152 : vector<8x1xi1> to vector<8x1xi1>
    %157 = vector.broadcast %156 : vector<8x1xi1> to vector<8x32xi1>
    %158 = arith.select %157, %150, %125 : vector<8x32xi1>, vector<8x32xf32>
    %159 = arith.index_cast %129 : i32 to index
    %c0_46 = arith.constant 0 : index
    %160 = vector.load %arg12[%159, %c0_46] : memref<120x32xf32, #tpu.memory_space<vmem>>, vector<8x32xf32>
    tpu.vector_store %arg12[%159, %c0_46], %158 {strides = array<i32>} : memref<120x32xf32, #tpu.memory_space<vmem>>, vector<8x32xf32>,
    %c4_i32 = arith.constant 4 : i32
    %c8_i32_47 = arith.constant 8 : i32
    %161 = arith.muli %c4_i32, %c8_i32_47 : i32
    %162 = tpu.assume_multiple %161, 8 : i32
    %163 = arith.index_cast %162 : i32 to index
    %c0_48 = arith.constant 0 : index
    %164 = vector.load %arg13[%163, %c0_48] : memref<120x128xf32, #tpu.memory_space<vmem>>, vector<8x128xf32>
    %165 = arith.truncf %158 : vector<8x32xf32> to vector<8x32xbf16>
    %cst_49 = arith.constant dense<0.000000e+00> : vector<8x128xf32>
    %166 = tpu.matmul %165, %27, %cst_49 {dimension_numbers = #tpu.dot_dimension_numbers<[1], [0], [0], [1], [0, 0, 1, 1], [], []>} : vector<8x32xbf16>, vector<32x128xbf16>, vector<8x128xf32> -> vector<8x128xf32>
    %167 = arith.addf %164, %166 : vector<8x128xf32>
    %168 = vector.extract_strided_slice %167 {offsets = [0, 0], sizes = [8, 96], strides = [1, 1]} : vector<8x128xf32> to vector<8x96xf32>
    %169 = arith.negf %168 : vector<8x96xf32>
    %170 = math.exp %169 : vector<8x96xf32>
    %cst_50 = arith.constant 1.000000e+00 : f32
    %171 = vector.broadcast %cst_50 : f32 to vector<8x96xf32>
    %172 = arith.addf %171, %170 : vector<8x96xf32>
    %173 = arith.divf %171, %172 : vector<8x96xf32>
    %174 = vector.extract_strided_slice %173 {offsets = [0, 0], sizes = [8, 32], strides = [1, 1]} : vector<8x96xf32> to vector<8x32xf32>
    %175 = vector.extract_strided_slice %173 {offsets = [0, 32], sizes = [8, 32], strides = [1, 1]} : vector<8x96xf32> to vector<8x32xf32>
    %176 = vector.extract_strided_slice %173 {offsets = [0, 64], sizes = [8, 32], strides = [1, 1]} : vector<8x96xf32> to vector<8x32xf32>
    %177 = vector.extract_strided_slice %167 {offsets = [0, 96], sizes = [8, 32], strides = [1, 1]} : vector<8x128xf32> to vector<8x32xf32>
    %178 = math.tanh %177 : vector<8x32xf32>
    %179 = arith.mulf %175, %155 : vector<8x32xf32>
    %180 = arith.mulf %174, %178 : vector<8x32xf32>
    %181 = arith.addf %179, %180 : vector<8x32xf32>
    %182 = math.tanh %181 : vector<8x32xf32>
    %183 = arith.mulf %176, %182 : vector<8x32xf32>
    %184 = vector.broadcast %c4_i32 : i32 to vector<8x1xi32>
    %185 = arith.cmpi sgt, %15, %184 : vector<8x1xi32>
    %186 = vector.shape_cast %185 : vector<8x1xi1> to vector<8x1xi1>
    %187 = vector.broadcast %186 : vector<8x1xi1> to vector<8x32xi1>
    %188 = arith.select %187, %181, %155 : vector<8x32xi1>, vector<8x32xf32>
    %189 = vector.shape_cast %185 : vector<8x1xi1> to vector<8x1xi1>
    %190 = vector.broadcast %189 : vector<8x1xi1> to vector<8x32xi1>
    %191 = arith.select %190, %183, %158 : vector<8x32xi1>, vector<8x32xf32>
    %192 = arith.index_cast %162 : i32 to index
    %c0_51 = arith.constant 0 : index
    %193 = vector.load %arg12[%192, %c0_51] : memref<120x32xf32, #tpu.memory_space<vmem>>, vector<8x32xf32>
    tpu.vector_store %arg12[%192, %c0_51], %191 {strides = array<i32>} : memref<120x32xf32, #tpu.memory_space<vmem>>, vector<8x32xf32>,
    %c5_i32 = arith.constant 5 : i32
    %c8_i32_52 = arith.constant 8 : i32
    %194 = arith.muli %c5_i32, %c8_i32_52 : i32
    %195 = tpu.assume_multiple %194, 8 : i32
    %196 = arith.index_cast %195 : i32 to index
    %c0_53 = arith.constant 0 : index
    %197 = vector.load %arg13[%196, %c0_53] : memref<120x128xf32, #tpu.memory_space<vmem>>, vector<8x128xf32>
    %198 = arith.truncf %191 : vector<8x32xf32> to vector<8x32xbf16>
    %cst_54 = arith.constant dense<0.000000e+00> : vector<8x128xf32>
    %199 = tpu.matmul %198, %27, %cst_54 {dimension_numbers = #tpu.dot_dimension_numbers<[1], [0], [0], [1], [0, 0, 1, 1], [], []>} : vector<8x32xbf16>, vector<32x128xbf16>, vector<8x128xf32> -> vector<8x128xf32>
    %200 = arith.addf %197, %199 : vector<8x128xf32>
    %201 = vector.extract_strided_slice %200 {offsets = [0, 0], sizes = [8, 96], strides = [1, 1]} : vector<8x128xf32> to vector<8x96xf32>
    %202 = arith.negf %201 : vector<8x96xf32>
    %203 = math.exp %202 : vector<8x96xf32>
    %cst_55 = arith.constant 1.000000e+00 : f32
    %204 = vector.broadcast %cst_55 : f32 to vector<8x96xf32>
    %205 = arith.addf %204, %203 : vector<8x96xf32>
    %206 = arith.divf %204, %205 : vector<8x96xf32>
    %207 = vector.extract_strided_slice %206 {offsets = [0, 0], sizes = [8, 32], strides = [1, 1]} : vector<8x96xf32> to vector<8x32xf32>
    %208 = vector.extract_strided_slice %206 {offsets = [0, 32], sizes = [8, 32], strides = [1, 1]} : vector<8x96xf32> to vector<8x32xf32>
    %209 = vector.extract_strided_slice %206 {offsets = [0, 64], sizes = [8, 32], strides = [1, 1]} : vector<8x96xf32> to vector<8x32xf32>
    %210 = vector.extract_strided_slice %200 {offsets = [0, 96], sizes = [8, 32], strides = [1, 1]} : vector<8x128xf32> to vector<8x32xf32>
    %211 = math.tanh %210 : vector<8x32xf32>
    %212 = arith.mulf %208, %188 : vector<8x32xf32>
    %213 = arith.mulf %207, %211 : vector<8x32xf32>
    %214 = arith.addf %212, %213 : vector<8x32xf32>
    %215 = math.tanh %214 : vector<8x32xf32>
    %216 = arith.mulf %209, %215 : vector<8x32xf32>
    %217 = vector.broadcast %c5_i32 : i32 to vector<8x1xi32>
    %218 = arith.cmpi sgt, %15, %217 : vector<8x1xi32>
    %219 = vector.shape_cast %218 : vector<8x1xi1> to vector<8x1xi1>
    %220 = vector.broadcast %219 : vector<8x1xi1> to vector<8x32xi1>
    %221 = arith.select %220, %214, %188 : vector<8x32xi1>, vector<8x32xf32>
    %222 = vector.shape_cast %218 : vector<8x1xi1> to vector<8x1xi1>
    %223 = vector.broadcast %222 : vector<8x1xi1> to vector<8x32xi1>
    %224 = arith.select %223, %216, %191 : vector<8x32xi1>, vector<8x32xf32>
    %225 = arith.index_cast %195 : i32 to index
    %c0_56 = arith.constant 0 : index
    %226 = vector.load %arg12[%225, %c0_56] : memref<120x32xf32, #tpu.memory_space<vmem>>, vector<8x32xf32>
    tpu.vector_store %arg12[%225, %c0_56], %224 {strides = array<i32>} : memref<120x32xf32, #tpu.memory_space<vmem>>, vector<8x32xf32>,
    %c6_i32 = arith.constant 6 : i32
    %c8_i32_57 = arith.constant 8 : i32
    %227 = arith.muli %c6_i32, %c8_i32_57 : i32
    %228 = tpu.assume_multiple %227, 8 : i32
    %229 = arith.index_cast %228 : i32 to index
    %c0_58 = arith.constant 0 : index
    %230 = vector.load %arg13[%229, %c0_58] : memref<120x128xf32, #tpu.memory_space<vmem>>, vector<8x128xf32>
    %231 = arith.truncf %224 : vector<8x32xf32> to vector<8x32xbf16>
    %cst_59 = arith.constant dense<0.000000e+00> : vector<8x128xf32>
    %232 = tpu.matmul %231, %27, %cst_59 {dimension_numbers = #tpu.dot_dimension_numbers<[1], [0], [0], [1], [0, 0, 1, 1], [], []>} : vector<8x32xbf16>, vector<32x128xbf16>, vector<8x128xf32> -> vector<8x128xf32>
    %233 = arith.addf %230, %232 : vector<8x128xf32>
    %234 = vector.extract_strided_slice %233 {offsets = [0, 0], sizes = [8, 96], strides = [1, 1]} : vector<8x128xf32> to vector<8x96xf32>
    %235 = arith.negf %234 : vector<8x96xf32>
    %236 = math.exp %235 : vector<8x96xf32>
    %cst_60 = arith.constant 1.000000e+00 : f32
    %237 = vector.broadcast %cst_60 : f32 to vector<8x96xf32>
    %238 = arith.addf %237, %236 : vector<8x96xf32>
    %239 = arith.divf %237, %238 : vector<8x96xf32>
    %240 = vector.extract_strided_slice %239 {offsets = [0, 0], sizes = [8, 32], strides = [1, 1]} : vector<8x96xf32> to vector<8x32xf32>
    %241 = vector.extract_strided_slice %239 {offsets = [0, 32], sizes = [8, 32], strides = [1, 1]} : vector<8x96xf32> to vector<8x32xf32>
    %242 = vector.extract_strided_slice %239 {offsets = [0, 64], sizes = [8, 32], strides = [1, 1]} : vector<8x96xf32> to vector<8x32xf32>
    %243 = vector.extract_strided_slice %233 {offsets = [0, 96], sizes = [8, 32], strides = [1, 1]} : vector<8x128xf32> to vector<8x32xf32>
    %244 = math.tanh %243 : vector<8x32xf32>
    %245 = arith.mulf %241, %221 : vector<8x32xf32>
    %246 = arith.mulf %240, %244 : vector<8x32xf32>
    %247 = arith.addf %245, %246 : vector<8x32xf32>
    %248 = math.tanh %247 : vector<8x32xf32>
    %249 = arith.mulf %242, %248 : vector<8x32xf32>
    %250 = vector.broadcast %c6_i32 : i32 to vector<8x1xi32>
    %251 = arith.cmpi sgt, %15, %250 : vector<8x1xi32>
    %252 = vector.shape_cast %251 : vector<8x1xi1> to vector<8x1xi1>
    %253 = vector.broadcast %252 : vector<8x1xi1> to vector<8x32xi1>
    %254 = arith.select %253, %247, %221 : vector<8x32xi1>, vector<8x32xf32>
    %255 = vector.shape_cast %251 : vector<8x1xi1> to vector<8x1xi1>
    %256 = vector.broadcast %255 : vector<8x1xi1> to vector<8x32xi1>
    %257 = arith.select %256, %249, %224 : vector<8x32xi1>, vector<8x32xf32>
    %258 = arith.index_cast %228 : i32 to index
    %c0_61 = arith.constant 0 : index
    %259 = vector.load %arg12[%258, %c0_61] : memref<120x32xf32, #tpu.memory_space<vmem>>, vector<8x32xf32>
    tpu.vector_store %arg12[%258, %c0_61], %257 {strides = array<i32>} : memref<120x32xf32, #tpu.memory_space<vmem>>, vector<8x32xf32>,
    %c7_i32 = arith.constant 7 : i32
    %c8_i32_62 = arith.constant 8 : i32
    %260 = arith.muli %c7_i32, %c8_i32_62 : i32
    %261 = tpu.assume_multiple %260, 8 : i32
    %262 = arith.index_cast %261 : i32 to index
    %c0_63 = arith.constant 0 : index
    %263 = vector.load %arg13[%262, %c0_63] : memref<120x128xf32, #tpu.memory_space<vmem>>, vector<8x128xf32>
    %264 = arith.truncf %257 : vector<8x32xf32> to vector<8x32xbf16>
    %cst_64 = arith.constant dense<0.000000e+00> : vector<8x128xf32>
    %265 = tpu.matmul %264, %27, %cst_64 {dimension_numbers = #tpu.dot_dimension_numbers<[1], [0], [0], [1], [0, 0, 1, 1], [], []>} : vector<8x32xbf16>, vector<32x128xbf16>, vector<8x128xf32> -> vector<8x128xf32>
    %266 = arith.addf %263, %265 : vector<8x128xf32>
    %267 = vector.extract_strided_slice %266 {offsets = [0, 0], sizes = [8, 96], strides = [1, 1]} : vector<8x128xf32> to vector<8x96xf32>
    %268 = arith.negf %267 : vector<8x96xf32>
    %269 = math.exp %268 : vector<8x96xf32>
    %cst_65 = arith.constant 1.000000e+00 : f32
    %270 = vector.broadcast %cst_65 : f32 to vector<8x96xf32>
    %271 = arith.addf %270, %269 : vector<8x96xf32>
    %272 = arith.divf %270, %271 : vector<8x96xf32>
    %273 = vector.extract_strided_slice %272 {offsets = [0, 0], sizes = [8, 32], strides = [1, 1]} : vector<8x96xf32> to vector<8x32xf32>
    %274 = vector.extract_strided_slice %272 {offsets = [0, 32], sizes = [8, 32], strides = [1, 1]} : vector<8x96xf32> to vector<8x32xf32>
    %275 = vector.extract_strided_slice %272 {offsets = [0, 64], sizes = [8, 32], strides = [1, 1]} : vector<8x96xf32> to vector<8x32xf32>
    %276 = vector.extract_strided_slice %266 {offsets = [0, 96], sizes = [8, 32], strides = [1, 1]} : vector<8x128xf32> to vector<8x32xf32>
    %277 = math.tanh %276 : vector<8x32xf32>
    %278 = arith.mulf %274, %254 : vector<8x32xf32>
    %279 = arith.mulf %273, %277 : vector<8x32xf32>
    %280 = arith.addf %278, %279 : vector<8x32xf32>
    %281 = math.tanh %280 : vector<8x32xf32>
    %282 = arith.mulf %275, %281 : vector<8x32xf32>
    %283 = vector.broadcast %c7_i32 : i32 to vector<8x1xi32>
    %284 = arith.cmpi sgt, %15, %283 : vector<8x1xi32>
    %285 = vector.shape_cast %284 : vector<8x1xi1> to vector<8x1xi1>
    %286 = vector.broadcast %285 : vector<8x1xi1> to vector<8x32xi1>
    %287 = arith.select %286, %280, %254 : vector<8x32xi1>, vector<8x32xf32>
    %288 = vector.shape_cast %284 : vector<8x1xi1> to vector<8x1xi1>
    %289 = vector.broadcast %288 : vector<8x1xi1> to vector<8x32xi1>
    %290 = arith.select %289, %282, %257 : vector<8x32xi1>, vector<8x32xf32>
    %291 = arith.index_cast %261 : i32 to index
    %c0_66 = arith.constant 0 : index
    %292 = vector.load %arg12[%291, %c0_66] : memref<120x32xf32, #tpu.memory_space<vmem>>, vector<8x32xf32>
    tpu.vector_store %arg12[%291, %c0_66], %290 {strides = array<i32>} : memref<120x32xf32, #tpu.memory_space<vmem>>, vector<8x32xf32>,
    %c8_i32_67 = arith.constant 8 : i32
    %c8_i32_68 = arith.constant 8 : i32
    %293 = arith.muli %c8_i32_67, %c8_i32_68 : i32
    %294 = tpu.assume_multiple %293, 8 : i32
    %295 = arith.index_cast %294 : i32 to index
    %c0_69 = arith.constant 0 : index
    %296 = vector.load %arg13[%295, %c0_69] : memref<120x128xf32, #tpu.memory_space<vmem>>, vector<8x128xf32>
    %297 = arith.truncf %290 : vector<8x32xf32> to vector<8x32xbf16>
    %cst_70 = arith.constant dense<0.000000e+00> : vector<8x128xf32>
    %298 = tpu.matmul %297, %27, %cst_70 {dimension_numbers = #tpu.dot_dimension_numbers<[1], [0], [0], [1], [0, 0, 1, 1], [], []>} : vector<8x32xbf16>, vector<32x128xbf16>, vector<8x128xf32> -> vector<8x128xf32>
    %299 = arith.addf %296, %298 : vector<8x128xf32>
    %300 = vector.extract_strided_slice %299 {offsets = [0, 0], sizes = [8, 96], strides = [1, 1]} : vector<8x128xf32> to vector<8x96xf32>
    %301 = arith.negf %300 : vector<8x96xf32>
    %302 = math.exp %301 : vector<8x96xf32>
    %cst_71 = arith.constant 1.000000e+00 : f32
    %303 = vector.broadcast %cst_71 : f32 to vector<8x96xf32>
    %304 = arith.addf %303, %302 : vector<8x96xf32>
    %305 = arith.divf %303, %304 : vector<8x96xf32>
    %306 = vector.extract_strided_slice %305 {offsets = [0, 0], sizes = [8, 32], strides = [1, 1]} : vector<8x96xf32> to vector<8x32xf32>
    %307 = vector.extract_strided_slice %305 {offsets = [0, 32], sizes = [8, 32], strides = [1, 1]} : vector<8x96xf32> to vector<8x32xf32>
    %308 = vector.extract_strided_slice %305 {offsets = [0, 64], sizes = [8, 32], strides = [1, 1]} : vector<8x96xf32> to vector<8x32xf32>
    %309 = vector.extract_strided_slice %299 {offsets = [0, 96], sizes = [8, 32], strides = [1, 1]} : vector<8x128xf32> to vector<8x32xf32>
    %310 = math.tanh %309 : vector<8x32xf32>
    %311 = arith.mulf %307, %287 : vector<8x32xf32>
    %312 = arith.mulf %306, %310 : vector<8x32xf32>
    %313 = arith.addf %311, %312 : vector<8x32xf32>
    %314 = math.tanh %313 : vector<8x32xf32>
    %315 = arith.mulf %308, %314 : vector<8x32xf32>
    %316 = vector.broadcast %c8_i32_67 : i32 to vector<8x1xi32>
    %317 = arith.cmpi sgt, %15, %316 : vector<8x1xi32>
    %318 = vector.shape_cast %317 : vector<8x1xi1> to vector<8x1xi1>
    %319 = vector.broadcast %318 : vector<8x1xi1> to vector<8x32xi1>
    %320 = arith.select %319, %313, %287 : vector<8x32xi1>, vector<8x32xf32>
    %321 = vector.shape_cast %317 : vector<8x1xi1> to vector<8x1xi1>
    %322 = vector.broadcast %321 : vector<8x1xi1> to vector<8x32xi1>
    %323 = arith.select %322, %315, %290 : vector<8x32xi1>, vector<8x32xf32>
    %324 = arith.index_cast %294 : i32 to index
    %c0_72 = arith.constant 0 : index
    %325 = vector.load %arg12[%324, %c0_72] : memref<120x32xf32, #tpu.memory_space<vmem>>, vector<8x32xf32>
    tpu.vector_store %arg12[%324, %c0_72], %323 {strides = array<i32>} : memref<120x32xf32, #tpu.memory_space<vmem>>, vector<8x32xf32>,
    %c9_i32 = arith.constant 9 : i32
    %c8_i32_73 = arith.constant 8 : i32
    %326 = arith.muli %c9_i32, %c8_i32_73 : i32
    %327 = tpu.assume_multiple %326, 8 : i32
    %328 = arith.index_cast %327 : i32 to index
    %c0_74 = arith.constant 0 : index
    %329 = vector.load %arg13[%328, %c0_74] : memref<120x128xf32, #tpu.memory_space<vmem>>, vector<8x128xf32>
    %330 = arith.truncf %323 : vector<8x32xf32> to vector<8x32xbf16>
    %cst_75 = arith.constant dense<0.000000e+00> : vector<8x128xf32>
    %331 = tpu.matmul %330, %27, %cst_75 {dimension_numbers = #tpu.dot_dimension_numbers<[1], [0], [0], [1], [0, 0, 1, 1], [], []>} : vector<8x32xbf16>, vector<32x128xbf16>, vector<8x128xf32> -> vector<8x128xf32>
    %332 = arith.addf %329, %331 : vector<8x128xf32>
    %333 = vector.extract_strided_slice %332 {offsets = [0, 0], sizes = [8, 96], strides = [1, 1]} : vector<8x128xf32> to vector<8x96xf32>
    %334 = arith.negf %333 : vector<8x96xf32>
    %335 = math.exp %334 : vector<8x96xf32>
    %cst_76 = arith.constant 1.000000e+00 : f32
    %336 = vector.broadcast %cst_76 : f32 to vector<8x96xf32>
    %337 = arith.addf %336, %335 : vector<8x96xf32>
    %338 = arith.divf %336, %337 : vector<8x96xf32>
    %339 = vector.extract_strided_slice %338 {offsets = [0, 0], sizes = [8, 32], strides = [1, 1]} : vector<8x96xf32> to vector<8x32xf32>
    %340 = vector.extract_strided_slice %338 {offsets = [0, 32], sizes = [8, 32], strides = [1, 1]} : vector<8x96xf32> to vector<8x32xf32>
    %341 = vector.extract_strided_slice %338 {offsets = [0, 64], sizes = [8, 32], strides = [1, 1]} : vector<8x96xf32> to vector<8x32xf32>
    %342 = vector.extract_strided_slice %332 {offsets = [0, 96], sizes = [8, 32], strides = [1, 1]} : vector<8x128xf32> to vector<8x32xf32>
    %343 = math.tanh %342 : vector<8x32xf32>
    %344 = arith.mulf %340, %320 : vector<8x32xf32>
    %345 = arith.mulf %339, %343 : vector<8x32xf32>
    %346 = arith.addf %344, %345 : vector<8x32xf32>
    %347 = math.tanh %346 : vector<8x32xf32>
    %348 = arith.mulf %341, %347 : vector<8x32xf32>
    %349 = vector.broadcast %c9_i32 : i32 to vector<8x1xi32>
    %350 = arith.cmpi sgt, %15, %349 : vector<8x1xi32>
    %351 = vector.shape_cast %350 : vector<8x1xi1> to vector<8x1xi1>
    %352 = vector.broadcast %351 : vector<8x1xi1> to vector<8x32xi1>
    %353 = arith.select %352, %346, %320 : vector<8x32xi1>, vector<8x32xf32>
    %354 = vector.shape_cast %350 : vector<8x1xi1> to vector<8x1xi1>
    %355 = vector.broadcast %354 : vector<8x1xi1> to vector<8x32xi1>
    %356 = arith.select %355, %348, %323 : vector<8x32xi1>, vector<8x32xf32>
    %357 = arith.index_cast %327 : i32 to index
    %c0_77 = arith.constant 0 : index
    %358 = vector.load %arg12[%357, %c0_77] : memref<120x32xf32, #tpu.memory_space<vmem>>, vector<8x32xf32>
    tpu.vector_store %arg12[%357, %c0_77], %356 {strides = array<i32>} : memref<120x32xf32, #tpu.memory_space<vmem>>, vector<8x32xf32>,
    %c10_i32 = arith.constant 10 : i32
    %c8_i32_78 = arith.constant 8 : i32
    %359 = arith.muli %c10_i32, %c8_i32_78 : i32
    %360 = tpu.assume_multiple %359, 8 : i32
    %361 = arith.index_cast %360 : i32 to index
    %c0_79 = arith.constant 0 : index
    %362 = vector.load %arg13[%361, %c0_79] : memref<120x128xf32, #tpu.memory_space<vmem>>, vector<8x128xf32>
    %363 = arith.truncf %356 : vector<8x32xf32> to vector<8x32xbf16>
    %cst_80 = arith.constant dense<0.000000e+00> : vector<8x128xf32>
    %364 = tpu.matmul %363, %27, %cst_80 {dimension_numbers = #tpu.dot_dimension_numbers<[1], [0], [0], [1], [0, 0, 1, 1], [], []>} : vector<8x32xbf16>, vector<32x128xbf16>, vector<8x128xf32> -> vector<8x128xf32>
    %365 = arith.addf %362, %364 : vector<8x128xf32>
    %366 = vector.extract_strided_slice %365 {offsets = [0, 0], sizes = [8, 96], strides = [1, 1]} : vector<8x128xf32> to vector<8x96xf32>
    %367 = arith.negf %366 : vector<8x96xf32>
    %368 = math.exp %367 : vector<8x96xf32>
    %cst_81 = arith.constant 1.000000e+00 : f32
    %369 = vector.broadcast %cst_81 : f32 to vector<8x96xf32>
    %370 = arith.addf %369, %368 : vector<8x96xf32>
    %371 = arith.divf %369, %370 : vector<8x96xf32>
    %372 = vector.extract_strided_slice %371 {offsets = [0, 0], sizes = [8, 32], strides = [1, 1]} : vector<8x96xf32> to vector<8x32xf32>
    %373 = vector.extract_strided_slice %371 {offsets = [0, 32], sizes = [8, 32], strides = [1, 1]} : vector<8x96xf32> to vector<8x32xf32>
    %374 = vector.extract_strided_slice %371 {offsets = [0, 64], sizes = [8, 32], strides = [1, 1]} : vector<8x96xf32> to vector<8x32xf32>
    %375 = vector.extract_strided_slice %365 {offsets = [0, 96], sizes = [8, 32], strides = [1, 1]} : vector<8x128xf32> to vector<8x32xf32>
    %376 = math.tanh %375 : vector<8x32xf32>
    %377 = arith.mulf %373, %353 : vector<8x32xf32>
    %378 = arith.mulf %372, %376 : vector<8x32xf32>
    %379 = arith.addf %377, %378 : vector<8x32xf32>
    %380 = math.tanh %379 : vector<8x32xf32>
    %381 = arith.mulf %374, %380 : vector<8x32xf32>
    %382 = vector.broadcast %c10_i32 : i32 to vector<8x1xi32>
    %383 = arith.cmpi sgt, %15, %382 : vector<8x1xi32>
    %384 = vector.shape_cast %383 : vector<8x1xi1> to vector<8x1xi1>
    %385 = vector.broadcast %384 : vector<8x1xi1> to vector<8x32xi1>
    %386 = arith.select %385, %379, %353 : vector<8x32xi1>, vector<8x32xf32>
    %387 = vector.shape_cast %383 : vector<8x1xi1> to vector<8x1xi1>
    %388 = vector.broadcast %387 : vector<8x1xi1> to vector<8x32xi1>
    %389 = arith.select %388, %381, %356 : vector<8x32xi1>, vector<8x32xf32>
    %390 = arith.index_cast %360 : i32 to index
    %c0_82 = arith.constant 0 : index
    %391 = vector.load %arg12[%390, %c0_82] : memref<120x32xf32, #tpu.memory_space<vmem>>, vector<8x32xf32>
    tpu.vector_store %arg12[%390, %c0_82], %389 {strides = array<i32>} : memref<120x32xf32, #tpu.memory_space<vmem>>, vector<8x32xf32>,
    %c11_i32 = arith.constant 11 : i32
    %c8_i32_83 = arith.constant 8 : i32
    %392 = arith.muli %c11_i32, %c8_i32_83 : i32
    %393 = tpu.assume_multiple %392, 8 : i32
    %394 = arith.index_cast %393 : i32 to index
    %c0_84 = arith.constant 0 : index
    %395 = vector.load %arg13[%394, %c0_84] : memref<120x128xf32, #tpu.memory_space<vmem>>, vector<8x128xf32>
    %396 = arith.truncf %389 : vector<8x32xf32> to vector<8x32xbf16>
    %cst_85 = arith.constant dense<0.000000e+00> : vector<8x128xf32>
    %397 = tpu.matmul %396, %27, %cst_85 {dimension_numbers = #tpu.dot_dimension_numbers<[1], [0], [0], [1], [0, 0, 1, 1], [], []>} : vector<8x32xbf16>, vector<32x128xbf16>, vector<8x128xf32> -> vector<8x128xf32>
    %398 = arith.addf %395, %397 : vector<8x128xf32>
    %399 = vector.extract_strided_slice %398 {offsets = [0, 0], sizes = [8, 96], strides = [1, 1]} : vector<8x128xf32> to vector<8x96xf32>
    %400 = arith.negf %399 : vector<8x96xf32>
    %401 = math.exp %400 : vector<8x96xf32>
    %cst_86 = arith.constant 1.000000e+00 : f32
    %402 = vector.broadcast %cst_86 : f32 to vector<8x96xf32>
    %403 = arith.addf %402, %401 : vector<8x96xf32>
    %404 = arith.divf %402, %403 : vector<8x96xf32>
    %405 = vector.extract_strided_slice %404 {offsets = [0, 0], sizes = [8, 32], strides = [1, 1]} : vector<8x96xf32> to vector<8x32xf32>
    %406 = vector.extract_strided_slice %404 {offsets = [0, 32], sizes = [8, 32], strides = [1, 1]} : vector<8x96xf32> to vector<8x32xf32>
    %407 = vector.extract_strided_slice %404 {offsets = [0, 64], sizes = [8, 32], strides = [1, 1]} : vector<8x96xf32> to vector<8x32xf32>
    %408 = vector.extract_strided_slice %398 {offsets = [0, 96], sizes = [8, 32], strides = [1, 1]} : vector<8x128xf32> to vector<8x32xf32>
    %409 = math.tanh %408 : vector<8x32xf32>
    %410 = arith.mulf %406, %386 : vector<8x32xf32>
    %411 = arith.mulf %405, %409 : vector<8x32xf32>
    %412 = arith.addf %410, %411 : vector<8x32xf32>
    %413 = math.tanh %412 : vector<8x32xf32>
    %414 = arith.mulf %407, %413 : vector<8x32xf32>
    %415 = vector.broadcast %c11_i32 : i32 to vector<8x1xi32>
    %416 = arith.cmpi sgt, %15, %415 : vector<8x1xi32>
    %417 = vector.shape_cast %416 : vector<8x1xi1> to vector<8x1xi1>
    %418 = vector.broadcast %417 : vector<8x1xi1> to vector<8x32xi1>
    %419 = arith.select %418, %412, %386 : vector<8x32xi1>, vector<8x32xf32>
    %420 = vector.shape_cast %416 : vector<8x1xi1> to vector<8x1xi1>
    %421 = vector.broadcast %420 : vector<8x1xi1> to vector<8x32xi1>
    %422 = arith.select %421, %414, %389 : vector<8x32xi1>, vector<8x32xf32>
    %423 = arith.index_cast %393 : i32 to index
    %c0_87 = arith.constant 0 : index
    %424 = vector.load %arg12[%423, %c0_87] : memref<120x32xf32, #tpu.memory_space<vmem>>, vector<8x32xf32>
    tpu.vector_store %arg12[%423, %c0_87], %422 {strides = array<i32>} : memref<120x32xf32, #tpu.memory_space<vmem>>, vector<8x32xf32>,
    %c12_i32 = arith.constant 12 : i32
    %c8_i32_88 = arith.constant 8 : i32
    %425 = arith.muli %c12_i32, %c8_i32_88 : i32
    %426 = tpu.assume_multiple %425, 8 : i32
    %427 = arith.index_cast %426 : i32 to index
    %c0_89 = arith.constant 0 : index
    %428 = vector.load %arg13[%427, %c0_89] : memref<120x128xf32, #tpu.memory_space<vmem>>, vector<8x128xf32>
    %429 = arith.truncf %422 : vector<8x32xf32> to vector<8x32xbf16>
    %cst_90 = arith.constant dense<0.000000e+00> : vector<8x128xf32>
    %430 = tpu.matmul %429, %27, %cst_90 {dimension_numbers = #tpu.dot_dimension_numbers<[1], [0], [0], [1], [0, 0, 1, 1], [], []>} : vector<8x32xbf16>, vector<32x128xbf16>, vector<8x128xf32> -> vector<8x128xf32>
    %431 = arith.addf %428, %430 : vector<8x128xf32>
    %432 = vector.extract_strided_slice %431 {offsets = [0, 0], sizes = [8, 96], strides = [1, 1]} : vector<8x128xf32> to vector<8x96xf32>
    %433 = arith.negf %432 : vector<8x96xf32>
    %434 = math.exp %433 : vector<8x96xf32>
    %cst_91 = arith.constant 1.000000e+00 : f32
    %435 = vector.broadcast %cst_91 : f32 to vector<8x96xf32>
    %436 = arith.addf %435, %434 : vector<8x96xf32>
    %437 = arith.divf %435, %436 : vector<8x96xf32>
    %438 = vector.extract_strided_slice %437 {offsets = [0, 0], sizes = [8, 32], strides = [1, 1]} : vector<8x96xf32> to vector<8x32xf32>
    %439 = vector.extract_strided_slice %437 {offsets = [0, 32], sizes = [8, 32], strides = [1, 1]} : vector<8x96xf32> to vector<8x32xf32>
    %440 = vector.extract_strided_slice %437 {offsets = [0, 64], sizes = [8, 32], strides = [1, 1]} : vector<8x96xf32> to vector<8x32xf32>
    %441 = vector.extract_strided_slice %431 {offsets = [0, 96], sizes = [8, 32], strides = [1, 1]} : vector<8x128xf32> to vector<8x32xf32>
    %442 = math.tanh %441 : vector<8x32xf32>
    %443 = arith.mulf %439, %419 : vector<8x32xf32>
    %444 = arith.mulf %438, %442 : vector<8x32xf32>
    %445 = arith.addf %443, %444 : vector<8x32xf32>
    %446 = math.tanh %445 : vector<8x32xf32>
    %447 = arith.mulf %440, %446 : vector<8x32xf32>
    %448 = vector.broadcast %c12_i32 : i32 to vector<8x1xi32>
    %449 = arith.cmpi sgt, %15, %448 : vector<8x1xi32>
    %450 = vector.shape_cast %449 : vector<8x1xi1> to vector<8x1xi1>
    %451 = vector.broadcast %450 : vector<8x1xi1> to vector<8x32xi1>
    %452 = arith.select %451, %445, %419 : vector<8x32xi1>, vector<8x32xf32>
    %453 = vector.shape_cast %449 : vector<8x1xi1> to vector<8x1xi1>
    %454 = vector.broadcast %453 : vector<8x1xi1> to vector<8x32xi1>
    %455 = arith.select %454, %447, %422 : vector<8x32xi1>, vector<8x32xf32>
    %456 = arith.index_cast %426 : i32 to index
    %c0_92 = arith.constant 0 : index
    %457 = vector.load %arg12[%456, %c0_92] : memref<120x32xf32, #tpu.memory_space<vmem>>, vector<8x32xf32>
    tpu.vector_store %arg12[%456, %c0_92], %455 {strides = array<i32>} : memref<120x32xf32, #tpu.memory_space<vmem>>, vector<8x32xf32>,
    %c13_i32 = arith.constant 13 : i32
    %c8_i32_93 = arith.constant 8 : i32
    %458 = arith.muli %c13_i32, %c8_i32_93 : i32
    %459 = tpu.assume_multiple %458, 8 : i32
    %460 = arith.index_cast %459 : i32 to index
    %c0_94 = arith.constant 0 : index
    %461 = vector.load %arg13[%460, %c0_94] : memref<120x128xf32, #tpu.memory_space<vmem>>, vector<8x128xf32>
    %462 = arith.truncf %455 : vector<8x32xf32> to vector<8x32xbf16>
    %cst_95 = arith.constant dense<0.000000e+00> : vector<8x128xf32>
    %463 = tpu.matmul %462, %27, %cst_95 {dimension_numbers = #tpu.dot_dimension_numbers<[1], [0], [0], [1], [0, 0, 1, 1], [], []>} : vector<8x32xbf16>, vector<32x128xbf16>, vector<8x128xf32> -> vector<8x128xf32>
    %464 = arith.addf %461, %463 : vector<8x128xf32>
    %465 = vector.extract_strided_slice %464 {offsets = [0, 0], sizes = [8, 96], strides = [1, 1]} : vector<8x128xf32> to vector<8x96xf32>
    %466 = arith.negf %465 : vector<8x96xf32>
    %467 = math.exp %466 : vector<8x96xf32>
    %cst_96 = arith.constant 1.000000e+00 : f32
    %468 = vector.broadcast %cst_96 : f32 to vector<8x96xf32>
    %469 = arith.addf %468, %467 : vector<8x96xf32>
    %470 = arith.divf %468, %469 : vector<8x96xf32>
    %471 = vector.extract_strided_slice %470 {offsets = [0, 0], sizes = [8, 32], strides = [1, 1]} : vector<8x96xf32> to vector<8x32xf32>
    %472 = vector.extract_strided_slice %470 {offsets = [0, 32], sizes = [8, 32], strides = [1, 1]} : vector<8x96xf32> to vector<8x32xf32>
    %473 = vector.extract_strided_slice %470 {offsets = [0, 64], sizes = [8, 32], strides = [1, 1]} : vector<8x96xf32> to vector<8x32xf32>
    %474 = vector.extract_strided_slice %464 {offsets = [0, 96], sizes = [8, 32], strides = [1, 1]} : vector<8x128xf32> to vector<8x32xf32>
    %475 = math.tanh %474 : vector<8x32xf32>
    %476 = arith.mulf %472, %452 : vector<8x32xf32>
    %477 = arith.mulf %471, %475 : vector<8x32xf32>
    %478 = arith.addf %476, %477 : vector<8x32xf32>
    %479 = math.tanh %478 : vector<8x32xf32>
    %480 = arith.mulf %473, %479 : vector<8x32xf32>
    %481 = vector.broadcast %c13_i32 : i32 to vector<8x1xi32>
    %482 = arith.cmpi sgt, %15, %481 : vector<8x1xi32>
    %483 = vector.shape_cast %482 : vector<8x1xi1> to vector<8x1xi1>
    %484 = vector.broadcast %483 : vector<8x1xi1> to vector<8x32xi1>
    %485 = arith.select %484, %478, %452 : vector<8x32xi1>, vector<8x32xf32>
    %486 = vector.shape_cast %482 : vector<8x1xi1> to vector<8x1xi1>
    %487 = vector.broadcast %486 : vector<8x1xi1> to vector<8x32xi1>
    %488 = arith.select %487, %480, %455 : vector<8x32xi1>, vector<8x32xf32>
    %489 = arith.index_cast %459 : i32 to index
    %c0_97 = arith.constant 0 : index
    %490 = vector.load %arg12[%489, %c0_97] : memref<120x32xf32, #tpu.memory_space<vmem>>, vector<8x32xf32>
    tpu.vector_store %arg12[%489, %c0_97], %488 {strides = array<i32>} : memref<120x32xf32, #tpu.memory_space<vmem>>, vector<8x32xf32>,
    %c14_i32 = arith.constant 14 : i32
    %c8_i32_98 = arith.constant 8 : i32
    %491 = arith.muli %c14_i32, %c8_i32_98 : i32
    %492 = tpu.assume_multiple %491, 8 : i32
    %493 = arith.index_cast %492 : i32 to index
    %c0_99 = arith.constant 0 : index
    %494 = vector.load %arg13[%493, %c0_99] : memref<120x128xf32, #tpu.memory_space<vmem>>, vector<8x128xf32>
    %495 = arith.truncf %488 : vector<8x32xf32> to vector<8x32xbf16>
    %cst_100 = arith.constant dense<0.000000e+00> : vector<8x128xf32>
    %496 = tpu.matmul %495, %27, %cst_100 {dimension_numbers = #tpu.dot_dimension_numbers<[1], [0], [0], [1], [0, 0, 1, 1], [], []>} : vector<8x32xbf16>, vector<32x128xbf16>, vector<8x128xf32> -> vector<8x128xf32>
    %497 = arith.addf %494, %496 : vector<8x128xf32>
    %498 = vector.extract_strided_slice %497 {offsets = [0, 0], sizes = [8, 96], strides = [1, 1]} : vector<8x128xf32> to vector<8x96xf32>
    %499 = arith.negf %498 : vector<8x96xf32>
    %500 = math.exp %499 : vector<8x96xf32>
    %cst_101 = arith.constant 1.000000e+00 : f32
    %501 = vector.broadcast %cst_101 : f32 to vector<8x96xf32>
    %502 = arith.addf %501, %500 : vector<8x96xf32>
    %503 = arith.divf %501, %502 : vector<8x96xf32>
    %504 = vector.extract_strided_slice %503 {offsets = [0, 0], sizes = [8, 32], strides = [1, 1]} : vector<8x96xf32> to vector<8x32xf32>
    %505 = vector.extract_strided_slice %503 {offsets = [0, 32], sizes = [8, 32], strides = [1, 1]} : vector<8x96xf32> to vector<8x32xf32>
    %506 = vector.extract_strided_slice %503 {offsets = [0, 64], sizes = [8, 32], strides = [1, 1]} : vector<8x96xf32> to vector<8x32xf32>
    %507 = vector.extract_strided_slice %497 {offsets = [0, 96], sizes = [8, 32], strides = [1, 1]} : vector<8x128xf32> to vector<8x32xf32>
    %508 = math.tanh %507 : vector<8x32xf32>
    %509 = arith.mulf %505, %485 : vector<8x32xf32>
    %510 = arith.mulf %504, %508 : vector<8x32xf32>
    %511 = arith.addf %509, %510 : vector<8x32xf32>
    %512 = math.tanh %511 : vector<8x32xf32>
    %513 = arith.mulf %506, %512 : vector<8x32xf32>
    %514 = vector.broadcast %c14_i32 : i32 to vector<8x1xi32>
    %515 = arith.cmpi sgt, %15, %514 : vector<8x1xi32>
    %516 = vector.shape_cast %515 : vector<8x1xi1> to vector<8x1xi1>
    %517 = vector.broadcast %516 : vector<8x1xi1> to vector<8x32xi1>
    %518 = arith.select %517, %511, %485 : vector<8x32xi1>, vector<8x32xf32>
    %519 = vector.shape_cast %515 : vector<8x1xi1> to vector<8x1xi1>
    %520 = vector.broadcast %519 : vector<8x1xi1> to vector<8x32xi1>
    %521 = arith.select %520, %513, %488 : vector<8x32xi1>, vector<8x32xf32>
    %522 = arith.index_cast %492 : i32 to index
    %c0_102 = arith.constant 0 : index
    %523 = vector.load %arg12[%522, %c0_102] : memref<120x32xf32, #tpu.memory_space<vmem>>, vector<8x32xf32>
    tpu.vector_store %arg12[%522, %c0_102], %521 {strides = array<i32>} : memref<120x32xf32, #tpu.memory_space<vmem>>, vector<8x32xf32>,
    %c15_i32 = arith.constant 15 : i32
    %c0_103 = arith.constant 0 : index
    %c0_104 = arith.constant 0 : index
    %524 = vector.load %arg12[%c0_103, %c0_104] : memref<120x32xf32, #tpu.memory_space<vmem>>, vector<120x32xf32>
    %525 = arith.truncf %524 : vector<120x32xf32> to vector<120x32xbf16>
    %c1 = arith.constant 1 : index
    %c0_105 = arith.constant 0 : index
    %c0_106 = arith.constant 0 : index
    %526 = vector.load %arg6[%c1, %c0_105, %c0_106] : memref<2x32x128xbf16, #tpu.memory_space<vmem>>, vector<1x32x128xbf16>
    %527 = vector.shape_cast %526 : vector<1x32x128xbf16> to vector<32x128xbf16>
    %cst_107 = arith.constant dense<0.000000e+00> : vector<120x128xf32>
    %528 = tpu.matmul %525, %527, %cst_107 {dimension_numbers = #tpu.dot_dimension_numbers<[1], [0], [0], [1], [0, 0, 1, 1], [], []>} : vector<120x32xbf16>, vector<32x128xbf16>, vector<120x128xf32> -> vector<120x128xf32>
    %c1_108 = arith.constant 1 : index
    %c0_109 = arith.constant 0 : index
    %c0_110 = arith.constant 0 : index
    %529 = vector.load %arg8[%c1_108, %c0_109, %c0_110] : memref<2x1x128xf32, #tpu.memory_space<vmem>>, vector<1x1x128xf32>
    %530 = vector.shape_cast %529 : vector<1x1x128xf32> to vector<1x128xf32>
    %531 = vector.broadcast %530 : vector<1x128xf32> to vector<120x128xf32>
    %532 = arith.addf %528, %531 : vector<120x128xf32>
    %c0_111 = arith.constant 0 : index
    %c0_112 = arith.constant 0 : index
    %533 = vector.load %arg13[%c0_111, %c0_112] : memref<120x128xf32, #tpu.memory_space<vmem>>, vector<120x128xf32>
    tpu.vector_store %arg13[%c0_111, %c0_112], %532 {strides = array<i32>} : memref<120x128xf32, #tpu.memory_space<vmem>>, vector<120x128xf32>,
    %c1_113 = arith.constant 1 : index
    %c0_114 = arith.constant 0 : index
    %c0_115 = arith.constant 0 : index
    %534 = vector.load %arg7[%c1_113, %c0_114, %c0_115] : memref<2x32x128xbf16, #tpu.memory_space<vmem>>, vector<1x32x128xbf16>
    %535 = vector.shape_cast %534 : vector<1x32x128xbf16> to vector<32x128xbf16>
    %cst_116 = arith.constant 0.000000e+00 : f32
    %536 = vector.broadcast %cst_116 : f32 to vector<8x32xf32>
    %c0_i32_117 = arith.constant 0 : i32
    %c8_i32_118 = arith.constant 8 : i32
    %537 = arith.muli %c0_i32_117, %c8_i32_118 : i32
    %538 = tpu.assume_multiple %537, 8 : i32
    %539 = arith.index_cast %538 : i32 to index
    %c0_119 = arith.constant 0 : index
    %540 = vector.load %arg13[%539, %c0_119] : memref<120x128xf32, #tpu.memory_space<vmem>>, vector<8x128xf32>
    %541 = arith.truncf %536 : vector<8x32xf32> to vector<8x32xbf16>
    %cst_120 = arith.constant dense<0.000000e+00> : vector<8x128xf32>
    %542 = tpu.matmul %541, %535, %cst_120 {dimension_numbers = #tpu.dot_dimension_numbers<[1], [0], [0], [1], [0, 0, 1, 1], [], []>} : vector<8x32xbf16>, vector<32x128xbf16>, vector<8x128xf32> -> vector<8x128xf32>
    %543 = arith.addf %540, %542 : vector<8x128xf32>
    %544 = vector.extract_strided_slice %543 {offsets = [0, 0], sizes = [8, 96], strides = [1, 1]} : vector<8x128xf32> to vector<8x96xf32>
    %545 = arith.negf %544 : vector<8x96xf32>
    %546 = math.exp %545 : vector<8x96xf32>
    %cst_121 = arith.constant 1.000000e+00 : f32
    %547 = vector.broadcast %cst_121 : f32 to vector<8x96xf32>
    %548 = arith.addf %547, %546 : vector<8x96xf32>
    %549 = arith.divf %547, %548 : vector<8x96xf32>
    %550 = vector.extract_strided_slice %549 {offsets = [0, 0], sizes = [8, 32], strides = [1, 1]} : vector<8x96xf32> to vector<8x32xf32>
    %551 = vector.extract_strided_slice %549 {offsets = [0, 32], sizes = [8, 32], strides = [1, 1]} : vector<8x96xf32> to vector<8x32xf32>
    %552 = vector.extract_strided_slice %549 {offsets = [0, 64], sizes = [8, 32], strides = [1, 1]} : vector<8x96xf32> to vector<8x32xf32>
    %553 = vector.extract_strided_slice %543 {offsets = [0, 96], sizes = [8, 32], strides = [1, 1]} : vector<8x128xf32> to vector<8x32xf32>
    %554 = math.tanh %553 : vector<8x32xf32>
    %555 = arith.mulf %551, %536 : vector<8x32xf32>
    %556 = arith.mulf %550, %554 : vector<8x32xf32>
    %557 = arith.addf %555, %556 : vector<8x32xf32>
    %558 = math.tanh %557 : vector<8x32xf32>
    %559 = arith.mulf %552, %558 : vector<8x32xf32>
    %560 = vector.broadcast %c0_i32_117 : i32 to vector<8x1xi32>
    %561 = arith.cmpi sgt, %15, %560 : vector<8x1xi32>
    %562 = vector.shape_cast %561 : vector<8x1xi1> to vector<8x1xi1>
    %563 = vector.broadcast %562 : vector<8x1xi1> to vector<8x32xi1>
    %564 = arith.select %563, %557, %536 : vector<8x32xi1>, vector<8x32xf32>
    %565 = vector.shape_cast %561 : vector<8x1xi1> to vector<8x1xi1>
    %566 = vector.broadcast %565 : vector<8x1xi1> to vector<8x32xi1>
    %567 = arith.select %566, %559, %536 : vector<8x32xi1>, vector<8x32xf32>
    %c1_i32_122 = arith.constant 1 : i32
    %c8_i32_123 = arith.constant 8 : i32
    %568 = arith.muli %c1_i32_122, %c8_i32_123 : i32
    %569 = tpu.assume_multiple %568, 8 : i32
    %570 = arith.index_cast %569 : i32 to index
    %c0_124 = arith.constant 0 : index
    %571 = vector.load %arg13[%570, %c0_124] : memref<120x128xf32, #tpu.memory_space<vmem>>, vector<8x128xf32>
    %572 = arith.truncf %567 : vector<8x32xf32> to vector<8x32xbf16>
    %cst_125 = arith.constant dense<0.000000e+00> : vector<8x128xf32>
    %573 = tpu.matmul %572, %535, %cst_125 {dimension_numbers = #tpu.dot_dimension_numbers<[1], [0], [0], [1], [0, 0, 1, 1], [], []>} : vector<8x32xbf16>, vector<32x128xbf16>, vector<8x128xf32> -> vector<8x128xf32>
    %574 = arith.addf %571, %573 : vector<8x128xf32>
    %575 = vector.extract_strided_slice %574 {offsets = [0, 0], sizes = [8, 96], strides = [1, 1]} : vector<8x128xf32> to vector<8x96xf32>
    %576 = arith.negf %575 : vector<8x96xf32>
    %577 = math.exp %576 : vector<8x96xf32>
    %cst_126 = arith.constant 1.000000e+00 : f32
    %578 = vector.broadcast %cst_126 : f32 to vector<8x96xf32>
    %579 = arith.addf %578, %577 : vector<8x96xf32>
    %580 = arith.divf %578, %579 : vector<8x96xf32>
    %581 = vector.extract_strided_slice %580 {offsets = [0, 0], sizes = [8, 32], strides = [1, 1]} : vector<8x96xf32> to vector<8x32xf32>
    %582 = vector.extract_strided_slice %580 {offsets = [0, 32], sizes = [8, 32], strides = [1, 1]} : vector<8x96xf32> to vector<8x32xf32>
    %583 = vector.extract_strided_slice %580 {offsets = [0, 64], sizes = [8, 32], strides = [1, 1]} : vector<8x96xf32> to vector<8x32xf32>
    %584 = vector.extract_strided_slice %574 {offsets = [0, 96], sizes = [8, 32], strides = [1, 1]} : vector<8x128xf32> to vector<8x32xf32>
    %585 = math.tanh %584 : vector<8x32xf32>
    %586 = arith.mulf %582, %564 : vector<8x32xf32>
    %587 = arith.mulf %581, %585 : vector<8x32xf32>
    %588 = arith.addf %586, %587 : vector<8x32xf32>
    %589 = math.tanh %588 : vector<8x32xf32>
    %590 = arith.mulf %583, %589 : vector<8x32xf32>
    %591 = vector.broadcast %c1_i32_122 : i32 to vector<8x1xi32>
    %592 = arith.cmpi sgt, %15, %591 : vector<8x1xi32>
    %593 = vector.shape_cast %592 : vector<8x1xi1> to vector<8x1xi1>
    %594 = vector.broadcast %593 : vector<8x1xi1> to vector<8x32xi1>
    %595 = arith.select %594, %588, %564 : vector<8x32xi1>, vector<8x32xf32>
    %596 = vector.shape_cast %592 : vector<8x1xi1> to vector<8x1xi1>
    %597 = vector.broadcast %596 : vector<8x1xi1> to vector<8x32xi1>
    %598 = arith.select %597, %590, %567 : vector<8x32xi1>, vector<8x32xf32>
    %c2_i32_127 = arith.constant 2 : i32
    %c8_i32_128 = arith.constant 8 : i32
    %599 = arith.muli %c2_i32_127, %c8_i32_128 : i32
    %600 = tpu.assume_multiple %599, 8 : i32
    %601 = arith.index_cast %600 : i32 to index
    %c0_129 = arith.constant 0 : index
    %602 = vector.load %arg13[%601, %c0_129] : memref<120x128xf32, #tpu.memory_space<vmem>>, vector<8x128xf32>
    %603 = arith.truncf %598 : vector<8x32xf32> to vector<8x32xbf16>
    %cst_130 = arith.constant dense<0.000000e+00> : vector<8x128xf32>
    %604 = tpu.matmul %603, %535, %cst_130 {dimension_numbers = #tpu.dot_dimension_numbers<[1], [0], [0], [1], [0, 0, 1, 1], [], []>} : vector<8x32xbf16>, vector<32x128xbf16>, vector<8x128xf32> -> vector<8x128xf32>
    %605 = arith.addf %602, %604 : vector<8x128xf32>
    %606 = vector.extract_strided_slice %605 {offsets = [0, 0], sizes = [8, 96], strides = [1, 1]} : vector<8x128xf32> to vector<8x96xf32>
    %607 = arith.negf %606 : vector<8x96xf32>
    %608 = math.exp %607 : vector<8x96xf32>
    %cst_131 = arith.constant 1.000000e+00 : f32
    %609 = vector.broadcast %cst_131 : f32 to vector<8x96xf32>
    %610 = arith.addf %609, %608 : vector<8x96xf32>
    %611 = arith.divf %609, %610 : vector<8x96xf32>
    %612 = vector.extract_strided_slice %611 {offsets = [0, 0], sizes = [8, 32], strides = [1, 1]} : vector<8x96xf32> to vector<8x32xf32>
    %613 = vector.extract_strided_slice %611 {offsets = [0, 32], sizes = [8, 32], strides = [1, 1]} : vector<8x96xf32> to vector<8x32xf32>
    %614 = vector.extract_strided_slice %611 {offsets = [0, 64], sizes = [8, 32], strides = [1, 1]} : vector<8x96xf32> to vector<8x32xf32>
    %615 = vector.extract_strided_slice %605 {offsets = [0, 96], sizes = [8, 32], strides = [1, 1]} : vector<8x128xf32> to vector<8x32xf32>
    %616 = math.tanh %615 : vector<8x32xf32>
    %617 = arith.mulf %613, %595 : vector<8x32xf32>
    %618 = arith.mulf %612, %616 : vector<8x32xf32>
    %619 = arith.addf %617, %618 : vector<8x32xf32>
    %620 = math.tanh %619 : vector<8x32xf32>
    %621 = arith.mulf %614, %620 : vector<8x32xf32>
    %622 = vector.broadcast %c2_i32_127 : i32 to vector<8x1xi32>
    %623 = arith.cmpi sgt, %15, %622 : vector<8x1xi32>
    %624 = vector.shape_cast %623 : vector<8x1xi1> to vector<8x1xi1>
    %625 = vector.broadcast %624 : vector<8x1xi1> to vector<8x32xi1>
    %626 = arith.select %625, %619, %595 : vector<8x32xi1>, vector<8x32xf32>
    %627 = vector.shape_cast %623 : vector<8x1xi1> to vector<8x1xi1>
    %628 = vector.broadcast %627 : vector<8x1xi1> to vector<8x32xi1>
    %629 = arith.select %628, %621, %598 : vector<8x32xi1>, vector<8x32xf32>
    %c3_i32_132 = arith.constant 3 : i32
    %c8_i32_133 = arith.constant 8 : i32
    %630 = arith.muli %c3_i32_132, %c8_i32_133 : i32
    %631 = tpu.assume_multiple %630, 8 : i32
    %632 = arith.index_cast %631 : i32 to index
    %c0_134 = arith.constant 0 : index
    %633 = vector.load %arg13[%632, %c0_134] : memref<120x128xf32, #tpu.memory_space<vmem>>, vector<8x128xf32>
    %634 = arith.truncf %629 : vector<8x32xf32> to vector<8x32xbf16>
    %cst_135 = arith.constant dense<0.000000e+00> : vector<8x128xf32>
    %635 = tpu.matmul %634, %535, %cst_135 {dimension_numbers = #tpu.dot_dimension_numbers<[1], [0], [0], [1], [0, 0, 1, 1], [], []>} : vector<8x32xbf16>, vector<32x128xbf16>, vector<8x128xf32> -> vector<8x128xf32>
    %636 = arith.addf %633, %635 : vector<8x128xf32>
    %637 = vector.extract_strided_slice %636 {offsets = [0, 0], sizes = [8, 96], strides = [1, 1]} : vector<8x128xf32> to vector<8x96xf32>
    %638 = arith.negf %637 : vector<8x96xf32>
    %639 = math.exp %638 : vector<8x96xf32>
    %cst_136 = arith.constant 1.000000e+00 : f32
    %640 = vector.broadcast %cst_136 : f32 to vector<8x96xf32>
    %641 = arith.addf %640, %639 : vector<8x96xf32>
    %642 = arith.divf %640, %641 : vector<8x96xf32>
    %643 = vector.extract_strided_slice %642 {offsets = [0, 0], sizes = [8, 32], strides = [1, 1]} : vector<8x96xf32> to vector<8x32xf32>
    %644 = vector.extract_strided_slice %642 {offsets = [0, 32], sizes = [8, 32], strides = [1, 1]} : vector<8x96xf32> to vector<8x32xf32>
    %645 = vector.extract_strided_slice %642 {offsets = [0, 64], sizes = [8, 32], strides = [1, 1]} : vector<8x96xf32> to vector<8x32xf32>
    %646 = vector.extract_strided_slice %636 {offsets = [0, 96], sizes = [8, 32], strides = [1, 1]} : vector<8x128xf32> to vector<8x32xf32>
    %647 = math.tanh %646 : vector<8x32xf32>
    %648 = arith.mulf %644, %626 : vector<8x32xf32>
    %649 = arith.mulf %643, %647 : vector<8x32xf32>
    %650 = arith.addf %648, %649 : vector<8x32xf32>
    %651 = math.tanh %650 : vector<8x32xf32>
    %652 = arith.mulf %645, %651 : vector<8x32xf32>
    %653 = vector.broadcast %c3_i32_132 : i32 to vector<8x1xi32>
    %654 = arith.cmpi sgt, %15, %653 : vector<8x1xi32>
    %655 = vector.shape_cast %654 : vector<8x1xi1> to vector<8x1xi1>
    %656 = vector.broadcast %655 : vector<8x1xi1> to vector<8x32xi1>
    %657 = arith.select %656, %650, %626 : vector<8x32xi1>, vector<8x32xf32>
    %658 = vector.shape_cast %654 : vector<8x1xi1> to vector<8x1xi1>
    %659 = vector.broadcast %658 : vector<8x1xi1> to vector<8x32xi1>
    %660 = arith.select %659, %652, %629 : vector<8x32xi1>, vector<8x32xf32>
    %c4_i32_137 = arith.constant 4 : i32
    %c8_i32_138 = arith.constant 8 : i32
    %661 = arith.muli %c4_i32_137, %c8_i32_138 : i32
    %662 = tpu.assume_multiple %661, 8 : i32
    %663 = arith.index_cast %662 : i32 to index
    %c0_139 = arith.constant 0 : index
    %664 = vector.load %arg13[%663, %c0_139] : memref<120x128xf32, #tpu.memory_space<vmem>>, vector<8x128xf32>
    %665 = arith.truncf %660 : vector<8x32xf32> to vector<8x32xbf16>
    %cst_140 = arith.constant dense<0.000000e+00> : vector<8x128xf32>
    %666 = tpu.matmul %665, %535, %cst_140 {dimension_numbers = #tpu.dot_dimension_numbers<[1], [0], [0], [1], [0, 0, 1, 1], [], []>} : vector<8x32xbf16>, vector<32x128xbf16>, vector<8x128xf32> -> vector<8x128xf32>
    %667 = arith.addf %664, %666 : vector<8x128xf32>
    %668 = vector.extract_strided_slice %667 {offsets = [0, 0], sizes = [8, 96], strides = [1, 1]} : vector<8x128xf32> to vector<8x96xf32>
    %669 = arith.negf %668 : vector<8x96xf32>
    %670 = math.exp %669 : vector<8x96xf32>
    %cst_141 = arith.constant 1.000000e+00 : f32
    %671 = vector.broadcast %cst_141 : f32 to vector<8x96xf32>
    %672 = arith.addf %671, %670 : vector<8x96xf32>
    %673 = arith.divf %671, %672 : vector<8x96xf32>
    %674 = vector.extract_strided_slice %673 {offsets = [0, 0], sizes = [8, 32], strides = [1, 1]} : vector<8x96xf32> to vector<8x32xf32>
    %675 = vector.extract_strided_slice %673 {offsets = [0, 32], sizes = [8, 32], strides = [1, 1]} : vector<8x96xf32> to vector<8x32xf32>
    %676 = vector.extract_strided_slice %673 {offsets = [0, 64], sizes = [8, 32], strides = [1, 1]} : vector<8x96xf32> to vector<8x32xf32>
    %677 = vector.extract_strided_slice %667 {offsets = [0, 96], sizes = [8, 32], strides = [1, 1]} : vector<8x128xf32> to vector<8x32xf32>
    %678 = math.tanh %677 : vector<8x32xf32>
    %679 = arith.mulf %675, %657 : vector<8x32xf32>
    %680 = arith.mulf %674, %678 : vector<8x32xf32>
    %681 = arith.addf %679, %680 : vector<8x32xf32>
    %682 = math.tanh %681 : vector<8x32xf32>
    %683 = arith.mulf %676, %682 : vector<8x32xf32>
    %684 = vector.broadcast %c4_i32_137 : i32 to vector<8x1xi32>
    %685 = arith.cmpi sgt, %15, %684 : vector<8x1xi32>
    %686 = vector.shape_cast %685 : vector<8x1xi1> to vector<8x1xi1>
    %687 = vector.broadcast %686 : vector<8x1xi1> to vector<8x32xi1>
    %688 = arith.select %687, %681, %657 : vector<8x32xi1>, vector<8x32xf32>
    %689 = vector.shape_cast %685 : vector<8x1xi1> to vector<8x1xi1>
    %690 = vector.broadcast %689 : vector<8x1xi1> to vector<8x32xi1>
    %691 = arith.select %690, %683, %660 : vector<8x32xi1>, vector<8x32xf32>
    %c5_i32_142 = arith.constant 5 : i32
    %c8_i32_143 = arith.constant 8 : i32
    %692 = arith.muli %c5_i32_142, %c8_i32_143 : i32
    %693 = tpu.assume_multiple %692, 8 : i32
    %694 = arith.index_cast %693 : i32 to index
    %c0_144 = arith.constant 0 : index
    %695 = vector.load %arg13[%694, %c0_144] : memref<120x128xf32, #tpu.memory_space<vmem>>, vector<8x128xf32>
    %696 = arith.truncf %691 : vector<8x32xf32> to vector<8x32xbf16>
    %cst_145 = arith.constant dense<0.000000e+00> : vector<8x128xf32>
    %697 = tpu.matmul %696, %535, %cst_145 {dimension_numbers = #tpu.dot_dimension_numbers<[1], [0], [0], [1], [0, 0, 1, 1], [], []>} : vector<8x32xbf16>, vector<32x128xbf16>, vector<8x128xf32> -> vector<8x128xf32>
    %698 = arith.addf %695, %697 : vector<8x128xf32>
    %699 = vector.extract_strided_slice %698 {offsets = [0, 0], sizes = [8, 96], strides = [1, 1]} : vector<8x128xf32> to vector<8x96xf32>
    %700 = arith.negf %699 : vector<8x96xf32>
    %701 = math.exp %700 : vector<8x96xf32>
    %cst_146 = arith.constant 1.000000e+00 : f32
    %702 = vector.broadcast %cst_146 : f32 to vector<8x96xf32>
    %703 = arith.addf %702, %701 : vector<8x96xf32>
    %704 = arith.divf %702, %703 : vector<8x96xf32>
    %705 = vector.extract_strided_slice %704 {offsets = [0, 0], sizes = [8, 32], strides = [1, 1]} : vector<8x96xf32> to vector<8x32xf32>
    %706 = vector.extract_strided_slice %704 {offsets = [0, 32], sizes = [8, 32], strides = [1, 1]} : vector<8x96xf32> to vector<8x32xf32>
    %707 = vector.extract_strided_slice %704 {offsets = [0, 64], sizes = [8, 32], strides = [1, 1]} : vector<8x96xf32> to vector<8x32xf32>
    %708 = vector.extract_strided_slice %698 {offsets = [0, 96], sizes = [8, 32], strides = [1, 1]} : vector<8x128xf32> to vector<8x32xf32>
    %709 = math.tanh %708 : vector<8x32xf32>
    %710 = arith.mulf %706, %688 : vector<8x32xf32>
    %711 = arith.mulf %705, %709 : vector<8x32xf32>
    %712 = arith.addf %710, %711 : vector<8x32xf32>
    %713 = math.tanh %712 : vector<8x32xf32>
    %714 = arith.mulf %707, %713 : vector<8x32xf32>
    %715 = vector.broadcast %c5_i32_142 : i32 to vector<8x1xi32>
    %716 = arith.cmpi sgt, %15, %715 : vector<8x1xi32>
    %717 = vector.shape_cast %716 : vector<8x1xi1> to vector<8x1xi1>
    %718 = vector.broadcast %717 : vector<8x1xi1> to vector<8x32xi1>
    %719 = arith.select %718, %712, %688 : vector<8x32xi1>, vector<8x32xf32>
    %720 = vector.shape_cast %716 : vector<8x1xi1> to vector<8x1xi1>
    %721 = vector.broadcast %720 : vector<8x1xi1> to vector<8x32xi1>
    %722 = arith.select %721, %714, %691 : vector<8x32xi1>, vector<8x32xf32>
    %c6_i32_147 = arith.constant 6 : i32
    %c8_i32_148 = arith.constant 8 : i32
    %723 = arith.muli %c6_i32_147, %c8_i32_148 : i32
    %724 = tpu.assume_multiple %723, 8 : i32
    %725 = arith.index_cast %724 : i32 to index
    %c0_149 = arith.constant 0 : index
    %726 = vector.load %arg13[%725, %c0_149] : memref<120x128xf32, #tpu.memory_space<vmem>>, vector<8x128xf32>
    %727 = arith.truncf %722 : vector<8x32xf32> to vector<8x32xbf16>
    %cst_150 = arith.constant dense<0.000000e+00> : vector<8x128xf32>
    %728 = tpu.matmul %727, %535, %cst_150 {dimension_numbers = #tpu.dot_dimension_numbers<[1], [0], [0], [1], [0, 0, 1, 1], [], []>} : vector<8x32xbf16>, vector<32x128xbf16>, vector<8x128xf32> -> vector<8x128xf32>
    %729 = arith.addf %726, %728 : vector<8x128xf32>
    %730 = vector.extract_strided_slice %729 {offsets = [0, 0], sizes = [8, 96], strides = [1, 1]} : vector<8x128xf32> to vector<8x96xf32>
    %731 = arith.negf %730 : vector<8x96xf32>
    %732 = math.exp %731 : vector<8x96xf32>
    %cst_151 = arith.constant 1.000000e+00 : f32
    %733 = vector.broadcast %cst_151 : f32 to vector<8x96xf32>
    %734 = arith.addf %733, %732 : vector<8x96xf32>
    %735 = arith.divf %733, %734 : vector<8x96xf32>
    %736 = vector.extract_strided_slice %735 {offsets = [0, 0], sizes = [8, 32], strides = [1, 1]} : vector<8x96xf32> to vector<8x32xf32>
    %737 = vector.extract_strided_slice %735 {offsets = [0, 32], sizes = [8, 32], strides = [1, 1]} : vector<8x96xf32> to vector<8x32xf32>
    %738 = vector.extract_strided_slice %735 {offsets = [0, 64], sizes = [8, 32], strides = [1, 1]} : vector<8x96xf32> to vector<8x32xf32>
    %739 = vector.extract_strided_slice %729 {offsets = [0, 96], sizes = [8, 32], strides = [1, 1]} : vector<8x128xf32> to vector<8x32xf32>
    %740 = math.tanh %739 : vector<8x32xf32>
    %741 = arith.mulf %737, %719 : vector<8x32xf32>
    %742 = arith.mulf %736, %740 : vector<8x32xf32>
    %743 = arith.addf %741, %742 : vector<8x32xf32>
    %744 = math.tanh %743 : vector<8x32xf32>
    %745 = arith.mulf %738, %744 : vector<8x32xf32>
    %746 = vector.broadcast %c6_i32_147 : i32 to vector<8x1xi32>
    %747 = arith.cmpi sgt, %15, %746 : vector<8x1xi32>
    %748 = vector.shape_cast %747 : vector<8x1xi1> to vector<8x1xi1>
    %749 = vector.broadcast %748 : vector<8x1xi1> to vector<8x32xi1>
    %750 = arith.select %749, %743, %719 : vector<8x32xi1>, vector<8x32xf32>
    %751 = vector.shape_cast %747 : vector<8x1xi1> to vector<8x1xi1>
    %752 = vector.broadcast %751 : vector<8x1xi1> to vector<8x32xi1>
    %753 = arith.select %752, %745, %722 : vector<8x32xi1>, vector<8x32xf32>
    %c7_i32_152 = arith.constant 7 : i32
    %c8_i32_153 = arith.constant 8 : i32
    %754 = arith.muli %c7_i32_152, %c8_i32_153 : i32
    %755 = tpu.assume_multiple %754, 8 : i32
    %756 = arith.index_cast %755 : i32 to index
    %c0_154 = arith.constant 0 : index
    %757 = vector.load %arg13[%756, %c0_154] : memref<120x128xf32, #tpu.memory_space<vmem>>, vector<8x128xf32>
    %758 = arith.truncf %753 : vector<8x32xf32> to vector<8x32xbf16>
    %cst_155 = arith.constant dense<0.000000e+00> : vector<8x128xf32>
    %759 = tpu.matmul %758, %535, %cst_155 {dimension_numbers = #tpu.dot_dimension_numbers<[1], [0], [0], [1], [0, 0, 1, 1], [], []>} : vector<8x32xbf16>, vector<32x128xbf16>, vector<8x128xf32> -> vector<8x128xf32>
    %760 = arith.addf %757, %759 : vector<8x128xf32>
    %761 = vector.extract_strided_slice %760 {offsets = [0, 0], sizes = [8, 96], strides = [1, 1]} : vector<8x128xf32> to vector<8x96xf32>
    %762 = arith.negf %761 : vector<8x96xf32>
    %763 = math.exp %762 : vector<8x96xf32>
    %cst_156 = arith.constant 1.000000e+00 : f32
    %764 = vector.broadcast %cst_156 : f32 to vector<8x96xf32>
    %765 = arith.addf %764, %763 : vector<8x96xf32>
    %766 = arith.divf %764, %765 : vector<8x96xf32>
    %767 = vector.extract_strided_slice %766 {offsets = [0, 0], sizes = [8, 32], strides = [1, 1]} : vector<8x96xf32> to vector<8x32xf32>
    %768 = vector.extract_strided_slice %766 {offsets = [0, 32], sizes = [8, 32], strides = [1, 1]} : vector<8x96xf32> to vector<8x32xf32>
    %769 = vector.extract_strided_slice %766 {offsets = [0, 64], sizes = [8, 32], strides = [1, 1]} : vector<8x96xf32> to vector<8x32xf32>
    %770 = vector.extract_strided_slice %760 {offsets = [0, 96], sizes = [8, 32], strides = [1, 1]} : vector<8x128xf32> to vector<8x32xf32>
    %771 = math.tanh %770 : vector<8x32xf32>
    %772 = arith.mulf %768, %750 : vector<8x32xf32>
    %773 = arith.mulf %767, %771 : vector<8x32xf32>
    %774 = arith.addf %772, %773 : vector<8x32xf32>
    %775 = math.tanh %774 : vector<8x32xf32>
    %776 = arith.mulf %769, %775 : vector<8x32xf32>
    %777 = vector.broadcast %c7_i32_152 : i32 to vector<8x1xi32>
    %778 = arith.cmpi sgt, %15, %777 : vector<8x1xi32>
    %779 = vector.shape_cast %778 : vector<8x1xi1> to vector<8x1xi1>
    %780 = vector.broadcast %779 : vector<8x1xi1> to vector<8x32xi1>
    %781 = arith.select %780, %774, %750 : vector<8x32xi1>, vector<8x32xf32>
    %782 = vector.shape_cast %778 : vector<8x1xi1> to vector<8x1xi1>
    %783 = vector.broadcast %782 : vector<8x1xi1> to vector<8x32xi1>
    %784 = arith.select %783, %776, %753 : vector<8x32xi1>, vector<8x32xf32>
    %c8_i32_157 = arith.constant 8 : i32
    %c8_i32_158 = arith.constant 8 : i32
    %785 = arith.muli %c8_i32_157, %c8_i32_158 : i32
    %786 = tpu.assume_multiple %785, 8 : i32
    %787 = arith.index_cast %786 : i32 to index
    %c0_159 = arith.constant 0 : index
    %788 = vector.load %arg13[%787, %c0_159] : memref<120x128xf32, #tpu.memory_space<vmem>>, vector<8x128xf32>
    %789 = arith.truncf %784 : vector<8x32xf32> to vector<8x32xbf16>
    %cst_160 = arith.constant dense<0.000000e+00> : vector<8x128xf32>
    %790 = tpu.matmul %789, %535, %cst_160 {dimension_numbers = #tpu.dot_dimension_numbers<[1], [0], [0], [1], [0, 0, 1, 1], [], []>} : vector<8x32xbf16>, vector<32x128xbf16>, vector<8x128xf32> -> vector<8x128xf32>
    %791 = arith.addf %788, %790 : vector<8x128xf32>
    %792 = vector.extract_strided_slice %791 {offsets = [0, 0], sizes = [8, 96], strides = [1, 1]} : vector<8x128xf32> to vector<8x96xf32>
    %793 = arith.negf %792 : vector<8x96xf32>
    %794 = math.exp %793 : vector<8x96xf32>
    %cst_161 = arith.constant 1.000000e+00 : f32
    %795 = vector.broadcast %cst_161 : f32 to vector<8x96xf32>
    %796 = arith.addf %795, %794 : vector<8x96xf32>
    %797 = arith.divf %795, %796 : vector<8x96xf32>
    %798 = vector.extract_strided_slice %797 {offsets = [0, 0], sizes = [8, 32], strides = [1, 1]} : vector<8x96xf32> to vector<8x32xf32>
    %799 = vector.extract_strided_slice %797 {offsets = [0, 32], sizes = [8, 32], strides = [1, 1]} : vector<8x96xf32> to vector<8x32xf32>
    %800 = vector.extract_strided_slice %797 {offsets = [0, 64], sizes = [8, 32], strides = [1, 1]} : vector<8x96xf32> to vector<8x32xf32>
    %801 = vector.extract_strided_slice %791 {offsets = [0, 96], sizes = [8, 32], strides = [1, 1]} : vector<8x128xf32> to vector<8x32xf32>
    %802 = math.tanh %801 : vector<8x32xf32>
    %803 = arith.mulf %799, %781 : vector<8x32xf32>
    %804 = arith.mulf %798, %802 : vector<8x32xf32>
    %805 = arith.addf %803, %804 : vector<8x32xf32>
    %806 = math.tanh %805 : vector<8x32xf32>
    %807 = arith.mulf %800, %806 : vector<8x32xf32>
    %808 = vector.broadcast %c8_i32_157 : i32 to vector<8x1xi32>
    %809 = arith.cmpi sgt, %15, %808 : vector<8x1xi32>
    %810 = vector.shape_cast %809 : vector<8x1xi1> to vector<8x1xi1>
    %811 = vector.broadcast %810 : vector<8x1xi1> to vector<8x32xi1>
    %812 = arith.select %811, %805, %781 : vector<8x32xi1>, vector<8x32xf32>
    %813 = vector.shape_cast %809 : vector<8x1xi1> to vector<8x1xi1>
    %814 = vector.broadcast %813 : vector<8x1xi1> to vector<8x32xi1>
    %815 = arith.select %814, %807, %784 : vector<8x32xi1>, vector<8x32xf32>
    %c9_i32_162 = arith.constant 9 : i32
    %c8_i32_163 = arith.constant 8 : i32
    %816 = arith.muli %c9_i32_162, %c8_i32_163 : i32
    %817 = tpu.assume_multiple %816, 8 : i32
    %818 = arith.index_cast %817 : i32 to index
    %c0_164 = arith.constant 0 : index
    %819 = vector.load %arg13[%818, %c0_164] : memref<120x128xf32, #tpu.memory_space<vmem>>, vector<8x128xf32>
    %820 = arith.truncf %815 : vector<8x32xf32> to vector<8x32xbf16>
    %cst_165 = arith.constant dense<0.000000e+00> : vector<8x128xf32>
    %821 = tpu.matmul %820, %535, %cst_165 {dimension_numbers = #tpu.dot_dimension_numbers<[1], [0], [0], [1], [0, 0, 1, 1], [], []>} : vector<8x32xbf16>, vector<32x128xbf16>, vector<8x128xf32> -> vector<8x128xf32>
    %822 = arith.addf %819, %821 : vector<8x128xf32>
    %823 = vector.extract_strided_slice %822 {offsets = [0, 0], sizes = [8, 96], strides = [1, 1]} : vector<8x128xf32> to vector<8x96xf32>
    %824 = arith.negf %823 : vector<8x96xf32>
    %825 = math.exp %824 : vector<8x96xf32>
    %cst_166 = arith.constant 1.000000e+00 : f32
    %826 = vector.broadcast %cst_166 : f32 to vector<8x96xf32>
    %827 = arith.addf %826, %825 : vector<8x96xf32>
    %828 = arith.divf %826, %827 : vector<8x96xf32>
    %829 = vector.extract_strided_slice %828 {offsets = [0, 0], sizes = [8, 32], strides = [1, 1]} : vector<8x96xf32> to vector<8x32xf32>
    %830 = vector.extract_strided_slice %828 {offsets = [0, 32], sizes = [8, 32], strides = [1, 1]} : vector<8x96xf32> to vector<8x32xf32>
    %831 = vector.extract_strided_slice %828 {offsets = [0, 64], sizes = [8, 32], strides = [1, 1]} : vector<8x96xf32> to vector<8x32xf32>
    %832 = vector.extract_strided_slice %822 {offsets = [0, 96], sizes = [8, 32], strides = [1, 1]} : vector<8x128xf32> to vector<8x32xf32>
    %833 = math.tanh %832 : vector<8x32xf32>
    %834 = arith.mulf %830, %812 : vector<8x32xf32>
    %835 = arith.mulf %829, %833 : vector<8x32xf32>
    %836 = arith.addf %834, %835 : vector<8x32xf32>
    %837 = math.tanh %836 : vector<8x32xf32>
    %838 = arith.mulf %831, %837 : vector<8x32xf32>
    %839 = vector.broadcast %c9_i32_162 : i32 to vector<8x1xi32>
    %840 = arith.cmpi sgt, %15, %839 : vector<8x1xi32>
    %841 = vector.shape_cast %840 : vector<8x1xi1> to vector<8x1xi1>
    %842 = vector.broadcast %841 : vector<8x1xi1> to vector<8x32xi1>
    %843 = arith.select %842, %836, %812 : vector<8x32xi1>, vector<8x32xf32>
    %844 = vector.shape_cast %840 : vector<8x1xi1> to vector<8x1xi1>
    %845 = vector.broadcast %844 : vector<8x1xi1> to vector<8x32xi1>
    %846 = arith.select %845, %838, %815 : vector<8x32xi1>, vector<8x32xf32>
    %c10_i32_167 = arith.constant 10 : i32
    %c8_i32_168 = arith.constant 8 : i32
    %847 = arith.muli %c10_i32_167, %c8_i32_168 : i32
    %848 = tpu.assume_multiple %847, 8 : i32
    %849 = arith.index_cast %848 : i32 to index
    %c0_169 = arith.constant 0 : index
    %850 = vector.load %arg13[%849, %c0_169] : memref<120x128xf32, #tpu.memory_space<vmem>>, vector<8x128xf32>
    %851 = arith.truncf %846 : vector<8x32xf32> to vector<8x32xbf16>
    %cst_170 = arith.constant dense<0.000000e+00> : vector<8x128xf32>
    %852 = tpu.matmul %851, %535, %cst_170 {dimension_numbers = #tpu.dot_dimension_numbers<[1], [0], [0], [1], [0, 0, 1, 1], [], []>} : vector<8x32xbf16>, vector<32x128xbf16>, vector<8x128xf32> -> vector<8x128xf32>
    %853 = arith.addf %850, %852 : vector<8x128xf32>
    %854 = vector.extract_strided_slice %853 {offsets = [0, 0], sizes = [8, 96], strides = [1, 1]} : vector<8x128xf32> to vector<8x96xf32>
    %855 = arith.negf %854 : vector<8x96xf32>
    %856 = math.exp %855 : vector<8x96xf32>
    %cst_171 = arith.constant 1.000000e+00 : f32
    %857 = vector.broadcast %cst_171 : f32 to vector<8x96xf32>
    %858 = arith.addf %857, %856 : vector<8x96xf32>
    %859 = arith.divf %857, %858 : vector<8x96xf32>
    %860 = vector.extract_strided_slice %859 {offsets = [0, 0], sizes = [8, 32], strides = [1, 1]} : vector<8x96xf32> to vector<8x32xf32>
    %861 = vector.extract_strided_slice %859 {offsets = [0, 32], sizes = [8, 32], strides = [1, 1]} : vector<8x96xf32> to vector<8x32xf32>
    %862 = vector.extract_strided_slice %859 {offsets = [0, 64], sizes = [8, 32], strides = [1, 1]} : vector<8x96xf32> to vector<8x32xf32>
    %863 = vector.extract_strided_slice %853 {offsets = [0, 96], sizes = [8, 32], strides = [1, 1]} : vector<8x128xf32> to vector<8x32xf32>
    %864 = math.tanh %863 : vector<8x32xf32>
    %865 = arith.mulf %861, %843 : vector<8x32xf32>
    %866 = arith.mulf %860, %864 : vector<8x32xf32>
    %867 = arith.addf %865, %866 : vector<8x32xf32>
    %868 = math.tanh %867 : vector<8x32xf32>
    %869 = arith.mulf %862, %868 : vector<8x32xf32>
    %870 = vector.broadcast %c10_i32_167 : i32 to vector<8x1xi32>
    %871 = arith.cmpi sgt, %15, %870 : vector<8x1xi32>
    %872 = vector.shape_cast %871 : vector<8x1xi1> to vector<8x1xi1>
    %873 = vector.broadcast %872 : vector<8x1xi1> to vector<8x32xi1>
    %874 = arith.select %873, %867, %843 : vector<8x32xi1>, vector<8x32xf32>
    %875 = vector.shape_cast %871 : vector<8x1xi1> to vector<8x1xi1>
    %876 = vector.broadcast %875 : vector<8x1xi1> to vector<8x32xi1>
    %877 = arith.select %876, %869, %846 : vector<8x32xi1>, vector<8x32xf32>
    %c11_i32_172 = arith.constant 11 : i32
    %c8_i32_173 = arith.constant 8 : i32
    %878 = arith.muli %c11_i32_172, %c8_i32_173 : i32
    %879 = tpu.assume_multiple %878, 8 : i32
    %880 = arith.index_cast %879 : i32 to index
    %c0_174 = arith.constant 0 : index
    %881 = vector.load %arg13[%880, %c0_174] : memref<120x128xf32, #tpu.memory_space<vmem>>, vector<8x128xf32>
    %882 = arith.truncf %877 : vector<8x32xf32> to vector<8x32xbf16>
    %cst_175 = arith.constant dense<0.000000e+00> : vector<8x128xf32>
    %883 = tpu.matmul %882, %535, %cst_175 {dimension_numbers = #tpu.dot_dimension_numbers<[1], [0], [0], [1], [0, 0, 1, 1], [], []>} : vector<8x32xbf16>, vector<32x128xbf16>, vector<8x128xf32> -> vector<8x128xf32>
    %884 = arith.addf %881, %883 : vector<8x128xf32>
    %885 = vector.extract_strided_slice %884 {offsets = [0, 0], sizes = [8, 96], strides = [1, 1]} : vector<8x128xf32> to vector<8x96xf32>
    %886 = arith.negf %885 : vector<8x96xf32>
    %887 = math.exp %886 : vector<8x96xf32>
    %cst_176 = arith.constant 1.000000e+00 : f32
    %888 = vector.broadcast %cst_176 : f32 to vector<8x96xf32>
    %889 = arith.addf %888, %887 : vector<8x96xf32>
    %890 = arith.divf %888, %889 : vector<8x96xf32>
    %891 = vector.extract_strided_slice %890 {offsets = [0, 0], sizes = [8, 32], strides = [1, 1]} : vector<8x96xf32> to vector<8x32xf32>
    %892 = vector.extract_strided_slice %890 {offsets = [0, 32], sizes = [8, 32], strides = [1, 1]} : vector<8x96xf32> to vector<8x32xf32>
    %893 = vector.extract_strided_slice %890 {offsets = [0, 64], sizes = [8, 32], strides = [1, 1]} : vector<8x96xf32> to vector<8x32xf32>
    %894 = vector.extract_strided_slice %884 {offsets = [0, 96], sizes = [8, 32], strides = [1, 1]} : vector<8x128xf32> to vector<8x32xf32>
    %895 = math.tanh %894 : vector<8x32xf32>
    %896 = arith.mulf %892, %874 : vector<8x32xf32>
    %897 = arith.mulf %891, %895 : vector<8x32xf32>
    %898 = arith.addf %896, %897 : vector<8x32xf32>
    %899 = math.tanh %898 : vector<8x32xf32>
    %900 = arith.mulf %893, %899 : vector<8x32xf32>
    %901 = vector.broadcast %c11_i32_172 : i32 to vector<8x1xi32>
    %902 = arith.cmpi sgt, %15, %901 : vector<8x1xi32>
    %903 = vector.shape_cast %902 : vector<8x1xi1> to vector<8x1xi1>
    %904 = vector.broadcast %903 : vector<8x1xi1> to vector<8x32xi1>
    %905 = arith.select %904, %898, %874 : vector<8x32xi1>, vector<8x32xf32>
    %906 = vector.shape_cast %902 : vector<8x1xi1> to vector<8x1xi1>
    %907 = vector.broadcast %906 : vector<8x1xi1> to vector<8x32xi1>
    %908 = arith.select %907, %900, %877 : vector<8x32xi1>, vector<8x32xf32>
    %c12_i32_177 = arith.constant 12 : i32
    %c8_i32_178 = arith.constant 8 : i32
    %909 = arith.muli %c12_i32_177, %c8_i32_178 : i32
    %910 = tpu.assume_multiple %909, 8 : i32
    %911 = arith.index_cast %910 : i32 to index
    %c0_179 = arith.constant 0 : index
    %912 = vector.load %arg13[%911, %c0_179] : memref<120x128xf32, #tpu.memory_space<vmem>>, vector<8x128xf32>
    %913 = arith.truncf %908 : vector<8x32xf32> to vector<8x32xbf16>
    %cst_180 = arith.constant dense<0.000000e+00> : vector<8x128xf32>
    %914 = tpu.matmul %913, %535, %cst_180 {dimension_numbers = #tpu.dot_dimension_numbers<[1], [0], [0], [1], [0, 0, 1, 1], [], []>} : vector<8x32xbf16>, vector<32x128xbf16>, vector<8x128xf32> -> vector<8x128xf32>
    %915 = arith.addf %912, %914 : vector<8x128xf32>
    %916 = vector.extract_strided_slice %915 {offsets = [0, 0], sizes = [8, 96], strides = [1, 1]} : vector<8x128xf32> to vector<8x96xf32>
    %917 = arith.negf %916 : vector<8x96xf32>
    %918 = math.exp %917 : vector<8x96xf32>
    %cst_181 = arith.constant 1.000000e+00 : f32
    %919 = vector.broadcast %cst_181 : f32 to vector<8x96xf32>
    %920 = arith.addf %919, %918 : vector<8x96xf32>
    %921 = arith.divf %919, %920 : vector<8x96xf32>
    %922 = vector.extract_strided_slice %921 {offsets = [0, 0], sizes = [8, 32], strides = [1, 1]} : vector<8x96xf32> to vector<8x32xf32>
    %923 = vector.extract_strided_slice %921 {offsets = [0, 32], sizes = [8, 32], strides = [1, 1]} : vector<8x96xf32> to vector<8x32xf32>
    %924 = vector.extract_strided_slice %921 {offsets = [0, 64], sizes = [8, 32], strides = [1, 1]} : vector<8x96xf32> to vector<8x32xf32>
    %925 = vector.extract_strided_slice %915 {offsets = [0, 96], sizes = [8, 32], strides = [1, 1]} : vector<8x128xf32> to vector<8x32xf32>
    %926 = math.tanh %925 : vector<8x32xf32>
    %927 = arith.mulf %923, %905 : vector<8x32xf32>
    %928 = arith.mulf %922, %926 : vector<8x32xf32>
    %929 = arith.addf %927, %928 : vector<8x32xf32>
    %930 = math.tanh %929 : vector<8x32xf32>
    %931 = arith.mulf %924, %930 : vector<8x32xf32>
    %932 = vector.broadcast %c12_i32_177 : i32 to vector<8x1xi32>
    %933 = arith.cmpi sgt, %15, %932 : vector<8x1xi32>
    %934 = vector.shape_cast %933 : vector<8x1xi1> to vector<8x1xi1>
    %935 = vector.broadcast %934 : vector<8x1xi1> to vector<8x32xi1>
    %936 = arith.select %935, %929, %905 : vector<8x32xi1>, vector<8x32xf32>
    %937 = vector.shape_cast %933 : vector<8x1xi1> to vector<8x1xi1>
    %938 = vector.broadcast %937 : vector<8x1xi1> to vector<8x32xi1>
    %939 = arith.select %938, %931, %908 : vector<8x32xi1>, vector<8x32xf32>
    %c13_i32_182 = arith.constant 13 : i32
    %c8_i32_183 = arith.constant 8 : i32
    %940 = arith.muli %c13_i32_182, %c8_i32_183 : i32
    %941 = tpu.assume_multiple %940, 8 : i32
    %942 = arith.index_cast %941 : i32 to index
    %c0_184 = arith.constant 0 : index
    %943 = vector.load %arg13[%942, %c0_184] : memref<120x128xf32, #tpu.memory_space<vmem>>, vector<8x128xf32>
    %944 = arith.truncf %939 : vector<8x32xf32> to vector<8x32xbf16>
    %cst_185 = arith.constant dense<0.000000e+00> : vector<8x128xf32>
    %945 = tpu.matmul %944, %535, %cst_185 {dimension_numbers = #tpu.dot_dimension_numbers<[1], [0], [0], [1], [0, 0, 1, 1], [], []>} : vector<8x32xbf16>, vector<32x128xbf16>, vector<8x128xf32> -> vector<8x128xf32>
    %946 = arith.addf %943, %945 : vector<8x128xf32>
    %947 = vector.extract_strided_slice %946 {offsets = [0, 0], sizes = [8, 96], strides = [1, 1]} : vector<8x128xf32> to vector<8x96xf32>
    %948 = arith.negf %947 : vector<8x96xf32>
    %949 = math.exp %948 : vector<8x96xf32>
    %cst_186 = arith.constant 1.000000e+00 : f32
    %950 = vector.broadcast %cst_186 : f32 to vector<8x96xf32>
    %951 = arith.addf %950, %949 : vector<8x96xf32>
    %952 = arith.divf %950, %951 : vector<8x96xf32>
    %953 = vector.extract_strided_slice %952 {offsets = [0, 0], sizes = [8, 32], strides = [1, 1]} : vector<8x96xf32> to vector<8x32xf32>
    %954 = vector.extract_strided_slice %952 {offsets = [0, 32], sizes = [8, 32], strides = [1, 1]} : vector<8x96xf32> to vector<8x32xf32>
    %955 = vector.extract_strided_slice %952 {offsets = [0, 64], sizes = [8, 32], strides = [1, 1]} : vector<8x96xf32> to vector<8x32xf32>
    %956 = vector.extract_strided_slice %946 {offsets = [0, 96], sizes = [8, 32], strides = [1, 1]} : vector<8x128xf32> to vector<8x32xf32>
    %957 = math.tanh %956 : vector<8x32xf32>
    %958 = arith.mulf %954, %936 : vector<8x32xf32>
    %959 = arith.mulf %953, %957 : vector<8x32xf32>
    %960 = arith.addf %958, %959 : vector<8x32xf32>
    %961 = math.tanh %960 : vector<8x32xf32>
    %962 = arith.mulf %955, %961 : vector<8x32xf32>
    %963 = vector.broadcast %c13_i32_182 : i32 to vector<8x1xi32>
    %964 = arith.cmpi sgt, %15, %963 : vector<8x1xi32>
    %965 = vector.shape_cast %964 : vector<8x1xi1> to vector<8x1xi1>
    %966 = vector.broadcast %965 : vector<8x1xi1> to vector<8x32xi1>
    %967 = arith.select %966, %960, %936 : vector<8x32xi1>, vector<8x32xf32>
    %968 = vector.shape_cast %964 : vector<8x1xi1> to vector<8x1xi1>
    %969 = vector.broadcast %968 : vector<8x1xi1> to vector<8x32xi1>
    %970 = arith.select %969, %962, %939 : vector<8x32xi1>, vector<8x32xf32>
    %c14_i32_187 = arith.constant 14 : i32
    %c8_i32_188 = arith.constant 8 : i32
    %971 = arith.muli %c14_i32_187, %c8_i32_188 : i32
    %972 = tpu.assume_multiple %971, 8 : i32
    %973 = arith.index_cast %972 : i32 to index
    %c0_189 = arith.constant 0 : index
    %974 = vector.load %arg13[%973, %c0_189] : memref<120x128xf32, #tpu.memory_space<vmem>>, vector<8x128xf32>
    %975 = arith.truncf %970 : vector<8x32xf32> to vector<8x32xbf16>
    %cst_190 = arith.constant dense<0.000000e+00> : vector<8x128xf32>
    %976 = tpu.matmul %975, %535, %cst_190 {dimension_numbers = #tpu.dot_dimension_numbers<[1], [0], [0], [1], [0, 0, 1, 1], [], []>} : vector<8x32xbf16>, vector<32x128xbf16>, vector<8x128xf32> -> vector<8x128xf32>
    %977 = arith.addf %974, %976 : vector<8x128xf32>
    %978 = vector.extract_strided_slice %977 {offsets = [0, 0], sizes = [8, 96], strides = [1, 1]} : vector<8x128xf32> to vector<8x96xf32>
    %979 = arith.negf %978 : vector<8x96xf32>
    %980 = math.exp %979 : vector<8x96xf32>
    %cst_191 = arith.constant 1.000000e+00 : f32
    %981 = vector.broadcast %cst_191 : f32 to vector<8x96xf32>
    %982 = arith.addf %981, %980 : vector<8x96xf32>
    %983 = arith.divf %981, %982 : vector<8x96xf32>
    %984 = vector.extract_strided_slice %983 {offsets = [0, 0], sizes = [8, 32], strides = [1, 1]} : vector<8x96xf32> to vector<8x32xf32>
    %985 = vector.extract_strided_slice %983 {offsets = [0, 32], sizes = [8, 32], strides = [1, 1]} : vector<8x96xf32> to vector<8x32xf32>
    %986 = vector.extract_strided_slice %983 {offsets = [0, 64], sizes = [8, 32], strides = [1, 1]} : vector<8x96xf32> to vector<8x32xf32>
    %987 = vector.extract_strided_slice %977 {offsets = [0, 96], sizes = [8, 32], strides = [1, 1]} : vector<8x128xf32> to vector<8x32xf32>
    %988 = math.tanh %987 : vector<8x32xf32>
    %989 = arith.mulf %985, %967 : vector<8x32xf32>
    %990 = arith.mulf %984, %988 : vector<8x32xf32>
    %991 = arith.addf %989, %990 : vector<8x32xf32>
    %992 = math.tanh %991 : vector<8x32xf32>
    %993 = arith.mulf %986, %992 : vector<8x32xf32>
    %994 = vector.broadcast %c14_i32_187 : i32 to vector<8x1xi32>
    %995 = arith.cmpi sgt, %15, %994 : vector<8x1xi32>
    %996 = vector.shape_cast %995 : vector<8x1xi1> to vector<8x1xi1>
    %997 = vector.broadcast %996 : vector<8x1xi1> to vector<8x32xi1>
    %998 = arith.select %997, %991, %967 : vector<8x32xi1>, vector<8x32xf32>
    %999 = vector.shape_cast %995 : vector<8x1xi1> to vector<8x1xi1>
    %1000 = vector.broadcast %999 : vector<8x1xi1> to vector<8x32xi1>
    %1001 = arith.select %1000, %993, %970 : vector<8x32xi1>, vector<8x32xf32>
    %c15_i32_192 = arith.constant 15 : i32
    %cst_193 = arith.constant dense<-2147483648> : vector<1xi32>
    %1002 = vector.multi_reduction <maxsi>, %15, %cst_193 [0] : vector<8x1xi32> to vector<1xi32>
    %1003 = vector.shape_cast %1002 : vector<1xi32> to vector<1x1xi32>
    %1004 = vector.broadcast %1003 : vector<1x1xi32> to vector<8x1xi32>
    %1005 = arith.cmpi eq, %15, %1004 : vector<8x1xi32>
    %cst_194 = arith.constant 0.000000e+00 : f32
    %1006 = vector.shape_cast %1005 : vector<8x1xi1> to vector<8x1xi1>
    %1007 = vector.broadcast %1006 : vector<8x1xi1> to vector<8x32xi1>
    %1008 = vector.broadcast %cst_194 : f32 to vector<8x32xf32>
    %1009 = arith.select %1007, %1001, %1008 : vector<8x32xi1>, vector<8x32xf32>
    %c0_195 = arith.constant 0 : index
    %c0_196 = arith.constant 0 : index
    %1010 = vector.load %arg9[%c0_195, %c0_196] : memref<32x4xf32, #tpu.memory_space<vmem>>, vector<32x4xf32>
    %cst_197 = arith.constant dense<0.000000e+00> : vector<8x4xf32>
    %1011 = tpu.matmul %1009, %1010, %cst_197 {dimension_numbers = #tpu.dot_dimension_numbers<[1], [0], [0], [1], [0, 0, 1, 1], [], []>} : vector<8x32xf32>, vector<32x4xf32>, vector<8x4xf32> -> vector<8x4xf32>
    %c0_198 = arith.constant 0 : index
    %c0_199 = arith.constant 0 : index
    %1012 = vector.load %arg10[%c0_198, %c0_199] : memref<1x4xf32, #tpu.memory_space<vmem>>, vector<1x4xf32>
    %1013 = vector.broadcast %1012 : vector<1x4xf32> to vector<8x4xf32>
    %1014 = arith.addf %1011, %1013 : vector<8x4xf32>
    %cst_200 = arith.constant dense<0xFF800000> : vector<8xf32>
    %1015 = vector.multi_reduction <maximumf>, %1014, %cst_200 [1] : vector<8x4xf32> to vector<8xf32>
    %1016 = vector.shape_cast %1015 : vector<8xf32> to vector<8x1xf32>
    %1017 = vector.broadcast %1016 : vector<8x1xf32> to vector<8x4xf32>
    %1018 = arith.subf %1014, %1017 : vector<8x4xf32>
    %1019 = math.exp %1018 : vector<8x4xf32>
    %cst_201 = arith.constant dense<0.000000e+00> : vector<8xf32>
    %1020 = vector.multi_reduction <add>, %1019, %cst_201 [1] : vector<8x4xf32> to vector<8xf32>
    %1021 = vector.shape_cast %1020 : vector<8xf32> to vector<8x1xf32>
    %1022 = vector.broadcast %1021 : vector<8x1xf32> to vector<8x4xf32>
    %1023 = arith.divf %1019, %1022 : vector<8x4xf32>
    %c0_202 = arith.constant 0 : index
    %c0_203 = arith.constant 0 : index
    %1024 = vector.load %arg11[%c0_202, %c0_203] : memref<8x4xf32, #tpu.memory_space<vmem>>, vector<8x4xf32>
    tpu.vector_store %arg11[%c0_202, %c0_203], %1023 {strides = array<i32>} : memref<8x4xf32, #tpu.memory_space<vmem>>, vector<8x4xf32>,
    return
  }
  func.func @transform_0(%arg0: i32) -> (i32, i32) {
    %c0_i32 = arith.constant 0 : i32
    %c0_i32_0 = arith.constant 0 : i32
    %c0_i32_1 = arith.constant 0 : i32
    return %c0_i32, %c0_i32_0 : i32, i32
  }
  func.func @transform_1(%arg0: i32) -> (i32, i32) {
    %c0_i32 = arith.constant 0 : i32
    %c0_i32_0 = arith.constant 0 : i32
    %c0_i32_1 = arith.constant 0 : i32
    return %c0_i32, %c0_i32_0 : i32, i32
  }
  func.func @transform_2(%arg0: i32) -> (i32, i32) {
    %c0_i32 = arith.constant 0 : i32
    %c0_i32_0 = arith.constant 0 : i32
    %c0_i32_1 = arith.constant 0 : i32
    return %c0_i32, %c0_i32_0 : i32, i32
  }
  func.func @transform_3(%arg0: i32) -> (i32, i32) {
    %c0_i32 = arith.constant 0 : i32
    %c0_i32_0 = arith.constant 0 : i32
    %c0_i32_1 = arith.constant 0 : i32
    return %c0_i32, %c0_i32_0 : i32, i32
  }
  func.func @transform_4(%arg0: i32) -> (i32, i32) {
    %c0_i32 = arith.constant 0 : i32
    %c0_i32_0 = arith.constant 0 : i32
    %c0_i32_1 = arith.constant 0 : i32
    return %c0_i32, %c0_i32_0 : i32, i32
  }
  func.func @transform_5(%arg0: i32) -> (i32, i32, i32) {
    %c0_i32 = arith.constant 0 : i32
    %c0_i32_0 = arith.constant 0 : i32
    %c0_i32_1 = arith.constant 0 : i32
    %c0_i32_2 = arith.constant 0 : i32
    return %c0_i32, %c0_i32_0, %c0_i32_1 : i32, i32, i32
  }
  func.func @transform_6(%arg0: i32) -> (i32, i32, i32) {
    %c0_i32 = arith.constant 0 : i32
    %c0_i32_0 = arith.constant 0 : i32
    %c0_i32_1 = arith.constant 0 : i32
    %c0_i32_2 = arith.constant 0 : i32
    return %c0_i32, %c0_i32_0, %c0_i32_1 : i32, i32, i32
  }
  func.func @transform_7(%arg0: i32) -> (i32, i32, i32) {
    %c0_i32 = arith.constant 0 : i32
    %c0_i32_0 = arith.constant 0 : i32
    %c0_i32_1 = arith.constant 0 : i32
    %c0_i32_2 = arith.constant 0 : i32
    return %c0_i32, %c0_i32_0, %c0_i32_1 : i32, i32, i32
  }
  func.func @transform_8(%arg0: i32) -> (i32, i32) {
    %c0_i32 = arith.constant 0 : i32
    %c0_i32_0 = arith.constant 0 : i32
    %c0_i32_1 = arith.constant 0 : i32
    return %c0_i32, %c0_i32_0 : i32, i32
  }
  func.func @transform_9(%arg0: i32) -> (i32, i32) {
    %c0_i32 = arith.constant 0 : i32
    %c0_i32_0 = arith.constant 0 : i32
    %c0_i32_1 = arith.constant 0 : i32
    return %c0_i32, %c0_i32_0 : i32, i32
  }
  func.func @transform_10(%arg0: i32) -> (i32, i32) {
    %c0_i32 = arith.constant 0 : i32
    %c0_i32_0 = arith.constant 0 : i32
    %c0_i32_1 = arith.constant 0 : i32
    return %c0_i32, %c0_i32_0 : i32, i32
  }
}

</mosaic_0001>

<bundles_post_ra>
// kernel: tpu_custom_call.1
= control target key start
LH: loop header
LB: loop body
LE: loop exit
PB: predicated region body
PF: predicated region fallthrough
CT: control target
= control target key end

     0   :  { %v4201_v0 = vmov 0   ;;  %vm207_vm0 = vcmask 261120   ;;  %v4202_v30 = vmov 0.0   ;;  %vm4203_vm1 = vmmov 0   ;;  %s4204_s14 = smov 32   ;;  %s4205_s15 = smov 64   ;;  %s5298_s1 = inlined_call_operand.vmem [shape: bf16[160,32], index: 1, kind: input, shape index: {}]   ;;  %s5299_s0 = inlined_call_operand.vmem [shape: bf16[120,160], index: 0, kind: input, shape index: {}]   ;;  %s5300_s5 = inlined_call_operand.vmem [shape: bf16[2,32,128], index: 5, kind: input, shape index: {}]   ;;  %s5301_s6 = inlined_call_operand.vmem [shape: bf16[2,32,128], index: 6, kind: input, shape index: {}]   ;;  %s5302_s2 = inlined_call_operand.vmem [shape: f32[1,32], index: 2, kind: input, shape index: {}]   ;;  %s5303_s3 = inlined_call_operand.vmem [shape: s32[1,32], index: 3, kind: input, shape index: {}]   ;;  %s5304_s4 = inlined_call_operand.vmem [shape: s32[8,1], index: 4, kind: input, shape index: {}]   ;;  %s5305_s7 = inlined_call_operand.vmem [shape: f32[2,1,128], index: 7, kind: input, shape index: {}]   ;;  %s5306_s8 = inlined_call_operand.vmem [shape: f32[32,4], index: 8, kind: input, shape index: {}]   ;;  %s5307_s9 = inlined_call_operand.vmem [shape: f32[1,4], index: 9, kind: input, shape index: {}]   ;;  %s5308_s10 = inlined_call_operand.vmem [shape: f32[8,4], index: 10, kind: output, shape index: {}]  }
   0x1   :  { %232 = vmatprep.subr.bf16.mxu0 %v4201_v0  ;;  %v3909_v1 = vld [vmem:[%s5298_s1] sm:$0xff]   ;;  %3907 = vset.pattern.permute.xlu1 %v4201_v0  ;;  %v3910_v2 = vld [vmem:[%s5298_s1 + $0x8] sm:$0xff]   ;;  %v3911_v3 = vld [vmem:[%s5298_s1 + $0x10] sm:$0xff]   ;;  %v343_v33 = vlaneseq }
   0x2   :  { %3908 = vset.pattern.permute.xlu0 %v4201_v0  ;;  %233 = vmatpush1.bf16.msra.mxu0 %v3909_v1  ;;  %v3912_v4 = vld [vmem:[%s5298_s1 + $0x18] sm:$0xff]   ;;  %v3921_v5 = vld [vmem:[%s5299_s0 + $0x4] ss:$8 sps:$4 sm:$0xff]   ;;  %v3915_v8 = vld [vmem:[%s5298_s1 + $0x30] sm:$0xff]  }
   0x3   :  { %234 = vmatprep.subr.bf16.mxu0 %v4201_v0  ;;  %3385 = vmatprep.mubr.msk.bf16.mxu0 %vm207_vm0, %v3921_v5  ;;  %v3913_v6 = vld [vmem:[%s5298_s1 + $0x20] sm:$0xff]   ;;  %v3914_v7 = vld [vmem:[%s5298_s1 + $0x28] sm:$0xff]   ;;  %v3916_v9 = vld [vmem:[%s5298_s1 + $0x38] sm:$0xff]   ;;  %v4381_v34 = vshrl.u32 %v343_v33, 7 }
   0x4   :  { %v3917_v10 = vld [vmem:[%s5298_s1 + $0x40] sm:$0xff]   ;;  %v3918_v11 = vld [vmem:[%s5298_s1 + $0x48] sm:$0xff]   ;;  %v3922_v13 = vld [vmem:[%s5299_s0 + $0x14] ss:$8 sps:$4 sm:$0xff]  }
   0x5   :  { %v3919_v12 = vld [vmem:[%s5299_s0] ss:$8 sps:$4 sm:$0xff]   ;;  %v3924_v14 = vld [vmem:[%s5299_s0 + $0x10] ss:$8 sps:$4 sm:$0xff]   ;;  %v3925_v15 = vld [vmem:[%s5299_s0 + $0x24] ss:$8 sps:$4 sm:$0xff]  }
   0x6   :  { %235 = vmatpush1.bf16.msra.mxu0 %v3910_v2  ;;  %v3927_v16 = vld [vmem:[%s5299_s0 + $0x20] ss:$8 sps:$4 sm:$0xff]   ;;  %v3928_v17 = vld [vmem:[%s5299_s0 + $0x34] ss:$8 sps:$4 sm:$0xff]   ;;  %v3930_v18 = vld [vmem:[%s5299_s0 + $0x30] ss:$8 sps:$4 sm:$0xff]  }
   0x7   :  { %236 = vmatprep.subr.bf16.mxu0 %v4201_v0  ;;  %v3931_v19 = vld [vmem:[%s5299_s0 + $0x44] ss:$8 sps:$4 sm:$0xff]   ;;  %v3933_v20 = vld [vmem:[%s5299_s0 + $0x40] ss:$8 sps:$4 sm:$0xff]   ;;  %v3934_v21 = vld [vmem:[%s5299_s0 + $0x54] ss:$8 sps:$4 sm:$0xff]  }
   0x8   :  { %v3936_v22 = vld [vmem:[%s5299_s0 + $0x50] ss:$8 sps:$4 sm:$0xff]   ;;  %v3937_v23 = vld [vmem:[%s5299_s0 + $0x64] ss:$8 sps:$4 sm:$0xff]   ;;  %v3939_v25 = vld [vmem:[%s5299_s0 + $0x60] ss:$8 sps:$4 sm:$0xff]  }
   0x9   :  { %v50_v24 = vld [vmem:[%s5299_s0 + $0x70] sm:$0xff]  ;;  %v3942_v28 = vld [vmem:[%s5300_s5] sm:$0xff]   ;;  %v3943_v29 = vld [vmem:[%s5300_s5 + $0x8] sm:$0xff]   ;;  %v345_v38 = vadd.s32 8, %v4381_v34  ;;  %v346_v47 = vadd.s32 16, %v4381_v34  ;;  %v347_v50 = vadd.s32 24, %v4381_v34 }
   0xa   :  { %237 = vmatpush1.bf16.msra.mxu0 %v3911_v3  ;;  %v3374_v26 = vcombine.high %v50_v24, %v50_v24  ;;  %v3373_v27 = vcombine.low %v50_v24, %v50_v24  ;;  %3604 = vmatprep.subr.bf16.mxu1 %v3942_v28  ;;  %v4368_v31 = vld [vmem:[%s5301_s6] sm:$0xff]   ;;  %v4375_v32 = vld [vmem:[%s5301_s6 + $0x8] sm:$0xff]   ;;  %v348_v59 = vadd.s32 32, %v4381_v34  ;;  %v349_v1 = vadd.s32 40, %v4381_v34 }
   0xb   :  { %238 = vmatprep.subr.bf16.mxu0 %v4201_v0  ;;  %3605 = vmatpush3.bf16.msra.mxu1 %v3942_v28  ;;  %v4386_v35 = vld [vmem:[%s5302_s2] ss:$0 sm:$0xff] }
   0xc   :  { %3606 = vmatprep.subr.bf16.mxu1 %v3943_v29  ;;  %v4391_v36 = vld [vmem:[%s5303_s3] ss:$0 sm:$0xff] }
   0xd   :  { %vm364_vm2 = vcmp.lt.s32.totalorder %v4381_v34, %v4391_v36  ;;  %vm365_vm3 = vcmp.lt.s32.totalorder %v345_v38, %v4391_v36  ;;  %vm366_vm4 = vcmp.lt.s32.totalorder %v346_v47, %v4391_v36  ;;  %vm367_vm5 = vcmp.lt.s32.totalorder %v347_v50, %v4391_v36 }
   0xe   :  { %239 = vmatpush1.bf16.msra.mxu0 %v3912_v4  ;;  %vm368_vm6 = vcmp.lt.s32.totalorder %v348_v59, %v4391_v36  ;;  %vm369_vm7 = vcmp.lt.s32.totalorder %v349_v1, %v4391_v36  ;;  %v354_v47 = vadd.s32 80, %v4381_v34 }
   0xf   :  { %240 = vmatprep.subr.bf16.mxu0 %v4201_v0  ;;  %3607 = vmatpush3.bf16.msra.mxu1 %v3943_v29 }
  0x10   :  { %3624 = vmatprep.subr.bf16.mxu1 %v4202_v30  ;;  %vm374_vm12 = vcmp.lt.s32.totalorder %v354_v47, %v4391_v36 }
  0x12   :  { %241 = vmatpush1.bf16.msra.mxu0 %v3913_v6 }
  0x13   :  { %242 = vmatprep.subr.bf16.mxu0 %v4201_v0 }
  0x16   :  { %243 = vmatpush1.bf16.msra.mxu0 %v3914_v7 }
  0x17   :  { %244 = vmatprep.subr.bf16.mxu0 %v4201_v0 }
  0x1a   :  { %245 = vmatpush1.bf16.msra.mxu0 %v3915_v8 }
  0x1b   :  { %246 = vmatprep.subr.bf16.mxu0 %v4201_v0 }
  0x1e   :  { %247 = vmatpush1.bf16.msra.mxu0 %v3916_v9 }
  0x1f   :  { %248 = vmatprep.subr.bf16.mxu0 %v4201_v0 }
  0x22   :  { %249 = vmatpush1.bf16.msra.mxu0 %v3917_v10 }
  0x23   :  { %250 = vmatprep.subr.bf16.mxu0 %v4201_v0 }
  0x26   :  { %251 = vmatpush1.bf16.msra.mxu0 %v3918_v11  ;;  %v350_v11 = vadd.s32 48, %v4381_v34 }
  0x27   :  { %3688 = vmatprep.subr.bf16.mxu0 %v4202_v30 }
  0x28   :  { %vm370_vm8 = vcmp.lt.s32.totalorder %v350_v11, %v4391_v36 }
  0x29   :  { %265 = vmatmul.mubr.bf16.vlgmr.msra.gmra.mrb[0].mxu0 %v3919_v12 }
  0x2a   :  { %3386 = vmatprep.mubr.msk.bf16.mxu0 %vm207_vm0, %v3922_v13  ;;  %3689 = vmatpush3.bf16.msra.mxu0 %v4368_v31 }
  0x2b   :  { %3690 = vmatprep.subr.bf16.mxu0 %v4202_v30 }
  0x2e   :  { %3691 = vmatpush3.bf16.msra.mxu0 %v4375_v32 }
  0x2f   :  { %3704 = vmatprep.subr.bf16.mxu0 %v4202_v30 }
  0x31   :  { %273 = vmatmul.mubr.bf16.gmra.mrb[4].mxu0 %v3924_v14 }
  0x32   :  { %3387 = vmatprep.mubr.msk.bf16.mxu0 %vm207_vm0, %v3925_v15 }
  0x39   :  { %281 = vmatmul.mubr.bf16.gmra.mrb[8].mxu0 %v3927_v16  ;;  %v351_v16 = vadd.s32 56, %v4381_v34 }
  0x3a   :  { %3388 = vmatprep.mubr.msk.bf16.mxu0 %vm207_vm0, %v3928_v17 }
  0x3b   :  { %vm371_vm9 = vcmp.lt.s32.totalorder %v351_v16, %v4391_v36 }
  0x41   :  { %289 = vmatmul.mubr.bf16.gmra.mrb[12].mxu0 %v3930_v18 }
  0x42   :  { %3389 = vmatprep.mubr.msk.bf16.mxu0 %vm207_vm0, %v3931_v19 }
  0x49   :  { %297 = vmatmul.mubr.bf16.gmra.mrb[16].mxu0 %v3933_v20 }
  0x4a   :  { %3390 = vmatprep.mubr.msk.bf16.mxu0 %vm207_vm0, %v3934_v21 }
  0x51   :  { %305 = vmatmul.mubr.bf16.gmra.mrb[20].mxu0 %v3936_v22 }
  0x52   :  { %3391 = vmatprep.mubr.msk.bf16.mxu0 %vm207_vm0, %v3937_v23 }
  0x59   :  { %313 = vmatmul.mubr.bf16.gmra.mrb[24].mxu0 %v3939_v25 }
  0x5a   :  { %3392 = vmatprep.mubr.msk.bf16.mxu0 %vm207_vm0, %v3374_v26  ;;  %v352_v26 = vadd.s32 64, %v4381_v34 }
  0x5c   :  { %vm372_vm10 = vcmp.lt.s32.totalorder %v352_v26, %v4391_v36 }
  0x61   :  { %321 = vmatmul.mubr.bf16.gmra.mrb[28].mxu0 %v3373_v27 }
  0x62   :  { %3692 = vmatprep.mubr.msk.bf16.mxu0 %vm4203_vm1, %v4202_v30 }
  0xfc   :  { %v266_v37 = vpop.f32.mrb[0].mxu0 }
  0xfd   :  { %v267_v39 = vadd.f32 %v4386_v35, %v266_v37  ;;  %v268_v40 = vpop.f32.mrb[1].mxu0  ;;  %v353_v37 = vadd.s32 72, %v4381_v34 }
  0xfe   :  { %v269_v41 = vpop.f32.mrb[2].mxu0 }
  0xff   :  { %v328_v42 = vmax.f32 %v267_v39, 0.0  ;;  %v270_v43 = vadd.f32 %v4386_v35, %v269_v41  ;;  %v271_v44 = vpop.f32.mrb[3].mxu0  ;;  %vm373_vm11 = vcmp.lt.s32.totalorder %v353_v37, %v4391_v36 }
 0x101   :  { %v379_v45 = vsel %vm364_vm2, %v328_v42, 0.0  ;;  %v329_v46 = vmax.f32 %v270_v43, 0.0 }
 0x102   :  { %394 = vst.msk [vmem:[#allocation2] sm:$0xff] %vm207_vm0, %v379_v45 }
 0x103   :  { %v380_v48 = vsel %vm365_vm3, %v329_v46, 0.0 }
 0x104   :  { %395 = vst.msk [vmem:[#allocation2 + $0x8] sm:$0xff] %vm207_vm0, %v380_v48  ;;  %v274_v49 = vpop.f32.mrb[4].mxu0 }
 0x105   :  { %v275_v51 = vadd.f32 %v4386_v35, %v274_v49  ;;  %v276_v52 = vpop.f32.mrb[5].mxu0 }
 0x106   :  { %v277_v53 = vpop.f32.mrb[6].mxu0  ;;  %v355_v52 = vadd.s32 88, %v4381_v34 }
 0x107   :  { %v330_v54 = vmax.f32 %v275_v51, 0.0  ;;  %v278_v55 = vadd.f32 %v4386_v35, %v277_v53  ;;  %v279_v56 = vpop.f32.mrb[7].mxu0 }
 0x108   :  { %vm375_vm13 = vcmp.lt.s32.totalorder %v355_v52, %v4391_v36 }
 0x109   :  { %v381_v57 = vsel %vm366_vm4, %v330_v54, 0.0  ;;  %v331_v58 = vmax.f32 %v278_v55, 0.0  ;;  %v410_v61 = vld [vmem:[#allocation2] sm:$0xff] }
 0x10a   :  { %396 = vst.msk [vmem:[#allocation2 + $0x10] sm:$0xff] %vm207_vm0, %v381_v57 }
 0x10b   :  { %v382_v60 = vsel %vm367_vm5, %v331_v58, 0.0  ;;  %v411_v62 = vld [vmem:[#allocation2 + $0x8] sm:$0xff] }
 0x10c   :  { %397 = vst.msk [vmem:[#allocation2 + $0x18] sm:$0xff] %vm207_vm0, %v382_v60  ;;  %v282_v63 = vpop.f32.mrb[8].mxu0  ;;  %v425_v2 = vpack.c.bf16 %v411_v62, %v410_v61  ;;  %v356_v62 = vadd.s32 96, %v4381_v34 }
 0x10d   :  { %v283_v3 = vadd.f32 %v4386_v35, %v282_v63  ;;  %v284_v4 = vpop.f32.mrb[9].mxu0 }
 0x10e   :  { %v285_v5 = vpop.f32.mrb[10].mxu0  ;;  %3608 = vmatprep.mubr.msk.bf16.mxu1 %vm207_vm0, %v425_v2  ;;  %v357_v4 = vadd.s32 104, %v4381_v34  ;;  %vm376_vm14 = vcmp.lt.s32.totalorder %v356_v62, %v4391_v36 }
 0x10f   :  { %v332_v6 = vmax.f32 %v283_v3, 0.0  ;;  %v286_v7 = vadd.f32 %v4386_v35, %v285_v5  ;;  %v287_v8 = vpop.f32.mrb[11].mxu0 }
 0x110   :  { %vm377_vm15 = vcmp.lt.s32.totalorder %v357_v4, %v4391_v36 }
 0x111   :  { %v383_v9 = vsel %vm368_vm6, %v332_v6, 0.0  ;;  %v333_v10 = vmax.f32 %v286_v7, 0.0  ;;  %v412_v13 = vld [vmem:[#allocation2 + $0x10] sm:$0xff] }
 0x112   :  { %398 = vst.msk [vmem:[#allocation2 + $0x20] sm:$0xff] %vm207_vm0, %v383_v9 }
 0x113   :  { %v384_v12 = vsel %vm369_vm7, %v333_v10, 0.0  ;;  %v413_v14 = vld [vmem:[#allocation2 + $0x18] sm:$0xff] }
 0x114   :  { %399 = vst.msk [vmem:[#allocation2 + $0x28] sm:$0xff] %vm207_vm0, %v384_v12  ;;  %v290_v15 = vpop.f32.mrb[12].mxu0  ;;  %v426_v17 = vpack.c.bf16 %v413_v14, %v412_v13  ;;  %v358_v14 = vadd.s32 112, %v4381_v34 }
 0x115   :  { %v291_v18 = vadd.f32 %v4386_v35, %v290_v15  ;;  %v292_v19 = vpop.f32.mrb[13].mxu0 }
 0x116   :  { %v293_v20 = vpop.f32.mrb[14].mxu0  ;;  %3609 = vmatmul.mubr.msk.bf16.vlgmr.msra.gmra.mrb[0].mxu1 %vm207_vm0, %v426_v17  ;;  %vm378_vm2 = vcmp.lt.s32.totalorder %v358_v14, %v4391_v36 }
 0x117   :  { %v334_v21 = vmax.f32 %v291_v18, 0.0  ;;  %v294_v22 = vadd.f32 %v4386_v35, %v293_v20  ;;  %v295_v23 = vpop.f32.mrb[15].mxu0  ;;  %3625 = vmatpush3.bf16.msra.mxu1 %v4368_v31 }
 0x118   :  { %3626 = vmatprep.subr.bf16.mxu1 %v4202_v30 }
 0x119   :  { %v385_v24 = vsel %vm370_vm8, %v334_v21, 0.0  ;;  %v335_v25 = vmax.f32 %v294_v22, 0.0  ;;  %v414_v28 = vld [vmem:[#allocation2 + $0x20] sm:$0xff] }
 0x11a   :  { %400 = vst.msk [vmem:[#allocation2 + $0x30] sm:$0xff] %vm207_vm0, %v385_v24 }
 0x11b   :  { %v386_v27 = vsel %vm371_vm9, %v335_v25, 0.0  ;;  %v415_v29 = vld [vmem:[#allocation2 + $0x28] sm:$0xff]  ;;  %3627 = vmatpush3.bf16.msra.mxu1 %v4375_v32 }
 0x11c   :  { %401 = vst.msk [vmem:[#allocation2 + $0x38] sm:$0xff] %vm207_vm0, %v386_v27  ;;  %v298_v33 = vpop.f32.mrb[16].mxu0  ;;  %v427_v38 = vpack.c.bf16 %v415_v29, %v414_v28  ;;  %3632 = vmatprep.subr.bf16.mxu1 %v4202_v30 }
 0x11d   :  { %v299_v39 = vadd.f32 %v4386_v35, %v298_v33  ;;  %v300_v40 = vpop.f32.mrb[17].mxu0  ;;  %v3394_v33 = vld [vmem:[%s5305_s7] ss:$0 sm:$0xff] }
 0x11e   :  { %v301_v41 = vpop.f32.mrb[18].mxu0  ;;  %3612 = vmatprep.mubr.msk.bf16.mxu1 %vm207_vm0, %v427_v38 }
 0x11f   :  { %v336_v42 = vmax.f32 %v299_v39, 0.0  ;;  %v302_v43 = vadd.f32 %v4386_v35, %v301_v41  ;;  %v303_v44 = vpop.f32.mrb[19].mxu0 }
 0x121   :  { %v387_v45 = vsel %vm372_vm10, %v336_v42, 0.0  ;;  %v337_v46 = vmax.f32 %v302_v43, 0.0  ;;  %v416_v49 = vld [vmem:[#allocation2 + $0x30] sm:$0xff] }
 0x122   :  { %402 = vst.msk [vmem:[#allocation2 + $0x40] sm:$0xff] %vm207_vm0, %v387_v45 }
 0x123   :  { %v388_v48 = vsel %vm373_vm11, %v337_v46, 0.0  ;;  %v417_v50 = vld [vmem:[#allocation2 + $0x38] sm:$0xff] }
 0x124   :  { %403 = vst.msk [vmem:[#allocation2 + $0x48] sm:$0xff] %vm207_vm0, %v388_v48  ;;  %v306_v51 = vpop.f32.mrb[20].mxu0  ;;  %v428_v53 = vpack.c.bf16 %v417_v50, %v416_v49 }
 0x125   :  { %v307_v54 = vadd.f32 %v4386_v35, %v306_v51  ;;  %v308_v55 = vpop.f32.mrb[21].mxu0 }
 0x126   :  { %v309_v56 = vpop.f32.mrb[22].mxu0  ;;  %3613 = vmatmul.mubr.msk.bf16.gmra.mrb[4].mxu1 %vm207_vm0, %v428_v53 }
 0x127   :  { %v338_v57 = vmax.f32 %v307_v54, 0.0  ;;  %v310_v58 = vadd.f32 %v4386_v35, %v309_v56  ;;  %v311_v59 = vpop.f32.mrb[23].mxu0 }
 0x129   :  { %v389_v60 = vsel %vm374_vm12, %v338_v57, 0.0  ;;  %v339_v61 = vmax.f32 %v310_v58, 0.0  ;;  %v418_v1 = vld [vmem:[#allocation2 + $0x40] sm:$0xff] }
 0x12a   :  { %404 = vst.msk [vmem:[#allocation2 + $0x50] sm:$0xff] %vm207_vm0, %v389_v60 }
 0x12b   :  { %v390_v63 = vsel %vm375_vm13, %v339_v61, 0.0  ;;  %v419_v2 = vld [vmem:[#allocation2 + $0x48] sm:$0xff] }
 0x12c   :  { %405 = vst.msk [vmem:[#allocation2 + $0x58] sm:$0xff] %vm207_vm0, %v390_v63  ;;  %v314_v3 = vpop.f32.mrb[24].mxu0  ;;  %v429_v5 = vpack.c.bf16 %v419_v2, %v418_v1 }
 0x12d   :  { %v315_v6 = vadd.f32 %v4386_v35, %v314_v3  ;;  %v316_v7 = vpop.f32.mrb[25].mxu0 }
 0x12e   :  { %v317_v8 = vpop.f32.mrb[26].mxu0  ;;  %3616 = vmatprep.mubr.msk.bf16.mxu1 %vm207_vm0, %v429_v5 }
 0x12f   :  { %v340_v9 = vmax.f32 %v315_v6, 0.0  ;;  %v318_v10 = vadd.f32 %v4386_v35, %v317_v8  ;;  %v319_v11 = vpop.f32.mrb[27].mxu0 }
 0x131   :  { %v391_v12 = vsel %vm376_vm14, %v340_v9, 0.0  ;;  %v341_v13 = vmax.f32 %v318_v10, 0.0  ;;  %v420_v16 = vld [vmem:[#allocation2 + $0x50] sm:$0xff] }
 0x132   :  { %406 = vst.msk [vmem:[#allocation2 + $0x60] sm:$0xff] %vm207_vm0, %v391_v12 }
 0x133   :  { %v392_v15 = vsel %vm377_vm15, %v341_v13, 0.0  ;;  %v421_v17 = vld [vmem:[#allocation2 + $0x58] sm:$0xff] }
 0x134   :  { %407 = vst.msk [vmem:[#allocation2 + $0x68] sm:$0xff] %vm207_vm0, %v392_v15  ;;  %v322_v18 = vpop.f32.mrb[28].mxu0  ;;  %v430_v19 = vpack.c.bf16 %v421_v17, %v420_v16 }
 0x135   :  { %v323_v20 = vadd.f32 %v4386_v35, %v322_v18  ;;  %v324_v21 = vpop.f32.mrb[29].mxu0  ;;  %v4477_v35 = vld [vmem:[%s5304_s4] sm:$0xff] }
 0x136   :  { %v325_v22 = vpop.f32.mrb[30].mxu0  ;;  %3617 = vmatmul.mubr.msk.bf16.gmra.mrb[8].mxu1 %vm207_vm0, %v430_v19  ;;  %vm676_vm3 = vcmp.gt.s32.totalorder %v4477_v35, 0  ;;  %vm763_vm5 = vcmp.gt.s32.totalorder %v4477_v35, 1  ;;  %vm851_vm7 = vcmp.gt.s32.totalorder %v4477_v35, 2  ;;  %vm939_vm9 = vcmp.gt.s32.totalorder %v4477_v35, 3 }
 0x137   :  { %v342_v23 = vmax.f32 %v323_v20, 0.0  ;;  %v326_v24 = vpop.f32.mrb[31].mxu0  ;;  %v677_v36 = vsel %vm676_vm3, 1, %v4201_v0  ;;  %vm1027_vm11 = vcmp.gt.s32.totalorder %v4477_v35, 4  ;;  %vm1115_vm13 = vcmp.gt.s32.totalorder %v4477_v35, 5 }
 0x138   :  { %679 = vperm.xlu1 %3907, %v677_v36   ;;  %vm1203_vm15 = vcmp.gt.s32.totalorder %v4477_v35, 6  ;;  %vm1291_vm3 = vcmp.gt.s32.totalorder %v4477_v35, 7 }
 0x139   :  { %v393_v25 = vsel %vm378_vm2, %v342_v23, 0.0  ;;  %v422_v34 = vld [vmem:[#allocation2 + $0x60] sm:$0xff] }
 0x13a   :  { %408 = vst.msk [vmem:[#allocation2 + $0x70] sm:$0xff] %vm207_vm0, %v393_v25 }
 0x13b   :  { %v423_v26 = vld [vmem:[#allocation2 + $0x68] sm:$0xff] }
 0x13c   :  { %v431_v27 = vpack.c.bf16 %v423_v26, %v422_v34 }
 0x13e   :  { %3620 = vmatprep.mubr.msk.bf16.mxu1 %vm207_vm0, %v431_v27 }
 0x141   :  { %v424_v28 = vld [vmem:[#allocation2 + $0x70] sm:$0xff] }
 0x142   :  { %v432_v29 = vpack.c.bf16 %v424_v28, %v424_v28 }
 0x144   :  { %3621 = vmatmul.mubr.msk.bf16.gmra.mrb[12].mxu1 %vm207_vm0, %v432_v29 }
 0x145   :  { %3628 = vmatprep.mubr.msk.bf16.mxu1 %vm4203_vm1, %v4202_v30 }
 0x14c   :  { %3629 = vmatmul.mubr.bf16.vlgmr.msra.gmra.mrb[16].mxu1 %v4201_v0 }
 0x14d   :  { %3633 = vmatpush3.bf16.msra.mxu1 %v4368_v31  ;;  %3636 = vmatprep.mubr.msk.bf16.mxu1 %vm4203_vm1, %v4202_v30 }
 0x14e   :  { %3634 = vmatprep.subr.bf16.mxu1 %v4202_v30 }
 0x151   :  { %3635 = vmatpush3.bf16.msra.mxu1 %v4375_v32 }
 0x152   :  { %3640 = vmatprep.subr.bf16.mxu1 %v4202_v30 }
 0x1b7   :  { %v4515_v21 = vpop.permute.xlu1 %679 }
 0x1b8   :  { %vm681_vm4 = vcmp.eq.s32.totalorder %v4515_v21, 1 }
 0x1e9   :  { %v3610_v37 = vpop.f32.mrb[0].mxu1 }
 0x1ea   :  { %v4484_v38 = vadd.f32 %v3610_v37, %v3394_v33  ;;  %v514_v39 = vpop.f32.mrb[1].mxu1  ;;  %v764_v37 = vsel %vm763_vm5, 1, %v4201_v0 }
 0x1eb   :  { %v3611_v40 = vpop.f32.mrb[2].mxu1  ;;  %v515_v4 = vadd.f32 %v3394_v33, %v514_v39 }
 0x1ec   :  { %v4486_v41 = vadd.f32 %v3611_v40, %v3394_v33  ;;  %v517_v42 = vpop.f32.mrb[3].mxu1 }
 0x1ed   :  { %v4488_v43 = vadd.f32 %v3394_v33, %v517_v42 }
 0x1f9   :  { %v3614_v44 = vpop.f32.mrb[4].mxu1 }
 0x1fa   :  { %v4490_v45 = vadd.f32 %v3614_v44, %v3394_v33  ;;  %v530_v46 = vpop.f32.mrb[5].mxu1 }
 0x1fb   :  { %v4492_v47 = vadd.f32 %v3394_v33, %v530_v46  ;;  %v3615_v48 = vpop.f32.mrb[6].mxu1 }
 0x1fc   :  { %v4494_v49 = vadd.f32 %v3615_v48, %v3394_v33  ;;  %v533_v50 = vpop.f32.mrb[7].mxu1 }
 0x1fd   :  { %v4496_v51 = vadd.f32 %v3394_v33, %v533_v50 }
 0x209   :  { %v3618_v52 = vpop.f32.mrb[8].mxu1 }
 0x20a   :  { %v4498_v53 = vadd.f32 %v3618_v52, %v3394_v33  ;;  %v546_v54 = vpop.f32.mrb[9].mxu1 }
 0x20b   :  { %v4500_v55 = vadd.f32 %v3394_v33, %v546_v54  ;;  %v3619_v56 = vpop.f32.mrb[10].mxu1 }
 0x20c   :  { %v4502_v57 = vadd.f32 %v3619_v56, %v3394_v33  ;;  %v549_v58 = vpop.f32.mrb[11].mxu1 }
 0x20d   :  { %v4504_v59 = vadd.f32 %v3394_v33, %v549_v58 }
 0x217   :  { %v3622_v60 = vpop.f32.mrb[12].mxu1 }
 0x218   :  { %v4506_v61 = vadd.f32 %v3622_v60, %v3394_v33  ;;  %v562_v62 = vpop.f32.mrb[13].mxu1 }
 0x219   :  { %v4508_v63 = vadd.f32 %v3394_v33, %v562_v62  ;;  %v3623_v1 = vpop.f32.mrb[14].mxu1 }
 0x21a   :  { %v565_v2 = vpop.f32.mrb[15].mxu1 }
 0x21b   :  { %v4510_v3 = vadd.f32 %v3394_v33, %v565_v2 }
 0x21f   :  { %v645_v5 = vpop.f32.mrb[16].mxu1 }
 0x220   :  { %v651_v6 = vadd.f32 %v645_v5, %v515_v4  ;;  %v3630_v7 = vpop.f32.mrb[17].mxu1 }
 0x221   :  { %v648_v8 = vpop.f32.mrb[18].mxu1 }
 0x222   :  { %3950 = vtanh.f32 %v651_v6  ;;  %v3631_v9 = vpop.f32.mrb[19].mxu1  ;;  %v3407_v11 = vmul.f32 -1.442695, %v651_v6 }
 0x224   :  { %3952 = vpow2.f32 %v3407_v11  ;;  %v852_v11 = vsel %vm851_vm7, 1, %v4201_v0  ;;  %vm1379_vm7 = vcmp.gt.s32.totalorder %v4477_v35, 8 }
 0x22c   :  { %v3951_v10 = vpop.eup %3950 }
 0x22d   :  { %661 = vrot.lane.b32.xlu0 %v3951_v10, %s4204_s14 }
 0x22e   :  { %v3953_v12 = vpop.eup %3952 }
 0x22f   :  { %v655_v13 = vadd.f32 1.0, %v3953_v12 }
 0x231   :  { %3954 = vrcp.f32 %v655_v13 }
 0x23b   :  { %v3955_v14 = vpop.eup %3954 }
 0x23c   :  { %v659_v17 = vmul.f32 0.0, %v3955_v14 }
 0x29f   :  { %v662_v15 = vpop.permute.xlu0 %661 }
 0x2a0   :  { %v664_v16 = vmul.f32 %v3955_v14, %v662_v15 }
 0x2a2   :  { %666 = vrot.lane.b32.xlu0 %v664_v16, %s4204_s14 }
 0x314   :  { %v667_v18 = vpop.permute.xlu0 %666 }
 0x315   :  { %v669_v19 = vadd.f32 %v667_v18, %v659_v17 }
 0x317   :  { %3956 = vtanh.f32 %v669_v19  ;;  %v682_v48 = vsel %vm681_vm4, %v669_v19, 0.0 }
 0x321   :  { %v3957_v20 = vpop.eup %3956 }
 0x322   :  { %672 = vrot.lane.b32.xlu1 %v3957_v20, %s4204_s14 }
 0x394   :  { %v673_v22 = vpop.permute.xlu1 %672 }
 0x395   :  { %v675_v23 = vmul.f32 %v3955_v14, %v673_v22 }
 0x397   :  { %v4520_v24 = vsel %vm681_vm4, %v675_v23, 0.0 }
 0x398   :  { %v691_v25 = vpack.c.bf16 %v4520_v24, %v4520_v24 }
 0x39a   :  { %693 = vrot.lane.b32.xlu0 %v691_v25, %s4205_s15 }
 0x40c   :  { %v694_v34 = vpop.permute.xlu0 %693 }
 0x40d   :  { %3637 = vmatmul.mubr.msk.bf16.vlgmr.msra.gmra.mrb[20].mxu1 %vm207_vm0, %v694_v34 }
 0x40e   :  { %3641 = vmatpush3.bf16.msra.mxu1 %v4368_v31  ;;  %3644 = vmatprep.mubr.msk.bf16.mxu1 %vm4203_vm1, %v4202_v30 }
 0x40f   :  { %3642 = vmatprep.subr.bf16.mxu1 %v4202_v30 }
 0x412   :  { %3643 = vmatpush3.bf16.msra.mxu1 %v4375_v32 }
 0x413   :  { %3648 = vmatprep.subr.bf16.mxu1 %v4202_v30 }
 0x4e0   :  { %v732_v26 = vpop.f32.mrb[20].mxu1 }
 0x4e1   :  { %v738_v27 = vadd.f32 %v732_v26, %v4488_v43  ;;  %v3638_v28 = vpop.f32.mrb[21].mxu1 }
 0x4e2   :  { %v735_v29 = vpop.f32.mrb[22].mxu1 }
 0x4e3   :  { %3958 = vtanh.f32 %v738_v27  ;;  %v3639_v36 = vpop.f32.mrb[23].mxu1  ;;  %v3409_v39 = vmul.f32 -1.442695, %v738_v27 }
 0x4e5   :  { %3960 = vpow2.f32 %v3409_v39 }
 0x4ed   :  { %v3959_v33 = vpop.eup %3958 }
 0x4ee   :  { %748 = vrot.lane.b32.xlu1 %v3959_v33, %s4204_s14 }
 0x4ef   :  { %v3961_v40 = vpop.eup %3960 }
 0x4f0   :  { %v742_v42 = vadd.f32 1.0, %v3961_v40 }
 0x4f2   :  { %766 = vperm.xlu1 %3907, %v764_v37   ;;  %3962 = vrcp.f32 %v742_v42  ;;  %v940_v42 = vsel %vm939_vm9, 1, %v4201_v0 }
 0x4fc   :  { %v3963_v44 = vpop.eup %3962 }
 0x4fd   :  { %v746_v50 = vmul.f32 %v3963_v44, %v682_v48 }
 0x560   :  { %v749_v46 = vpop.permute.xlu1 %748 }
 0x561   :  { %v751_v43 = vmul.f32 %v3963_v44, %v749_v46 }
 0x563   :  { %753 = vrot.lane.b32.xlu0 %v751_v43, %s4204_s14 }
 0x571   :  { %v4540_v58 = vpop.permute.xlu1 %766 }
 0x572   :  { %vm768_vm6 = vcmp.eq.s32.totalorder %v4540_v58, 1 }
 0x5d5   :  { %v754_v52 = vpop.permute.xlu0 %753 }
 0x5d6   :  { %v756_v54 = vadd.f32 %v754_v52, %v746_v50 }
 0x5d8   :  { %3964 = vtanh.f32 %v756_v54  ;;  %v769_v17 = vsel %vm768_vm6, %v756_v54, %v682_v48 }
 0x5e2   :  { %v3965_v56 = vpop.eup %3964 }
 0x5e3   :  { %759 = vrot.lane.b32.xlu0 %v3965_v56, %s4204_s14 }
 0x655   :  { %v760_v60 = vpop.permute.xlu0 %759 }
 0x656   :  { %v762_v62 = vmul.f32 %v3963_v44, %v760_v60 }
 0x658   :  { %v4546_v1 = vsel %vm768_vm6, %v762_v62, %v4520_v24 }
 0x659   :  { %v779_v2 = vpack.c.bf16 %v4546_v1, %v4546_v1 }
 0x65b   :  { %781 = vrot.lane.b32.xlu1 %v779_v2, %s4205_s15 }
 0x6cd   :  { %v782_v4 = vpop.permute.xlu1 %781 }
 0x6ce   :  { %3645 = vmatmul.mubr.msk.bf16.vlgmr.msra.gmra.mrb[24].mxu1 %vm207_vm0, %v782_v4 }
 0x6cf   :  { %3649 = vmatpush3.bf16.msra.mxu1 %v4368_v31  ;;  %3652 = vmatprep.mubr.msk.bf16.mxu1 %vm4203_vm1, %v4202_v30 }
 0x6d0   :  { %3650 = vmatprep.subr.bf16.mxu1 %v4202_v30 }
 0x6d3   :  { %3651 = vmatpush3.bf16.msra.mxu1 %v4375_v32 }
 0x6d4   :  { %3656 = vmatprep.subr.bf16.mxu1 %v4202_v30 }
 0x7a1   :  { %v820_v5 = vpop.f32.mrb[24].mxu1 }
 0x7a2   :  { %v826_v6 = vadd.f32 %v820_v5, %v4484_v38  ;;  %v3646_v7 = vpop.f32.mrb[25].mxu1 }
 0x7a3   :  { %v823_v8 = vpop.f32.mrb[26].mxu1 }
 0x7a4   :  { %3966 = vtanh.f32 %v826_v6  ;;  %v3647_v9 = vpop.f32.mrb[27].mxu1  ;;  %v3411_v12 = vmul.f32 -1.442695, %v826_v6 }
 0x7a6   :  { %3968 = vpow2.f32 %v3411_v12 }
 0x7ae   :  { %v3967_v10 = vpop.eup %3966 }
 0x7af   :  { %836 = vrot.lane.b32.xlu0 %v3967_v10, %s4204_s14 }
 0x7b0   :  { %v3969_v13 = vpop.eup %3968 }
 0x7b1   :  { %v830_v14 = vadd.f32 1.0, %v3969_v13 }
 0x7b3   :  { %854 = vperm.xlu0 %3908, %v852_v11   ;;  %3970 = vrcp.f32 %v830_v14 }
 0x7bd   :  { %v3971_v15 = vpop.eup %3970 }
 0x7be   :  { %v834_v18 = vmul.f32 %v3971_v15, %v769_v17 }
 0x821   :  { %v837_v16 = vpop.permute.xlu0 %836 }
 0x822   :  { %v839_v38 = vmul.f32 %v3971_v15, %v837_v16 }
 0x824   :  { %841 = vrot.lane.b32.xlu1 %v839_v38, %s4204_s14 }
 0x832   :  { %v4566_v23 = vpop.permute.xlu0 %854 }
 0x833   :  { %vm856_vm8 = vcmp.eq.s32.totalorder %v4566_v23, 1 }
 0x896   :  { %v842_v19 = vpop.permute.xlu1 %841 }
 0x897   :  { %v844_v20 = vadd.f32 %v842_v19, %v834_v18 }
 0x899   :  { %3972 = vtanh.f32 %v844_v20  ;;  %v857_v52 = vsel %vm856_vm8, %v844_v20, %v769_v17 }
 0x8a3   :  { %v3973_v22 = vpop.eup %3972 }
 0x8a4   :  { %847 = vrot.lane.b32.xlu1 %v3973_v22, %s4204_s14 }
 0x916   :  { %v848_v25 = vpop.permute.xlu1 %847 }
 0x917   :  { %v850_v34 = vmul.f32 %v3971_v15, %v848_v25  ;;  %v1028_v15 = vsel %vm1027_vm11, 1, %v4201_v0  ;;  %vm1467_vm11 = vcmp.gt.s32.totalorder %v4477_v35, 9 }
 0x919   :  { %v4572_v26 = vsel %vm856_vm8, %v850_v34, %v4546_v1 }
 0x91a   :  { %v867_v27 = vpack.c.bf16 %v4572_v26, %v4572_v26 }
 0x91c   :  { %869 = vrot.lane.b32.xlu1 %v867_v27, %s4205_s15 }
 0x98e   :  { %v870_v28 = vpop.permute.xlu1 %869 }
 0x98f   :  { %3653 = vmatmul.mubr.msk.bf16.vlgmr.msra.gmra.mrb[28].mxu1 %vm207_vm0, %v870_v28 }
 0x990   :  { %3657 = vmatpush3.bf16.msra.mxu1 %v4368_v31  ;;  %3660 = vmatprep.mubr.msk.bf16.mxu1 %vm4203_vm1, %v4202_v30 }
 0x991   :  { %3658 = vmatprep.subr.bf16.mxu1 %v4202_v30 }
 0x994   :  { %3659 = vmatpush3.bf16.msra.mxu1 %v4375_v32 }
 0x995   :  { %3664 = vmatprep.subr.bf16.mxu1 %v4202_v30 }
 0xa62   :  { %v908_v29 = vpop.f32.mrb[28].mxu1 }
 0xa63   :  { %v914_v36 = vadd.f32 %v908_v29, %v4486_v41  ;;  %v3654_v33 = vpop.f32.mrb[29].mxu1 }
 0xa64   :  { %v911_v37 = vpop.f32.mrb[30].mxu1 }
 0xa65   :  { %3974 = vtanh.f32 %v914_v36  ;;  %v3655_v39 = vpop.f32.mrb[31].mxu1  ;;  %v3413_v44 = vmul.f32 -1.442695, %v914_v36 }
 0xa67   :  { %3976 = vpow2.f32 %v3413_v44 }
 0xa6f   :  { %v3975_v40 = vpop.eup %3974 }
 0xa70   :  { %924 = vrot.lane.b32.xlu0 %v3975_v40, %s4204_s14 }
 0xa71   :  { %v3977_v46 = vpop.eup %3976 }
 0xa72   :  { %v918_v43 = vadd.f32 1.0, %v3977_v46 }
 0xa74   :  { %942 = vperm.xlu0 %3908, %v940_v42   ;;  %3978 = vrcp.f32 %v918_v43 }
 0xa7e   :  { %v3979_v48 = vpop.eup %3978 }
 0xa7f   :  { %v922_v54 = vmul.f32 %v3979_v48, %v857_v52 }
 0xae2   :  { %v925_v50 = vpop.permute.xlu0 %924 }
 0xae3   :  { %v927_v41 = vmul.f32 %v3979_v48, %v925_v50  ;;  %v1116_v50 = vsel %vm1115_vm13, 1, %v4201_v0 }
 0xae5   :  { %929 = vrot.lane.b32.xlu1 %v927_v41, %s4204_s14 }
 0xaf3   :  { %v4592_v2 = vpop.permute.xlu0 %942 }
 0xaf4   :  { %vm944_vm10 = vcmp.eq.s32.totalorder %v4592_v2, 1 }
 0xb57   :  { %v930_v56 = vpop.permute.xlu1 %929 }
 0xb58   :  { %v932_v60 = vadd.f32 %v930_v56, %v922_v54 }
 0xb5a   :  { %3980 = vtanh.f32 %v932_v60  ;;  %v945_v20 = vsel %vm944_vm10, %v932_v60, %v857_v52 }
 0xb64   :  { %v3981_v62 = vpop.eup %3980 }
 0xb65   :  { %935 = vrot.lane.b32.xlu1 %v3981_v62, %s4204_s14 }
 0xbd7   :  { %v936_v4 = vpop.permute.xlu1 %935 }
 0xbd8   :  { %v938_v5 = vmul.f32 %v3979_v48, %v936_v4 }
 0xbda   :  { %v4598_v6 = vsel %vm944_vm10, %v938_v5, %v4572_v26 }
 0xbdb   :  { %v955_v7 = vpack.c.bf16 %v4598_v6, %v4598_v6 }
 0xbdd   :  { %957 = vrot.lane.b32.xlu0 %v955_v7, %s4205_s15 }
 0xc4f   :  { %v958_v8 = vpop.permute.xlu0 %957 }
 0xc50   :  { %3661 = vmatmul.mubr.msk.bf16.vlgmr.msra.gmra.mrb[32].mxu1 %vm207_vm0, %v958_v8 }
 0xc51   :  { %3665 = vmatpush3.bf16.msra.mxu1 %v4368_v31  ;;  %3668 = vmatprep.mubr.msk.bf16.mxu1 %vm4203_vm1, %v4202_v30 }
 0xc52   :  { %3666 = vmatprep.subr.bf16.mxu1 %v4202_v30 }
 0xc55   :  { %3667 = vmatpush3.bf16.msra.mxu1 %v4375_v32 }
 0xc56   :  { %3672 = vmatprep.subr.bf16.mxu1 %v4202_v30 }
 0xd23   :  { %v996_v9 = vpop.f32.mrb[32].mxu1 }
 0xd24   :  { %v1002_v10 = vadd.f32 %v996_v9, %v4492_v47  ;;  %v3662_v11 = vpop.f32.mrb[33].mxu1 }
 0xd25   :  { %v999_v12 = vpop.f32.mrb[34].mxu1 }
 0xd26   :  { %3982 = vtanh.f32 %v1002_v10  ;;  %v3663_v13 = vpop.f32.mrb[35].mxu1  ;;  %v3415_v16 = vmul.f32 -1.442695, %v1002_v10 }
 0xd28   :  { %3984 = vpow2.f32 %v3415_v16 }
 0xd30   :  { %v3983_v14 = vpop.eup %3982 }
 0xd31   :  { %1012 = vrot.lane.b32.xlu1 %v3983_v14, %s4204_s14 }
 0xd32   :  { %v3985_v38 = vpop.eup %3984 }
 0xd33   :  { %v1006_v17 = vadd.f32 1.0, %v3985_v38 }
 0xd35   :  { %1030 = vperm.xlu1 %3907, %v1028_v15   ;;  %3986 = vrcp.f32 %v1006_v17 }
 0xd3f   :  { %v3987_v18 = vpop.eup %3986 }
 0xd40   :  { %v1010_v22 = vmul.f32 %v3987_v18, %v945_v20 }
 0xda3   :  { %v1013_v19 = vpop.permute.xlu1 %1012 }
 0xda4   :  { %v1015_v47 = vmul.f32 %v3987_v18, %v1013_v19 }
 0xda6   :  { %1017 = vrot.lane.b32.xlu0 %v1015_v47, %s4204_s14  ;;  %v1204_v47 = vsel %vm1203_vm15, 1, %v4201_v0  ;;  %vm1555_vm15 = vcmp.gt.s32.totalorder %v4477_v35, 10 }
 0xdb4   :  { %v4618_v28 = vpop.permute.xlu1 %1030 }
 0xdb5   :  { %vm1032_vm12 = vcmp.eq.s32.totalorder %v4618_v28, 1 }
 0xe18   :  { %v1018_v25 = vpop.permute.xlu0 %1017 }
 0xe19   :  { %v1020_v34 = vadd.f32 %v1018_v25, %v1010_v22 }
 0xe1b   :  { %3988 = vtanh.f32 %v1020_v34  ;;  %v1033_v62 = vsel %vm1032_vm12, %v1020_v34, %v945_v20 }
 0xe25   :  { %v3989_v27 = vpop.eup %3988 }
 0xe26   :  { %1023 = vrot.lane.b32.xlu0 %v3989_v27, %s4204_s14 }
 0xe98   :  { %v1024_v29 = vpop.permute.xlu0 %1023 }
 0xe99   :  { %v1026_v36 = vmul.f32 %v3987_v18, %v1024_v29 }
 0xe9b   :  { %v4624_v33 = vsel %vm1032_vm12, %v1026_v36, %v4598_v6 }
 0xe9c   :  { %v1043_v37 = vpack.c.bf16 %v4624_v33, %v4624_v33 }
 0xe9e   :  { %1045 = vrot.lane.b32.xlu1 %v1043_v37, %s4205_s15 }
 0xf10   :  { %v1046_v39 = vpop.permute.xlu1 %1045 }
 0xf11   :  { %3669 = vmatmul.mubr.msk.bf16.vlgmr.msra.gmra.mrb[36].mxu1 %vm207_vm0, %v1046_v39 }
 0xf12   :  { %3673 = vmatpush3.bf16.msra.mxu1 %v4368_v31  ;;  %3676 = vmatprep.mubr.msk.bf16.mxu1 %vm4203_vm1, %v4202_v30 }
 0xf13   :  { %3674 = vmatprep.subr.bf16.mxu1 %v4202_v30 }
 0xf16   :  { %3675 = vmatpush3.bf16.msra.mxu1 %v4375_v32 }
 0xf17   :  { %3680 = vmatprep.subr.bf16.mxu1 %v4202_v30 }
 0xfe4   :  { %v1084_v40 = vpop.f32.mrb[36].mxu1 }
 0xfe5   :  { %v1090_v42 = vadd.f32 %v1084_v40, %v4496_v51  ;;  %v3670_v44 = vpop.f32.mrb[37].mxu1 }
 0xfe6   :  { %v1087_v46 = vpop.f32.mrb[38].mxu1 }
 0xfe7   :  { %3990 = vtanh.f32 %v1090_v42  ;;  %v3671_v43 = vpop.f32.mrb[39].mxu1  ;;  %v3417_v41 = vmul.f32 -1.442695, %v1090_v42 }
 0xfe9   :  { %3992 = vpow2.f32 %v3417_v41 }
 0xff1   :  { %v3991_v48 = vpop.eup %3990 }
 0xff2   :  { %1100 = vrot.lane.b32.xlu0 %v3991_v48, %s4204_s14 }
 0xff3   :  { %v3993_v52 = vpop.eup %3992 }
 0xff4   :  { %v1094_v54 = vadd.f32 1.0, %v3993_v52 }
 0xff6   :  { %1118 = vperm.xlu0 %3908, %v1116_v50   ;;  %3994 = vrcp.f32 %v1094_v54 }
0x1000   :  { %v3995_v56 = vpop.eup %3994 }
0x1001   :  { %v1098_v4 = vmul.f32 %v3995_v56, %v1033_v62 }
0x1064   :  { %v1101_v60 = vpop.permute.xlu0 %1100 }
0x1065   :  { %v1103_v51 = vmul.f32 %v3995_v56, %v1101_v60 }
0x1067   :  { %1105 = vrot.lane.b32.xlu1 %v1103_v51, %s4204_s14 }
0x1075   :  { %v4644_v9 = vpop.permute.xlu0 %1118 }
0x1076   :  { %vm1120_vm14 = vcmp.eq.s32.totalorder %v4644_v9, 1 }
0x10d9   :  { %v1106_v5 = vpop.permute.xlu1 %1105 }
0x10da   :  { %v1108_v7 = vadd.f32 %v1106_v5, %v1098_v4 }
0x10dc   :  { %3996 = vtanh.f32 %v1108_v7  ;;  %v1121_v29 = vsel %vm1120_vm14, %v1108_v7, %v1033_v62 }
0x10e6   :  { %v3997_v8 = vpop.eup %3996 }
0x10e7   :  { %1111 = vrot.lane.b32.xlu1 %v3997_v8, %s4204_s14 }
0x1159   :  { %v1112_v10 = vpop.permute.xlu1 %1111 }
0x115a   :  { %v1114_v11 = vmul.f32 %v3995_v56, %v1112_v10 }
0x115c   :  { %v4650_v12 = vsel %vm1120_vm14, %v1114_v11, %v4624_v33 }
0x115d   :  { %v1131_v13 = vpack.c.bf16 %v4650_v12, %v4650_v12 }
0x115f   :  { %1133 = vrot.lane.b32.xlu0 %v1131_v13, %s4205_s15 }
0x11d1   :  { %v1134_v14 = vpop.permute.xlu0 %1133 }
0x11d2   :  { %3677 = vmatmul.mubr.msk.bf16.vlgmr.msra.gmra.mrb[40].mxu1 %vm207_vm0, %v1134_v14 }
0x11d3   :  { %3681 = vmatpush3.bf16.msra.mxu1 %v4368_v31  ;;  %3684 = vmatprep.mubr.msk.bf16.mxu1 %vm4203_vm1, %v4202_v30 }
0x11d4   :  { %3682 = vmatprep.subr.bf16.mxu1 %v4202_v30 }
0x11d7   :  { %3683 = vmatpush3.bf16.msra.mxu1 %v4375_v32 }
0x11d8   :  { %3696 = vmatprep.subr.bf16.mxu1 %v4202_v30 }
0x12a5   :  { %v1172_v15 = vpop.f32.mrb[40].mxu1 }
0x12a6   :  { %v1178_v16 = vadd.f32 %v1172_v15, %v4490_v45  ;;  %v3678_v38 = vpop.f32.mrb[41].mxu1 }
0x12a7   :  { %v1175_v17 = vpop.f32.mrb[42].mxu1 }
0x12a8   :  { %3998 = vtanh.f32 %v1178_v16  ;;  %v3679_v18 = vpop.f32.mrb[43].mxu1  ;;  %v3419_v20 = vmul.f32 -1.442695, %v1178_v16 }
0x12aa   :  { %4000 = vpow2.f32 %v3419_v20  ;;  %v4720_v20 = vld [vmem:[%s5301_s6 + $0x8] sm:$0xff]  }
0x12b2   :  { %v3999_v19 = vpop.eup %3998 }
0x12b3   :  { %1188 = vrot.lane.b32.xlu1 %v3999_v19, %s4204_s14 }
0x12b4   :  { %v4001_v22 = vpop.eup %4000 }
0x12b5   :  { %v1182_v25 = vadd.f32 1.0, %v4001_v22 }
0x12b7   :  { %1206 = vperm.xlu1 %3907, %v1204_v47   ;;  %4002 = vrcp.f32 %v1182_v25  ;;  %v4711_v47 = vld [vmem:[%s5301_s6] sm:$0xff]  }
0x12c1   :  { %v4003_v34 = vpop.eup %4002 }
0x12c2   :  { %v1186_v36 = vmul.f32 %v4003_v34, %v1121_v29 }
0x1325   :  { %v1189_v27 = vpop.permute.xlu1 %1188 }
0x1326   :  { %v1191_v45 = vmul.f32 %v4003_v34, %v1189_v27 }
0x1328   :  { %1193 = vrot.lane.b32.xlu0 %v1191_v45, %s4204_s14 }
0x1336   :  { %v4670_v42 = vpop.permute.xlu1 %1206 }
0x1337   :  { %vm1208_vm2 = vcmp.eq.s32.totalorder %v4670_v42, 1 }
0x139a   :  { %v1194_v37 = vpop.permute.xlu0 %1193 }
0x139b   :  { %v1196_v39 = vadd.f32 %v1194_v37, %v1186_v36  ;;  %v1380_v36 = vsel %vm1379_vm7, 1, %v4201_v0  ;;  %vm1643_vm7 = vcmp.gt.s32.totalorder %v4477_v35, 11 }
0x139d   :  { %4004 = vtanh.f32 %v1196_v39  ;;  %v1209_v8 = vsel %vm1208_vm2, %v1196_v39, %v1121_v29 }
0x13a7   :  { %v4005_v40 = vpop.eup %4004 }
0x13a8   :  { %1199 = vrot.lane.b32.xlu0 %v4005_v40, %s4204_s14 }
0x141a   :  { %v1200_v44 = vpop.permute.xlu0 %1199 }
0x141b   :  { %v1202_v46 = vmul.f32 %v4003_v34, %v1200_v44 }
0x141d   :  { %v4676_v43 = vsel %vm1208_vm2, %v1202_v46, %v4650_v12 }
0x141e   :  { %v1219_v48 = vpack.c.bf16 %v4676_v43, %v4676_v43 }
0x1420   :  { %1221 = vrot.lane.b32.xlu1 %v1219_v48, %s4205_s15 }
0x1492   :  { %v1222_v50 = vpop.permute.xlu1 %1221 }
0x1493   :  { %3685 = vmatmul.mubr.msk.bf16.vlgmr.msra.gmra.mrb[44].mxu1 %vm207_vm0, %v1222_v50 }
0x1494   :  { %3697 = vmatpush3.bf16.msra.mxu1 %v4368_v31  ;;  %3700 = vmatprep.mubr.msk.bf16.mxu1 %vm4203_vm1, %v4202_v30  ;;  %v1292_v31 = vsel %vm1291_vm3, 1, %v4201_v0 }
0x1495   :  { %3698 = vmatprep.subr.bf16.mxu1 %v4202_v30 }
0x1498   :  { %3699 = vmatpush3.bf16.msra.mxu1 %v4375_v32 }
0x1499   :  { %3712 = vmatprep.subr.bf16.mxu1 %v4202_v30 }
0x1566   :  { %v1260_v41 = vpop.f32.mrb[44].mxu1 }
0x1567   :  { %v1266_v52 = vadd.f32 %v1260_v41, %v4494_v49  ;;  %v3686_v54 = vpop.f32.mrb[45].mxu1 }
0x1568   :  { %v1263_v56 = vpop.f32.mrb[46].mxu1 }
0x1569   :  { %4006 = vtanh.f32 %v1266_v52  ;;  %v3687_v60 = vpop.f32.mrb[47].mxu1  ;;  %v3421_v62 = vmul.f32 -1.442695, %v1266_v52 }
0x156b   :  { %4008 = vpow2.f32 %v3421_v62 }
0x1573   :  { %v4007_v51 = vpop.eup %4006 }
0x1574   :  { %1276 = vrot.lane.b32.xlu0 %v4007_v51, %s4204_s14 }
0x1575   :  { %v4009_v32 = vpop.eup %4008 }
0x1576   :  { %v1270_v4 = vadd.f32 1.0, %v4009_v32 }
0x1578   :  { %1294 = vperm.xlu0 %3908, %v1292_v31   ;;  %4010 = vrcp.f32 %v1270_v4 }
0x1582   :  { %v4011_v5 = vpop.eup %4010 }
0x1583   :  { %v1274_v10 = vmul.f32 %v4011_v5, %v1209_v8 }
0x15e6   :  { %v1277_v7 = vpop.permute.xlu0 %1276 }
0x15e7   :  { %v1279_v49 = vmul.f32 %v4011_v5, %v1277_v7 }
0x15e9   :  { %1281 = vrot.lane.b32.xlu1 %v1279_v49, %s4204_s14 }
0x15f7   :  { %v4696_v15 = vpop.permute.xlu0 %1294 }
0x15f8   :  { %vm1296_vm5 = vcmp.eq.s32.totalorder %v4696_v15, 1 }
0x165b   :  { %v1282_v11 = vpop.permute.xlu1 %1281 }
0x165c   :  { %v1284_v13 = vadd.f32 %v1282_v11, %v1274_v10  ;;  %v1468_v11 = vsel %vm1467_vm11, 1, %v4201_v0 }
0x165e   :  { %4012 = vtanh.f32 %v1284_v13  ;;  %v1297_v48 = vsel %vm1296_vm5, %v1284_v13, %v1209_v8 }
0x1668   :  { %v4013_v14 = vpop.eup %4012 }
0x1669   :  { %1287 = vrot.lane.b32.xlu1 %v4013_v14, %s4204_s14 }
0x16db   :  { %v1288_v16 = vpop.permute.xlu1 %1287 }
0x16dc   :  { %v1290_v38 = vmul.f32 %v4011_v5, %v1288_v16 }
0x16de   :  { %v4702_v17 = vsel %vm1296_vm5, %v1290_v38, %v4676_v43 }
0x16df   :  { %v1307_v18 = vpack.c.bf16 %v4702_v17, %v4702_v17 }
0x16e1   :  { %1309 = vrot.lane.b32.xlu0 %v1307_v18, %s4205_s15 }
0x1753   :  { %v1310_v19 = vpop.permute.xlu0 %1309 }
0x1754   :  { %3693 = vmatmul.mubr.msk.bf16.vlgmr.msra.gmra.mrb[32].mxu0 %vm207_vm0, %v1310_v19 }
0x1755   :  { %3705 = vmatpush3.bf16.msra.mxu0 %v4711_v47  ;;  %3708 = vmatprep.mubr.msk.bf16.mxu0 %vm4203_vm1, %v4202_v30 }
0x1756   :  { %3706 = vmatprep.subr.bf16.mxu0 %v4202_v30 }
0x1759   :  { %3707 = vmatpush3.bf16.msra.mxu0 %v4720_v20 }
0x175a   :  { %3720 = vmatprep.subr.bf16.mxu0 %v4202_v30 }
0x1827   :  { %v1348_v22 = vpop.f32.mrb[32].mxu0 }
0x1828   :  { %v1354_v25 = vadd.f32 %v1348_v22, %v4500_v55  ;;  %v3694_v34 = vpop.f32.mrb[33].mxu0 }
0x1829   :  { %v1351_v27 = vpop.f32.mrb[34].mxu0 }
0x182a   :  { %4014 = vtanh.f32 %v1354_v25  ;;  %v3695_v45 = vpop.f32.mrb[35].mxu0  ;;  %v3423_v37 = vmul.f32 -1.442695, %v1354_v25 }
0x182c   :  { %4016 = vpow2.f32 %v3423_v37 }
0x1834   :  { %v4015_v29 = vpop.eup %4014 }
0x1835   :  { %1364 = vrot.lane.b32.xlu1 %v4015_v29, %s4204_s14 }
0x1836   :  { %v4017_v39 = vpop.eup %4016 }
0x1837   :  { %v1358_v40 = vadd.f32 1.0, %v4017_v39 }
0x1839   :  { %1382 = vperm.xlu1 %3907, %v1380_v36   ;;  %4018 = vrcp.f32 %v1358_v40 }
0x1843   :  { %v4019_v44 = vpop.eup %4018 }
0x1844   :  { %v1362_v50 = vmul.f32 %v4019_v44, %v1297_v48 }
0x18a7   :  { %v1365_v46 = vpop.permute.xlu1 %1364 }
0x18a8   :  { %v1367_v55 = vmul.f32 %v4019_v44, %v1365_v46 }
0x18aa   :  { %1369 = vrot.lane.b32.xlu0 %v1367_v55, %s4204_s14 }
0x18b8   :  { %v4732_v56 = vpop.permute.xlu1 %1382 }
0x18b9   :  { %vm1384_vm9 = vcmp.eq.s32.totalorder %v4732_v56, 1 }
0x191c   :  { %v1370_v41 = vpop.permute.xlu0 %1369 }
0x191d   :  { %v1372_v52 = vadd.f32 %v1370_v41, %v1362_v50 }
0x191f   :  { %4020 = vtanh.f32 %v1372_v52  ;;  %v1385_v19 = vsel %vm1384_vm9, %v1372_v52, %v1297_v48  ;;  %v1556_v52 = vsel %vm1555_vm15, 1, %v4201_v0 }
0x1929   :  { %v4021_v54 = vpop.eup %4020 }
0x192a   :  { %1375 = vrot.lane.b32.xlu0 %v4021_v54, %s4204_s14 }
0x199c   :  { %v1376_v60 = vpop.permute.xlu0 %1375 }
0x199d   :  { %v1378_v51 = vmul.f32 %v4019_v44, %v1376_v60 }
0x199f   :  { %v4738_v31 = vsel %vm1384_vm9, %v1378_v51, %v4702_v17 }
0x19a0   :  { %v1395_v62 = vpack.c.bf16 %v4738_v31, %v4738_v31 }
0x19a2   :  { %1397 = vrot.lane.b32.xlu1 %v1395_v62, %s4205_s15 }
0x1a14   :  { %v1398_v32 = vpop.permute.xlu1 %1397 }
0x1a15   :  { %3701 = vmatmul.mubr.msk.bf16.vlgmr.msra.gmra.mrb[48].mxu1 %vm207_vm0, %v1398_v32 }
0x1a16   :  { %3713 = vmatpush3.bf16.msra.mxu1 %v4711_v47  ;;  %3716 = vmatprep.mubr.msk.bf16.mxu1 %vm4203_vm1, %v4202_v30 }
0x1a17   :  { %3714 = vmatprep.subr.bf16.mxu1 %v4202_v30 }
0x1a1a   :  { %3715 = vmatpush3.bf16.msra.mxu1 %v4720_v20 }
0x1a1b   :  { %3728 = vmatprep.subr.bf16.mxu1 %v4202_v30 }
0x1ae8   :  { %v1436_v4 = vpop.f32.mrb[48].mxu1 }
0x1ae9   :  { %v1442_v5 = vadd.f32 %v1436_v4, %v4504_v59  ;;  %v3702_v7 = vpop.f32.mrb[49].mxu1 }
0x1aea   :  { %v1439_v49 = vpop.f32.mrb[50].mxu1 }
0x1aeb   :  { %4022 = vtanh.f32 %v1442_v5  ;;  %v3703_v8 = vpop.f32.mrb[51].mxu1  ;;  %v3425_v13 = vmul.f32 -1.442695, %v1442_v5 }
0x1aed   :  { %4024 = vpow2.f32 %v3425_v13 }
0x1af5   :  { %v4023_v10 = vpop.eup %4022 }
0x1af6   :  { %1452 = vrot.lane.b32.xlu0 %v4023_v10, %s4204_s14 }
0x1af7   :  { %v4025_v14 = vpop.eup %4024 }
0x1af8   :  { %v1446_v16 = vadd.f32 1.0, %v4025_v14 }
0x1afa   :  { %1470 = vperm.xlu0 %3908, %v1468_v11   ;;  %4026 = vrcp.f32 %v1446_v16 }
0x1b04   :  { %v4027_v38 = vpop.eup %4026 }
0x1b05   :  { %v1450_v22 = vmul.f32 %v4027_v38, %v1385_v19 }
0x1b68   :  { %v1453_v18 = vpop.permute.xlu0 %1452 }
0x1b69   :  { %v1455_v59 = vmul.f32 %v4027_v38, %v1453_v18 }
0x1b6b   :  { %1457 = vrot.lane.b32.xlu1 %v1455_v59, %s4204_s14 }
0x1b79   :  { %v4758_v45 = vpop.permute.xlu0 %1470 }
0x1b7a   :  { %vm1472_vm13 = vcmp.eq.s32.totalorder %v4758_v45, 1  ;;  %v4197_v45 = vld [vmem:[%s5301_s6 + $0x10] sm:$0xff]  }
0x1bdd   :  { %v1458_v25 = vpop.permute.xlu1 %1457 }
0x1bde   :  { %v1460_v34 = vadd.f32 %v1458_v25, %v1450_v22 }
0x1be0   :  { %4028 = vtanh.f32 %v1460_v34  ;;  %v1473_v4 = vsel %vm1472_vm13, %v1460_v34, %v1385_v19 }
0x1bea   :  { %v4029_v27 = vpop.eup %4028 }
0x1beb   :  { %1463 = vrot.lane.b32.xlu1 %v4029_v27, %s4204_s14  ;;  %v1644_v27 = vsel %vm1643_vm7, 1, %v4201_v0 }
0x1c5d   :  { %v1464_v29 = vpop.permute.xlu1 %1463 }
0x1c5e   :  { %v1466_v36 = vmul.f32 %v4027_v38, %v1464_v29 }
0x1c60   :  { %v4764_v37 = vsel %vm1472_vm13, %v1466_v36, %v4738_v31 }
0x1c61   :  { %v1483_v39 = vpack.c.bf16 %v4764_v37, %v4764_v37 }
0x1c63   :  { %1485 = vrot.lane.b32.xlu0 %v1483_v39, %s4205_s15 }
0x1cd5   :  { %v1486_v40 = vpop.permute.xlu0 %1485 }
0x1cd6   :  { %3709 = vmatmul.mubr.msk.bf16.vlgmr.msra.gmra.mrb[36].mxu0 %vm207_vm0, %v1486_v40 }
0x1cd7   :  { %3721 = vmatpush3.bf16.msra.mxu0 %v4711_v47  ;;  %3724 = vmatprep.mubr.msk.bf16.mxu0 %vm4203_vm1, %v4202_v30 }
0x1cd8   :  { %3722 = vmatprep.subr.bf16.mxu0 %v4202_v30 }
0x1cdb   :  { %3723 = vmatpush3.bf16.msra.mxu0 %v4720_v20 }
0x1cdc   :  { %3736 = vmatprep.subr.bf16.mxu0 %v4202_v30 }
0x1da9   :  { %v1524_v44 = vpop.f32.mrb[36].mxu0 }
0x1daa   :  { %v1530_v46 = vadd.f32 %v1524_v44, %v4498_v53  ;;  %v3710_v55 = vpop.f32.mrb[37].mxu0 }
0x1dab   :  { %v1527_v48 = vpop.f32.mrb[38].mxu0 }
0x1dac   :  { %4030 = vtanh.f32 %v1530_v46  ;;  %v3711_v50 = vpop.f32.mrb[39].mxu0  ;;  %v3427_v54 = vmul.f32 -1.442695, %v1530_v46 }
0x1dae   :  { %4032 = vpow2.f32 %v3427_v54 }
0x1db6   :  { %v4031_v41 = vpop.eup %4030 }
0x1db7   :  { %1540 = vrot.lane.b32.xlu1 %v4031_v41, %s4204_s14 }
0x1db8   :  { %v4033_v60 = vpop.eup %4032 }
0x1db9   :  { %v1534_v51 = vadd.f32 1.0, %v4033_v60 }
0x1dbb   :  { %1558 = vperm.xlu1 %3907, %v1556_v52   ;;  %4034 = vrcp.f32 %v1534_v51 }
0x1dc5   :  { %v4035_v62 = vpop.eup %4034 }
0x1dc6   :  { %v1538_v5 = vmul.f32 %v4035_v62, %v1473_v4 }
0x1e29   :  { %v1541_v32 = vpop.permute.xlu1 %1540 }
0x1e2a   :  { %v1543_v53 = vmul.f32 %v4035_v62, %v1541_v32 }
0x1e2c   :  { %1545 = vrot.lane.b32.xlu0 %v1543_v53, %s4204_s14 }
0x1e3a   :  { %v4784_v10 = vpop.permute.xlu1 %1558 }
0x1e3b   :  { %vm1560_vm3 = vcmp.eq.s32.totalorder %v4784_v10, 1  ;;  %v5236_v10 = vld [vmem:[%s5305_s7 + $0x1] ss:$0 sm:$0xff] }
0x1e9e   :  { %v1546_v7 = vpop.permute.xlu0 %1545 }
0x1e9f   :  { %v1548_v49 = vadd.f32 %v1546_v7, %v1538_v5 }
0x1ea1   :  { %4036 = vtanh.f32 %v1548_v49  ;;  %v1561_v46 = vsel %vm1560_vm3, %v1548_v49, %v1473_v4 }
0x1eab   :  { %v4037_v8 = vpop.eup %4036 }
0x1eac   :  { %1551 = vrot.lane.b32.xlu0 %v4037_v8, %s4204_s14 }
0x1f1e   :  { %v1552_v11 = vpop.permute.xlu0 %1551 }
0x1f1f   :  { %v1554_v13 = vmul.f32 %v4035_v62, %v1552_v11 }
0x1f21   :  { %v4790_v14 = vsel %vm1560_vm3, %v1554_v13, %v4764_v37 }
0x1f22   :  { %v1571_v16 = vpack.c.bf16 %v4790_v14, %v4790_v14 }
0x1f24   :  { %1573 = vrot.lane.b32.xlu1 %v1571_v16, %s4205_s15 }
0x1f96   :  { %v1574_v38 = vpop.permute.xlu1 %1573 }
0x1f97   :  { %3717 = vmatmul.mubr.msk.bf16.vlgmr.msra.gmra.mrb[52].mxu1 %vm207_vm0, %v1574_v38 }
0x1f98   :  { %3729 = vmatpush3.bf16.msra.mxu1 %v4711_v47  ;;  %3732 = vmatprep.mubr.msk.bf16.mxu1 %vm4203_vm1, %v4202_v30 }
0x1f99   :  { %3730 = vmatprep.subr.bf16.mxu1 %v4202_v30 }
0x1f9c   :  { %3731 = vmatpush3.bf16.msra.mxu1 %v4720_v20 }
0x206a   :  { %v1612_v18 = vpop.f32.mrb[52].mxu1 }
0x206b   :  { %v1618_v59 = vadd.f32 %v1612_v18, %v4502_v57  ;;  %v3718_v19 = vpop.f32.mrb[53].mxu1 }
0x206c   :  { %v1615_v22 = vpop.f32.mrb[54].mxu1 }
0x206d   :  { %4038 = vtanh.f32 %v1618_v59  ;;  %v3719_v25 = vpop.f32.mrb[55].mxu1  ;;  %v3429_v29 = vmul.f32 -1.442695, %v1618_v59 }
0x206f   :  { %4040 = vpow2.f32 %v3429_v29 }
0x2077   :  { %v4039_v34 = vpop.eup %4038 }
0x2078   :  { %1628 = vrot.lane.b32.xlu0 %v4039_v34, %s4204_s14 }
0x2079   :  { %v4041_v36 = vpop.eup %4040 }
0x207a   :  { %v1622_v39 = vadd.f32 1.0, %v4041_v36 }
0x207c   :  { %1646 = vperm.xlu0 %3908, %v1644_v27   ;;  %4042 = vrcp.f32 %v1622_v39 }
0x2086   :  { %v4043_v40 = vpop.eup %4042 }
0x2087   :  { %v1626_v35 = vmul.f32 %v4043_v40, %v1561_v46 }
0x20ea   :  { %v1629_v44 = vpop.permute.xlu0 %1628 }
0x20eb   :  { %v1631_v57 = vmul.f32 %v4043_v40, %v1629_v44 }
0x20ed   :  { %1633 = vrot.lane.b32.xlu1 %v1631_v57, %s4204_s14 }
0x20fb   :  { %v4809_v41 = vpop.permute.xlu0 %1646 }
0x20fc   :  { %vm1648_vm11 = vcmp.eq.s32.totalorder %v4809_v41, 1 }
0x215f   :  { %v1634_v55 = vpop.permute.xlu1 %1633 }
0x2160   :  { %v1636_v48 = vadd.f32 %v1634_v55, %v1626_v35 }
0x2162   :  { %4044 = vtanh.f32 %v1636_v48  ;;  %v1649_v18 = vsel %vm1648_vm11, %v1636_v48, %v1561_v46 }
0x216c   :  { %v4045_v50 = vpop.eup %4044 }
0x216d   :  { %1639 = vrot.lane.b32.xlu1 %v4045_v50, %s4204_s14 }
0x21df   :  { %v1640_v52 = vpop.permute.xlu1 %1639 }
0x21e0   :  { %v1642_v54 = vmul.f32 %v4043_v40, %v1640_v52 }
0x21e2   :  { %v4815_v60 = vsel %vm1648_vm11, %v1642_v54, %v4790_v14 }
0x21e3   :  { %v1659_v51 = vpack.c.bf16 %v4815_v60, %v4815_v60 }
0x21e5   :  { %1661 = vrot.lane.b32.xlu0 %v1659_v51, %s4205_s15 }
0x2257   :  { %v1662_v62 = vpop.permute.xlu0 %1661 }
0x2258   :  { %3725 = vmatmul.mubr.msk.bf16.vlgmr.msra.gmra.mrb[40].mxu0 %vm207_vm0, %v1662_v62 }
0x2259   :  { %3737 = vmatpush3.bf16.msra.mxu0 %v4711_v47  ;;  %3740 = vmatprep.mubr.msk.bf16.mxu0 %vm4203_vm1, %v4202_v30  ;;  %v4831_v47 = vld [vmem:[%s5304_s4] sm:$0xff] }
0x225a   :  { %3738 = vmatprep.subr.bf16.mxu0 %v4202_v30  ;;  %vm1731_vm15 = vcmp.gt.s32.totalorder %v4831_v47, 12 }
0x225d   :  { %3739 = vmatpush3.bf16.msra.mxu0 %v4720_v20  ;;  %v1732_v20 = vsel %vm1731_vm15, 1, %v4201_v0  ;;  %vm1819_vm15 = vcmp.gt.s32.totalorder %v4831_v47, 13 }
0x225e   :  { %3764 = vmatprep.subr.bf16.mxu0 %v4202_v30  ;;  %v1820_v50 = vsel %vm1819_vm15, 1, %v4201_v0 }
0x232b   :  { %v1700_v32 = vpop.f32.mrb[40].mxu0 }
0x232c   :  { %v1706_v53 = vadd.f32 %v1700_v32, %v4508_v63  ;;  %v3726_v4 = vpop.f32.mrb[41].mxu0 }
0x232d   :  { %v1703_v5 = vpop.f32.mrb[42].mxu0 }
0x232e   :  { %4046 = vtanh.f32 %v1706_v53  ;;  %v3727_v7 = vpop.f32.mrb[43].mxu0  ;;  %v3431_v8 = vmul.f32 -1.442695, %v1706_v53 }
0x2330   :  { %4048 = vpow2.f32 %v3431_v8  ;;  %v3947_v8 = vld [vmem:[%s5300_s5 + $0x18] sm:$0xff]  }
0x2338   :  { %v4047_v49 = vpop.eup %4046 }
0x2339   :  { %1716 = vrot.lane.b32.xlu1 %v4047_v49, %s4204_s14 }
0x233a   :  { %v4049_v63 = vpop.eup %4048 }
0x233b   :  { %v1710_v11 = vadd.f32 1.0, %v4049_v63 }
0x233d   :  { %1734 = vperm.xlu1 %3907, %v1732_v20   ;;  %4050 = vrcp.f32 %v1710_v11  ;;  %v3946_v20 = vld [vmem:[%s5300_s5 + $0x10] sm:$0xff]  }
0x233e   :  { %3744 = vmatprep.subr.bf16.mxu1 %v3946_v20 }
0x2347   :  { %v4051_v13 = vpop.eup %4050 }
0x2348   :  { %v1714_v59 = vmul.f32 %v4051_v13, %v1649_v18 }
0x23ab   :  { %v1717_v16 = vpop.permute.xlu1 %1716 }
0x23ac   :  { %v1719_v38 = vmul.f32 %v4051_v13, %v1717_v16 }
0x23ae   :  { %1721 = vrot.lane.b32.xlu0 %v1719_v38, %s4204_s14 }
0x23bc   :  { %v4840_v34 = vpop.permute.xlu1 %1734 }
0x23bd   :  { %vm1736_vm7 = vcmp.eq.s32.totalorder %v4840_v34, 1  ;;  %v4200_v34 = vld [vmem:[%s5304_s4] sm:$0xff] }
0x2420   :  { %v1722_v19 = vpop.permute.xlu0 %1721 }
0x2421   :  { %v1724_v22 = vadd.f32 %v1722_v19, %v1714_v59 }
0x2423   :  { %4052 = vtanh.f32 %v1724_v22 }
0x242d   :  { %v4053_v25 = vpop.eup %4052 }
0x242e   :  { %1727 = vrot.lane.b32.xlu0 %v4053_v25, %s4204_s14 }
0x24a0   :  { %v1728_v27 = vpop.permute.xlu0 %1727 }
0x24a1   :  { %v1730_v29 = vmul.f32 %v4051_v13, %v1728_v27 }
0x24a3   :  { %v4846_v36 = vsel %vm1736_vm7, %v1730_v29, %v4815_v60  ;;  %v4900_v29 = vld [vmem:[%s5301_s6 + $0x10] sm:$0xff]  }
0x24a4   :  { %v1747_v39 = vpack.c.bf16 %v4846_v36, %v4846_v36 }
0x24a6   :  { %1749 = vrot.lane.b32.xlu1 %v1747_v39, %s4205_s15  ;;  %v4908_v39 = vld [vmem:[%s5301_s6 + $0x18] sm:$0xff]  }
0x2518   :  { %v1750_v40 = vpop.permute.xlu1 %1749 }
0x2519   :  { %3733 = vmatmul.mubr.msk.bf16.vlgmr.msra.gmra.mrb[56].mxu1 %vm207_vm0, %v1750_v40 }
0x251a   :  { %3745 = vmatpush3.bf16.msra.mxu1 %v3946_v20 }
0x251b   :  { %3746 = vmatprep.subr.bf16.mxu1 %v3947_v8 }
0x251e   :  { %3747 = vmatpush3.bf16.msra.mxu1 %v3947_v8 }
0x251f   :  { %3796 = vmatprep.subr.bf16.mxu1 %v4202_v30 }
0x25ec   :  { %v1788_v44 = vpop.f32.mrb[56].mxu1 }
0x25ed   :  { %v1794_v57 = vadd.f32 %v1788_v44, %v4510_v3  ;;  %v3734_v46 = vpop.f32.mrb[57].mxu1 }
0x25ee   :  { %v1791_v35 = vpop.f32.mrb[58].mxu1 }
0x25ef   :  { %4054 = vtanh.f32 %v1794_v57  ;;  %v3735_v55 = vpop.f32.mrb[59].mxu1  ;;  %v3433_v52 = vmul.f32 -1.442695, %v1794_v57 }
0x25f1   :  { %4056 = vpow2.f32 %v3433_v52 }
0x25f9   :  { %v4055_v48 = vpop.eup %4054 }
0x25fa   :  { %1804 = vrot.lane.b32.xlu0 %v4055_v48, %s4204_s14 }
0x25fb   :  { %v4057_v3 = vpop.eup %4056 }
0x25fc   :  { %v1798_v54 = vadd.f32 1.0, %v4057_v3 }
0x25fe   :  { %1822 = vperm.xlu0 %3908, %v1820_v50   ;;  %4058 = vrcp.f32 %v1798_v54  ;;  %v4936_v54 = vld [vmem:[%s5305_s7 + $0x1] ss:$0 sm:$0xff] }
0x2602   :  { %685 = vrot.lane.b32.xlu0 %v4520_v24, %s4205_s15  ;;  %v4867_v24 = vsel %vm1736_vm7, %v1724_v22, %v1649_v18 }
0x2606   :  { %860 = vrot.lane.b32.xlu0 %v4572_v26, %s4205_s15 }
0x2608   :  { %v4059_v51 = vpop.eup %4058 }
0x2609   :  { %v1802_v26 = vmul.f32 %v4059_v51, %v4867_v24 }
0x266c   :  { %v1805_v62 = vpop.permute.xlu0 %1804 }
0x266d   :  { %v1807_v32 = vmul.f32 %v4059_v51, %v1805_v62 }
0x266f   :  { %1809 = vrot.lane.b32.xlu1 %v1807_v32, %s4204_s14 }
0x267d   :  { %v4861_v53 = vpop.permute.xlu0 %1822 }
0x267e   :  { %vm1824_vm15 = vcmp.eq.s32.totalorder %v4861_v53, 1 }
0x2681   :  { %v686_v4 = vpop.permute.xlu0 %685 }
0x2682   :  { %688 = vst.msk [vmem:[#allocation2] sm:$0xff] %vm207_vm0, %v686_v4 }
0x2685   :  { %v861_v5 = vpop.permute.xlu0 %860 }
0x2686   :  { %864 = vst.msk [vmem:[#allocation2 + $0x10] sm:$0xff] %vm207_vm0, %v861_v5 }
0x268d   :  { %v1922_v22 = vld [vmem:[#allocation2 + $0x10] sm:$0xff] }
0x26e1   :  { %v1810_v7 = vpop.permute.xlu1 %1809 }
0x26e2   :  { %v4870_v49 = vadd.f32 %v1810_v7, %v1802_v26 }
0x26e4   :  { %4060 = vtanh.f32 %v4870_v49 }
0x26ee   :  { %v4061_v63 = vpop.eup %4060 }
0x26ef   :  { %1815 = vrot.lane.b32.xlu1 %v4061_v63, %s4204_s14 }
0x26f3   :  { %772 = vrot.lane.b32.xlu1 %v4546_v1, %s4205_s15 }
0x26f7   :  { %948 = vrot.lane.b32.xlu1 %v4598_v6, %s4205_s15  ;;  %v1920_v6 = vld [vmem:[#allocation2] sm:$0xff] }
0x2761   :  { %v1816_v11 = vpop.permute.xlu1 %1815 }
0x2762   :  { %v1818_v13 = vmul.f32 %v4059_v51, %v1816_v11 }
0x2764   :  { %v4889_v16 = vsel %vm1824_vm15, %v1818_v13, %v4846_v36 }
0x2765   :  { %v773_v38 = vpop.permute.xlu1 %772  ;;  %v1835_v18 = vpack.c.bf16 %v4889_v16, %v4889_v16 }
0x2766   :  { %776 = vst.msk [vmem:[#allocation2 + $0x8] sm:$0xff] %vm207_vm0, %v773_v38 }
0x2767   :  { %1837 = vrot.lane.b32.xlu0 %v1835_v18, %s4205_s15 }
0x2769   :  { %v949_v1 = vpop.permute.xlu1 %948 }
0x276a   :  { %952 = vst.msk [vmem:[#allocation2 + $0x18] sm:$0xff] %vm207_vm0, %v949_v1 }
0x276d   :  { %v1921_v59 = vld [vmem:[#allocation2 + $0x8] sm:$0xff] }
0x276e   :  { %v1935_v19 = vpack.c.bf16 %v1921_v59, %v1920_v6 }
0x2770   :  { %3748 = vmatprep.mubr.msk.bf16.mxu1 %vm207_vm0, %v1935_v19 }
0x2771   :  { %v1923_v25 = vld [vmem:[#allocation2 + $0x18] sm:$0xff] }
0x2772   :  { %v1936_v27 = vpack.c.bf16 %v1923_v25, %v1922_v22 }
0x2774   :  { %3749 = vmatmul.mubr.msk.bf16.vlgmr.msra.gmra.mrb[60].mxu1 %vm207_vm0, %v1936_v27 }
0x2775   :  { %3797 = vmatpush3.bf16.msra.mxu1 %v4900_v29 }
0x2776   :  { %3798 = vmatprep.subr.bf16.mxu1 %v4202_v30 }
0x2779   :  { %3799 = vmatpush3.bf16.msra.mxu1 %v4908_v39 }
0x277a   :  { %3812 = vmatprep.subr.bf16.mxu1 %v4202_v30 }
0x27d9   :  { %v1838_v40 = vpop.permute.xlu0 %1837 }
0x27da   :  { %3741 = vmatmul.mubr.msk.bf16.vlgmr.msra.gmra.mrb[44].mxu0 %vm207_vm0, %v1838_v40 }
0x27db   :  { %3765 = vmatpush3.bf16.msra.mxu0 %v4900_v29  ;;  %3768 = vmatprep.mubr.msk.bf16.mxu0 %vm4203_vm1, %v4202_v30 }
0x27dc   :  { %3766 = vmatprep.subr.bf16.mxu0 %v4202_v30 }
0x27df   :  { %3767 = vmatpush3.bf16.msra.mxu0 %v4908_v39 }
0x27e0   :  { %3772 = vmatprep.subr.bf16.mxu0 %v4202_v30 }
0x27e2   :  { %3769 = vmatmul.mubr.bf16.vlgmr.msra.gmra.mrb[48].mxu0 %v4201_v0 }
0x27e3   :  { %3773 = vmatpush3.bf16.msra.mxu0 %v4900_v29  ;;  %3776 = vmatprep.mubr.msk.bf16.mxu0 %vm4203_vm1, %v4202_v30 }
0x27e4   :  { %3774 = vmatprep.subr.bf16.mxu0 %v4202_v30 }
0x27e7   :  { %3775 = vmatpush3.bf16.msra.mxu0 %v4908_v39 }
0x27e8   :  { %3780 = vmatprep.subr.bf16.mxu0 %v4202_v30 }
0x2847   :  { %v4926_v44 = vpop.f32.mrb[60].mxu1 }
0x2848   :  { %v2026_v57 = vpop.f32.mrb[61].mxu1  ;;  %v2035_v21 = vadd.f32 %v4926_v44, %v4936_v54 }
0x2849   :  { %v4928_v46 = vpop.f32.mrb[62].mxu1  ;;  %v2027_v51 = vadd.f32 %v4936_v54, %v2026_v57 }
0x284a   :  { %v2029_v35 = vpop.f32.mrb[63].mxu1 }
0x284b   :  { %v2030_v40 = vadd.f32 %v4936_v54, %v2029_v35 }
0x28ad   :  { %v1876_v55 = vpop.f32.mrb[44].mxu0 }
0x28ae   :  { %v4931_v48 = vadd.f32 %v1876_v55, %v4506_v61  ;;  %v3742_v50 = vpop.f32.mrb[45].mxu0 }
0x28af   :  { %v1879_v52 = vpop.f32.mrb[46].mxu0 }
0x28b0   :  { %v3743_v3 = vpop.f32.mrb[47].mxu0 }
0x28b5   :  { %v2155_v62 = vpop.f32.mrb[48].mxu0 }
0x28b6   :  { %v2161_v32 = vadd.f32 %v2155_v62, %v2027_v51  ;;  %v3770_v4 = vpop.f32.mrb[49].mxu0 }
0x28b7   :  { %v2158_v5 = vpop.f32.mrb[50].mxu0 }
0x28b8   :  { %4062 = vtanh.f32 %v2161_v32  ;;  %v3771_v26 = vpop.f32.mrb[51].mxu0  ;;  %v3458_v61 = vmul.f32 -1.442695, %v2161_v32 }
0x28ba   :  { %4064 = vpow2.f32 %v3458_v61 }
0x28c2   :  { %v4063_v7 = vpop.eup %4062 }
0x28c3   :  { %2171 = vrot.lane.b32.xlu1 %v4063_v7, %s4204_s14 }
0x28c4   :  { %v4065_v20 = vpop.eup %4064 }
0x28c5   :  { %v2165_v8 = vadd.f32 1.0, %v4065_v20 }
0x28c7   :  { %4066 = vrcp.f32 %v2165_v8 }
0x28d1   :  { %v4067_v63 = vpop.eup %4066 }
0x28d2   :  { %v2169_v38 = vmul.f32 0.0, %v4067_v63 }
0x2935   :  { %v2172_v11 = vpop.permute.xlu1 %2171 }
0x2936   :  { %v2174_v13 = vmul.f32 %v4067_v63, %v2172_v11 }
0x2938   :  { %2176 = vrot.lane.b32.xlu0 %v2174_v13, %s4204_s14 }
0x29aa   :  { %v2177_v18 = vpop.permute.xlu0 %2176 }
0x29ab   :  { %v2179_v1 = vadd.f32 %v2177_v18, %v2169_v38 }
0x29ad   :  { %4068 = vtanh.f32 %v2179_v1  ;;  %v2186_v35 = vsel %vm681_vm4, %v2179_v1, 0.0 }
0x29b7   :  { %v4069_v6 = vpop.eup %4068 }
0x29b8   :  { %2182 = vrot.lane.b32.xlu1 %v4069_v6, %s4204_s14 }
0x2a2a   :  { %v2183_v59 = vpop.permute.xlu1 %2182 }
0x2a2b   :  { %v2185_v19 = vmul.f32 %v4067_v63, %v2183_v59 }
0x2a2d   :  { %v2187_v22 = vsel %vm681_vm4, %v2185_v19, 0.0  ;;  %vm1907_vm4 = vcmp.gt.s32.totalorder %v4831_v47, 14  ;;  %v2038_v47 = vadd.f32 %v4928_v46, %v4936_v54 }
0x2a2e   :  { %v2189_v25 = vpack.c.bf16 %v2187_v22, %v2187_v22 }
0x2a30   :  { %2191 = vrot.lane.b32.xlu0 %v2189_v25, %s4205_s15 }
0x2aa2   :  { %v2192_v27 = vpop.permute.xlu0 %2191 }
0x2aa3   :  { %3777 = vmatmul.mubr.msk.bf16.vlgmr.msra.gmra.mrb[52].mxu0 %vm207_vm0, %v2192_v27 }
0x2aa4   :  { %3781 = vmatpush3.bf16.msra.mxu0 %v4900_v29  ;;  %3784 = vmatprep.mubr.msk.bf16.mxu0 %vm4203_vm1, %v4202_v30 }
0x2aa5   :  { %3782 = vmatprep.subr.bf16.mxu0 %v4202_v30 }
0x2aa8   :  { %3783 = vmatpush3.bf16.msra.mxu0 %v4908_v39 }
0x2aa9   :  { %3788 = vmatprep.subr.bf16.mxu0 %v4202_v30 }
0x2b76   :  { %v2230_v57 = vpop.f32.mrb[52].mxu0 }
0x2b77   :  { %v2236_v55 = vadd.f32 %v2230_v57, %v2030_v40  ;;  %v3778_v50 = vpop.f32.mrb[53].mxu0 }
0x2b78   :  { %v2233_v52 = vpop.f32.mrb[54].mxu0 }
0x2b79   :  { %4070 = vtanh.f32 %v2236_v55  ;;  %v3779_v3 = vpop.f32.mrb[55].mxu0  ;;  %v3460_v62 = vmul.f32 -1.442695, %v2236_v55 }
0x2b7b   :  { %4072 = vpow2.f32 %v3460_v62 }
0x2b83   :  { %v4071_v51 = vpop.eup %4070 }
0x2b84   :  { %2246 = vrot.lane.b32.xlu1 %v4071_v51, %s4204_s14 }
0x2b85   :  { %v4073_v32 = vpop.eup %4072 }
0x2b86   :  { %v2240_v4 = vadd.f32 1.0, %v4073_v32 }
0x2b88   :  { %4074 = vrcp.f32 %v2240_v4 }
0x2b92   :  { %v4075_v5 = vpop.eup %4074 }
0x2b93   :  { %v2244_v61 = vmul.f32 %v4075_v5, %v2186_v35 }
0x2bf6   :  { %v2247_v26 = vpop.permute.xlu1 %2246 }
0x2bf7   :  { %v2249_v7 = vmul.f32 %v4075_v5, %v2247_v26  ;;  %v3435_v26 = vmul.f32 -1.442695, %v4931_v48 }
0x2bf9   :  { %2251 = vrot.lane.b32.xlu0 %v2249_v7, %s4204_s14 }
0x2c6b   :  { %v2252_v20 = vpop.permute.xlu0 %2251 }
0x2c6c   :  { %v2254_v8 = vadd.f32 %v2252_v20, %v2244_v61 }
0x2c6e   :  { %4076 = vtanh.f32 %v2254_v8  ;;  %v4974_v44 = vsel %vm768_vm6, %v2254_v8, %v2186_v35 }
0x2c78   :  { %v4077_v63 = vpop.eup %4076 }
0x2c79   :  { %2257 = vrot.lane.b32.xlu1 %v4077_v63, %s4204_s14 }
0x2ceb   :  { %v2258_v11 = vpop.permute.xlu1 %2257 }
0x2cec   :  { %v2260_v13 = vmul.f32 %v4075_v5, %v2258_v11 }
0x2cee   :  { %v2262_v38 = vsel %vm768_vm6, %v2260_v13, %v2187_v22 }
0x2cef   :  { %v2264_v18 = vpack.c.bf16 %v2262_v38, %v2262_v38 }
0x2cf1   :  { %2266 = vrot.lane.b32.xlu0 %v2264_v18, %s4205_s15 }
0x2d63   :  { %v2267_v6 = vpop.permute.xlu0 %2266 }
0x2d64   :  { %3785 = vmatmul.mubr.msk.bf16.vlgmr.msra.gmra.mrb[56].mxu0 %vm207_vm0, %v2267_v6 }
0x2d65   :  { %3789 = vmatpush3.bf16.msra.mxu0 %v4900_v29  ;;  %3792 = vmatprep.mubr.msk.bf16.mxu0 %vm4203_vm1, %v4202_v30 }
0x2d66   :  { %3790 = vmatprep.subr.bf16.mxu0 %v4202_v30 }
0x2d69   :  { %3791 = vmatpush3.bf16.msra.mxu0 %v4908_v39 }
0x2d6a   :  { %3804 = vmatprep.subr.bf16.mxu0 %v4202_v30 }
0x2e37   :  { %v2305_v1 = vpop.f32.mrb[56].mxu0 }
0x2e38   :  { %v2311_v59 = vadd.f32 %v2305_v1, %v2035_v21  ;;  %v3786_v19 = vpop.f32.mrb[57].mxu0 }
0x2e39   :  { %v2308_v22 = vpop.f32.mrb[58].mxu0 }
0x2e3a   :  { %4078 = vtanh.f32 %v2311_v59  ;;  %v3787_v25 = vpop.f32.mrb[59].mxu0  ;;  %v3462_v40 = vmul.f32 -1.442695, %v2311_v59 }
0x2e3c   :  { %4080 = vpow2.f32 %v3462_v40  ;;  %v1825_v40 = vsel %vm1824_vm15, %v4870_v49, %v4867_v24 }
0x2e44   :  { %v4079_v27 = vpop.eup %4078 }
0x2e45   :  { %2321 = vrot.lane.b32.xlu1 %v4079_v27, %s4204_s14 }
0x2e46   :  { %v4081_v57 = vpop.eup %4080 }
0x2e47   :  { %v2315_v55 = vadd.f32 1.0, %v4081_v57 }
0x2e49   :  { %4082 = vrcp.f32 %v2315_v55 }
0x2e53   :  { %v4083_v50 = vpop.eup %4082 }
0x2e54   :  { %v2319_v51 = vmul.f32 %v4083_v50, %v4974_v44 }
0x2eb7   :  { %v2322_v52 = vpop.permute.xlu1 %2321 }
0x2eb8   :  { %v2324_v3 = vmul.f32 %v4083_v50, %v2322_v52 }
0x2eba   :  { %2326 = vrot.lane.b32.xlu0 %v2324_v3, %s4204_s14 }
0x2f2c   :  { %v2327_v62 = vpop.permute.xlu0 %2326 }
0x2f2d   :  { %v2329_v32 = vadd.f32 %v2327_v62, %v2319_v51 }
0x2f2f   :  { %4084 = vtanh.f32 %v2329_v32  ;;  %v5020_v24 = vsel %vm856_vm8, %v2329_v32, %v4974_v44 }
0x2f30   :  { %4086 = vtanh.f32 %v4931_v48  ;;  %v1908_v48 = vsel %vm1907_vm4, 1, %v4201_v0 }
0x2f31   :  { %4088 = vpow2.f32 %v3435_v26 }
0x2f39   :  { %v4085_v4 = vpop.eup %4084 }
0x2f3a   :  { %2332 = vrot.lane.b32.xlu1 %v4085_v4, %s4204_s14  ;;  %v4087_v5 = vpop.eup %4086 }
0x2f3b   :  { %v4089_v7 = vpop.eup %4088 }
0x2f3c   :  { %v1886_v58 = vadd.f32 1.0, %v4089_v7 }
0x2f3e   :  { %1892 = vrot.lane.b32.xlu1 %v4087_v5, %s4204_s14  ;;  %4090 = vrcp.f32 %v1886_v58 }
0x2f48   :  { %v4091_v8 = vpop.eup %4090 }
0x2f49   :  { %v1890_v46 = vmul.f32 %v4091_v8, %v1825_v40 }
0x2fac   :  { %v2333_v35 = vpop.permute.xlu1 %2332 }
0x2fad   :  { %v2335_v61 = vmul.f32 %v4083_v50, %v2333_v35 }
0x2faf   :  { %v4983_v20 = vsel %vm856_vm8, %v2335_v61, %v2262_v38 }
0x2fb0   :  { %v1893_v63 = vpop.permute.xlu1 %1892  ;;  %v2339_v11 = vpack.c.bf16 %v4983_v20, %v4983_v20 }
0x2fb1   :  { %v1895_v13 = vmul.f32 %v4091_v8, %v1893_v63 }
0x2fb2   :  { %2341 = vrot.lane.b32.xlu0 %v2339_v11, %s4205_s15 }
0x2fb3   :  { %1897 = vrot.lane.b32.xlu1 %v1895_v13, %s4204_s14 }
0x2fb7   :  { %1910 = vperm.xlu1 %3907, %v1908_v48  }
0x3024   :  { %v2342_v18 = vpop.permute.xlu0 %2341 }
0x3025   :  { %3793 = vmatmul.mubr.msk.bf16.vlgmr.msra.gmra.mrb[60].mxu0 %vm207_vm0, %v2342_v18  ;;  %v1898_v57 = vpop.permute.xlu1 %1897 }
0x3026   :  { %3805 = vmatpush3.bf16.msra.mxu0 %v4900_v29  ;;  %3808 = vmatprep.mubr.msk.bf16.mxu0 %vm4203_vm1, %v4202_v30  ;;  %v1900_v55 = vadd.f32 %v1898_v57, %v1890_v46 }
0x3027   :  { %3806 = vmatprep.subr.bf16.mxu0 %v4202_v30 }
0x302a   :  { %3807 = vmatpush3.bf16.msra.mxu0 %v4908_v39 }
0x302b   :  { %3820 = vmatprep.subr.bf16.mxu0 %v4202_v30 }
0x30f8   :  { %v2380_v38 = vpop.f32.mrb[60].mxu0 }
0x30f9   :  { %v2386_v6 = vadd.f32 %v2380_v38, %v2038_v47  ;;  %v3794_v21 = vpop.f32.mrb[61].mxu0 }
0x30fa   :  { %v2383_v1 = vpop.f32.mrb[62].mxu0 }
0x30fb   :  { %4092 = vtanh.f32 %v2386_v6  ;;  %v3795_v59 = vpop.f32.mrb[63].mxu0  ;;  %v3464_v22 = vmul.f32 -1.442695, %v2386_v6 }
0x30fd   :  { %4094 = vpow2.f32 %v3464_v22 }
0x3105   :  { %v4093_v19 = vpop.eup %4092 }
0x3106   :  { %2396 = vrot.lane.b32.xlu0 %v4093_v19, %s4204_s14 }
0x3107   :  { %v4095_v25 = vpop.eup %4094 }
0x3108   :  { %v2390_v27 = vadd.f32 1.0, %v4095_v25 }
0x310a   :  { %4096 = vrcp.f32 %v2390_v27 }
0x310b   :  { %4098 = vtanh.f32 %v1900_v55 }
0x3114   :  { %v4097_v50 = vpop.eup %4096 }
0x3115   :  { %v4099_v51 = vpop.eup %4098  ;;  %v2394_v49 = vmul.f32 %v4097_v50, %v5020_v24 }
0x3178   :  { %v2397_v52 = vpop.permute.xlu0 %2396 }
0x3179   :  { %v2399_v3 = vmul.f32 %v4097_v50, %v2397_v52 }
0x317b   :  { %2401 = vrot.lane.b32.xlu0 %v2399_v3, %s4204_s14 }
0x317f   :  { %1903 = vrot.lane.b32.xlu0 %v4099_v51, %s4204_s14 }
0x3183   :  { %1036 = vrot.lane.b32.xlu0 %v4624_v33, %s4205_s15 }
0x3187   :  { %1212 = vrot.lane.b32.xlu0 %v4676_v43, %s4205_s15  ;;  %v5025_v43 = vpop.permute.xlu1 %1910 }
0x3188   :  { %vm1912_vm6 = vcmp.eq.s32.totalorder %v5025_v43, 1 }
0x318b   :  { %1388 = vrot.lane.b32.xlu0 %v4738_v31, %s4205_s15 }
0x318f   :  { %1564 = vrot.lane.b32.xlu0 %v4790_v14, %s4205_s15 }
0x3193   :  { %1740 = vrot.lane.b32.xlu0 %v4846_v36, %s4205_s15 }
0x31ed   :  { %v2402_v33 = vpop.permute.xlu0 %2401 }
0x31ee   :  { %v5023_v62 = vadd.f32 %v2402_v33, %v2394_v49 }
0x31f0   :  { %4100 = vtanh.f32 %v5023_v62 }
0x31f1   :  { %v1904_v31 = vpop.permute.xlu0 %1903 }
0x31f2   :  { %v1906_v4 = vmul.f32 %v4091_v8, %v1904_v31 }
0x31f4   :  { %v1913_v14 = vsel %vm1912_vm6, %v1906_v4, %v4889_v16 }
0x31f5   :  { %1915 = vrot.lane.b32.xlu0 %v1913_v14, %s4205_s15  ;;  %v1037_v23 = vpop.permute.xlu0 %1036 }
0x31f6   :  { %1040 = vst.msk [vmem:[#allocation2 + $0x20] sm:$0xff] %vm207_vm0, %v1037_v23 }
0x31f9   :  { %v1213_v36 = vpop.permute.xlu0 %1212 }
0x31fa   :  { %v4101_v44 = vpop.eup %4100  ;;  %1216 = vst.msk [vmem:[#allocation2 + $0x30] sm:$0xff] %vm207_vm0, %v1213_v36 }
0x31fb   :  { %2407 = vrot.lane.b32.xlu1 %v4101_v44, %s4204_s14 }
0x31fd   :  { %v1389_v32 = vpop.permute.xlu0 %1388  ;;  %v1924_v61 = vld [vmem:[#allocation2 + $0x20] sm:$0xff] }
0x31fe   :  { %1392 = vst.msk [vmem:[#allocation2 + $0x40] sm:$0xff] %vm207_vm0, %v1389_v32 }
0x31ff   :  { %1124 = vrot.lane.b32.xlu1 %v4650_v12, %s4205_s15 }
0x3201   :  { %v1565_v5 = vpop.permute.xlu0 %1564  ;;  %v1926_v11 = vld [vmem:[#allocation2 + $0x30] sm:$0xff] }
0x3202   :  { %1568 = vst.msk [vmem:[#allocation2 + $0x50] sm:$0xff] %vm207_vm0, %v1565_v5 }
0x3203   :  { %1300 = vrot.lane.b32.xlu1 %v4702_v17, %s4205_s15 }
0x3205   :  { %v1741_v26 = vpop.permute.xlu0 %1740  ;;  %v1928_v47 = vld [vmem:[#allocation2 + $0x40] sm:$0xff] }
0x3206   :  { %1744 = vst.msk [vmem:[#allocation2 + $0x60] sm:$0xff] %vm207_vm0, %v1741_v26 }
0x3207   :  { %1476 = vrot.lane.b32.xlu1 %v4764_v37, %s4205_s15 }
0x3209   :  { %v1930_v21 = vld [vmem:[#allocation2 + $0x50] sm:$0xff] }
0x320b   :  { %1652 = vrot.lane.b32.xlu1 %v4815_v60, %s4205_s15 }
0x320d   :  { %v1932_v19 = vld [vmem:[#allocation2 + $0x60] sm:$0xff] }
0x320f   :  { %1828 = vrot.lane.b32.xlu1 %v4889_v16, %s4205_s15 }
0x3267   :  { %v1916_v7 = vpop.permute.xlu0 %1915 }
0x3268   :  { %1919 = vst.msk [vmem:[#allocation2 + $0x70] sm:$0xff] %vm207_vm0, %v1916_v7 }
0x326d   :  { %v2408_v12 = vpop.permute.xlu1 %2407 }
0x326e   :  { %v2410_v58 = vmul.f32 %v4097_v50, %v2408_v12 }
0x326f   :  { %v1934_v27 = vld [vmem:[#allocation2 + $0x70] sm:$0xff] }
0x3270   :  { %v5053_v17 = vsel %vm944_vm10, %v2410_v58, %v4983_v20  ;;  %v1942_v40 = vpack.c.bf16 %v1934_v27, %v1934_v27 }
0x3271   :  { %v2414_v35 = vpack.c.bf16 %v5053_v17, %v5053_v17  ;;  %v1125_v37 = vpop.permute.xlu1 %1124 }
0x3272   :  { %1128 = vst.msk [vmem:[#allocation2 + $0x28] sm:$0xff] %vm207_vm0, %v1125_v37 }
0x3273   :  { %2416 = vrot.lane.b32.xlu1 %v2414_v35, %s4205_s15 }
0x3275   :  { %v1301_v60 = vpop.permute.xlu1 %1300 }
0x3276   :  { %1304 = vst.msk [vmem:[#allocation2 + $0x38] sm:$0xff] %vm207_vm0, %v1301_v60 }
0x3279   :  { %v1477_v16 = vpop.permute.xlu1 %1476  ;;  %v1925_v8 = vld [vmem:[#allocation2 + $0x28] sm:$0xff] }
0x327a   :  { %1480 = vst.msk [vmem:[#allocation2 + $0x48] sm:$0xff] %vm207_vm0, %v1477_v16  ;;  %v1937_v63 = vpack.c.bf16 %v1925_v8, %v1924_v61  ;;  %v2411_v8 = vsel %vm944_vm10, %v5023_v62, %v5020_v24 }
0x327c   :  { %3752 = vmatprep.mubr.msk.bf16.mxu1 %vm207_vm0, %v1937_v63 }
0x327d   :  { %v1653_v20 = vpop.permute.xlu1 %1652  ;;  %v1927_v13 = vld [vmem:[#allocation2 + $0x38] sm:$0xff] }
0x327e   :  { %1656 = vst.msk [vmem:[#allocation2 + $0x58] sm:$0xff] %vm207_vm0, %v1653_v20  ;;  %v1938_v48 = vpack.c.bf16 %v1927_v13, %v1926_v11 }
0x3280   :  { %3753 = vmatmul.mubr.msk.bf16.gmra.mrb[64].mxu1 %vm207_vm0, %v1938_v48 }
0x3281   :  { %v1829_v18 = vpop.permute.xlu1 %1828  ;;  %v1929_v38 = vld [vmem:[#allocation2 + $0x48] sm:$0xff] }
0x3282   :  { %1832 = vst.msk [vmem:[#allocation2 + $0x68] sm:$0xff] %vm207_vm0, %v1829_v18  ;;  %v1939_v6 = vpack.c.bf16 %v1929_v38, %v1928_v47 }
0x3284   :  { %3756 = vmatprep.mubr.msk.bf16.mxu1 %vm207_vm0, %v1939_v6 }
0x3285   :  { %v1931_v1 = vld [vmem:[#allocation2 + $0x58] sm:$0xff] }
0x3286   :  { %v1940_v59 = vpack.c.bf16 %v1931_v1, %v1930_v21 }
0x3288   :  { %3757 = vmatmul.mubr.msk.bf16.gmra.mrb[68].mxu1 %vm207_vm0, %v1940_v59 }
0x3289   :  { %v1933_v22 = vld [vmem:[#allocation2 + $0x68] sm:$0xff] }
0x328a   :  { %v1941_v25 = vpack.c.bf16 %v1933_v22, %v1932_v19 }
0x328c   :  { %3760 = vmatprep.mubr.msk.bf16.mxu1 %vm207_vm0, %v1941_v25 }
0x3290   :  { %3761 = vmatmul.mubr.msk.bf16.gmra.mrb[72].mxu1 %vm207_vm0, %v1942_v40 }
0x3291   :  { %3800 = vmatprep.mubr.msk.bf16.mxu1 %vm4203_vm1, %v4202_v30 }
0x32e5   :  { %v2417_v57 = vpop.permute.xlu1 %2416 }
0x32e6   :  { %3801 = vmatmul.mubr.msk.bf16.vlgmr.msra.gmra.mrb[76].mxu1 %vm207_vm0, %v2417_v57 }
0x32e7   :  { %3813 = vmatpush3.bf16.msra.mxu1 %v4900_v29  ;;  %3816 = vmatprep.mubr.msk.bf16.mxu1 %vm4203_vm1, %v4202_v30 }
0x32e8   :  { %3814 = vmatprep.subr.bf16.mxu1 %v4202_v30 }
0x32eb   :  { %3815 = vmatpush3.bf16.msra.mxu1 %v4908_v39 }
0x32ec   :  { %3828 = vmatprep.subr.bf16.mxu1 %v4202_v30 }
0x3353   :  { %v5078_v46 = vpop.f32.mrb[64].mxu1 }
0x3354   :  { %v2042_v55 = vpop.f32.mrb[65].mxu1  ;;  %v2051_v28 = vadd.f32 %v5078_v46, %v4936_v54 }
0x3355   :  { %v5080_v50 = vpop.f32.mrb[66].mxu1  ;;  %v2043_v36 = vadd.f32 %v4936_v54, %v2042_v55 }
0x3356   :  { %v2045_v52 = vpop.f32.mrb[67].mxu1  ;;  %v2054_v9 = vadd.f32 %v5080_v50, %v4936_v54 }
0x3357   :  { %v2046_v2 = vadd.f32 %v4936_v54, %v2045_v52 }
0x335b   :  { %v5082_v3 = vpop.f32.mrb[68].mxu1 }
0x335c   :  { %v5084_v51 = vpop.f32.mrb[69].mxu1  ;;  %v2067_v56 = vadd.f32 %v5082_v3, %v4936_v54 }
0x335d   :  { %v5086_v49 = vpop.f32.mrb[70].mxu1  ;;  %v2059_v42 = vadd.f32 %v4936_v54, %v5084_v51 }
0x335e   :  { %v5088_v33 = vpop.f32.mrb[71].mxu1 }
0x335f   :  { %v2062_v15 = vadd.f32 %v4936_v54, %v5088_v33 }
0x3363   :  { %v5090_v31 = vpop.f32.mrb[72].mxu1 }
0x3364   :  { %v5092_v4 = vpop.f32.mrb[73].mxu1 }
0x3365   :  { %v3763_v14 = vpop.f32.mrb[74].mxu1 }
0x3366   :  { %v5094_v23 = vpop.f32.mrb[75].mxu1 }
0x3367   :  { %v2078_v41 = vadd.f32 %v5236_v10, %v5094_v23 }
0x33b9   :  { %v2455_v44 = vpop.f32.mrb[76].mxu1 }
0x33ba   :  { %v2461_v32 = vadd.f32 %v2455_v44, %v2043_v36  ;;  %v3802_v5 = vpop.f32.mrb[77].mxu1 }
0x33bb   :  { %v2458_v26 = vpop.f32.mrb[78].mxu1 }
0x33bc   :  { %4102 = vtanh.f32 %v2461_v32  ;;  %v3803_v7 = vpop.f32.mrb[79].mxu1  ;;  %v3466_v58 = vmul.f32 -1.442695, %v2461_v32 }
0x33be   :  { %4104 = vpow2.f32 %v3466_v58 }
0x33c6   :  { %v4103_v12 = vpop.eup %4102 }
0x33c7   :  { %2471 = vrot.lane.b32.xlu0 %v4103_v12, %s4204_s14 }
0x33c8   :  { %v4105_v35 = vpop.eup %4104 }
0x33c9   :  { %v2465_v37 = vadd.f32 1.0, %v4105_v35 }
0x33cb   :  { %4106 = vrcp.f32 %v2465_v37 }
0x33d5   :  { %v4107_v60 = vpop.eup %4106 }
0x33d6   :  { %v2469_v63 = vmul.f32 %v4107_v60, %v2411_v8 }
0x3439   :  { %v2472_v16 = vpop.permute.xlu0 %2471 }
0x343a   :  { %v2474_v61 = vmul.f32 %v4107_v60, %v2472_v16 }
0x343c   :  { %2476 = vrot.lane.b32.xlu1 %v2474_v61, %s4204_s14 }
0x34ae   :  { %v2477_v20 = vpop.permute.xlu1 %2476 }
0x34af   :  { %v2479_v11 = vadd.f32 %v2477_v20, %v2469_v63 }
0x34b1   :  { %4108 = vtanh.f32 %v2479_v11  ;;  %v2486_v55 = vsel %vm1032_vm12, %v2479_v11, %v2411_v8 }
0x34bb   :  { %v4109_v13 = vpop.eup %4108 }
0x34bc   :  { %2482 = vrot.lane.b32.xlu0 %v4109_v13, %s4204_s14 }
0x352e   :  { %v2483_v48 = vpop.permute.xlu0 %2482 }
0x352f   :  { %v2485_v18 = vmul.f32 %v4107_v60, %v2483_v48 }
0x3531   :  { %v2487_v47 = vsel %vm1032_vm12, %v2485_v18, %v5053_v17 }
0x3532   :  { %v2489_v38 = vpack.c.bf16 %v2487_v47, %v2487_v47 }
0x3534   :  { %2491 = vrot.lane.b32.xlu1 %v2489_v38, %s4205_s15 }
0x35a6   :  { %v2492_v6 = vpop.permute.xlu1 %2491 }
0x35a7   :  { %3809 = vmatmul.mubr.msk.bf16.vlgmr.msra.gmra.mrb[64].mxu0 %vm207_vm0, %v2492_v6 }
0x35a8   :  { %3821 = vmatpush3.bf16.msra.mxu0 %v4900_v29  ;;  %3824 = vmatprep.mubr.msk.bf16.mxu0 %vm4203_vm1, %v4202_v30 }
0x35a9   :  { %3822 = vmatprep.subr.bf16.mxu0 %v4202_v30 }
0x35ac   :  { %3823 = vmatpush3.bf16.msra.mxu0 %v4908_v39 }
0x35ad   :  { %3836 = vmatprep.subr.bf16.mxu0 %v4202_v30 }
0x367a   :  { %v2530_v24 = vpop.f32.mrb[64].mxu0 }
0x367b   :  { %v2536_v62 = vadd.f32 %v2530_v24, %v2046_v2  ;;  %v3810_v17 = vpop.f32.mrb[65].mxu0 }
0x367c   :  { %v2533_v21 = vpop.f32.mrb[66].mxu0 }
0x367d   :  { %4110 = vtanh.f32 %v2536_v62  ;;  %v3811_v1 = vpop.f32.mrb[67].mxu0  ;;  %v3468_v19 = vmul.f32 -1.442695, %v2536_v62 }
0x367f   :  { %4112 = vpow2.f32 %v3468_v19 }
0x3687   :  { %v4111_v59 = vpop.eup %4110 }
0x3688   :  { %2546 = vrot.lane.b32.xlu0 %v4111_v59, %s4204_s14 }
0x3689   :  { %v4113_v22 = vpop.eup %4112 }
0x368a   :  { %v2540_v25 = vadd.f32 1.0, %v4113_v22 }
0x368c   :  { %4114 = vrcp.f32 %v2540_v25 }
0x3696   :  { %v4115_v27 = vpop.eup %4114 }
0x3697   :  { %v2544_v52 = vmul.f32 %v4115_v27, %v2486_v55 }
0x36fa   :  { %v2547_v40 = vpop.permute.xlu0 %2546 }
0x36fb   :  { %v2549_v57 = vmul.f32 %v4115_v27, %v2547_v40 }
0x36fd   :  { %2551 = vrot.lane.b32.xlu1 %v2549_v57, %s4204_s14 }
0x376f   :  { %v2552_v14 = vpop.permute.xlu1 %2551 }
0x3770   :  { %v2554_v36 = vadd.f32 %v2552_v14, %v2544_v52 }
0x3772   :  { %4116 = vtanh.f32 %v2554_v36  ;;  %v2561_v46 = vsel %vm1120_vm14, %v2554_v36, %v2486_v55 }
0x377c   :  { %v4117_v44 = vpop.eup %4116 }
0x377d   :  { %2557 = vrot.lane.b32.xlu0 %v4117_v44, %s4204_s14 }
0x37ef   :  { %v2558_v32 = vpop.permute.xlu0 %2557 }
0x37f0   :  { %v2560_v5 = vmul.f32 %v4115_v27, %v2558_v32 }
0x37f2   :  { %v2562_v26 = vsel %vm1120_vm14, %v2560_v5, %v2487_v47 }
0x37f3   :  { %v2564_v7 = vpack.c.bf16 %v2562_v26, %v2562_v26 }
0x37f5   :  { %2566 = vrot.lane.b32.xlu1 %v2564_v7, %s4205_s15 }
0x3867   :  { %v2567_v12 = vpop.permute.xlu1 %2566 }
0x3868   :  { %3817 = vmatmul.mubr.msk.bf16.vlgmr.msra.gmra.mrb[80].mxu1 %vm207_vm0, %v2567_v12 }
0x3869   :  { %3829 = vmatpush3.bf16.msra.mxu1 %v4900_v29  ;;  %3832 = vmatprep.mubr.msk.bf16.mxu1 %vm4203_vm1, %v4202_v30 }
0x386a   :  { %3830 = vmatprep.subr.bf16.mxu1 %v4202_v30 }
0x386d   :  { %3831 = vmatpush3.bf16.msra.mxu1 %v4908_v39 }
0x386e   :  { %3844 = vmatprep.subr.bf16.mxu1 %v4202_v30 }
0x393b   :  { %v2605_v58 = vpop.f32.mrb[80].mxu1 }
0x393c   :  { %v2611_v35 = vadd.f32 %v2605_v58, %v2051_v28  ;;  %v3818_v37 = vpop.f32.mrb[81].mxu1 }
0x393d   :  { %v2608_v60 = vpop.f32.mrb[82].mxu1 }
0x393e   :  { %4118 = vtanh.f32 %v2611_v35  ;;  %v3819_v16 = vpop.f32.mrb[83].mxu1  ;;  %v3470_v8 = vmul.f32 -1.442695, %v2611_v35 }
0x3940   :  { %4120 = vpow2.f32 %v3470_v8 }
0x3948   :  { %v4119_v61 = vpop.eup %4118 }
0x3949   :  { %2621 = vrot.lane.b32.xlu0 %v4119_v61, %s4204_s14 }
0x394a   :  { %v4121_v63 = vpop.eup %4120 }
0x394b   :  { %v2615_v20 = vadd.f32 1.0, %v4121_v63 }
0x394d   :  { %4122 = vrcp.f32 %v2615_v20 }
0x3957   :  { %v4123_v11 = vpop.eup %4122 }
0x3958   :  { %v2619_v18 = vmul.f32 %v4123_v11, %v2561_v46 }
0x39bb   :  { %v2622_v13 = vpop.permute.xlu0 %2621 }
0x39bc   :  { %v2624_v48 = vmul.f32 %v4123_v11, %v2622_v13 }
0x39be   :  { %2626 = vrot.lane.b32.xlu1 %v2624_v48, %s4204_s14 }
0x3a30   :  { %v2627_v47 = vpop.permute.xlu1 %2626 }
0x3a31   :  { %v2629_v38 = vadd.f32 %v2627_v47, %v2619_v18 }
0x3a33   :  { %4124 = vtanh.f32 %v2629_v38  ;;  %v2636_v50 = vsel %vm1208_vm2, %v2629_v38, %v2561_v46 }
0x3a3d   :  { %v4125_v6 = vpop.eup %4124 }
0x3a3e   :  { %2632 = vrot.lane.b32.xlu0 %v4125_v6, %s4204_s14 }
0x3ab0   :  { %v2633_v2 = vpop.permute.xlu0 %2632 }
0x3ab1   :  { %v2635_v24 = vmul.f32 %v4123_v11, %v2633_v2 }
0x3ab3   :  { %v2637_v62 = vsel %vm1208_vm2, %v2635_v24, %v2562_v26 }
0x3ab4   :  { %v2639_v17 = vpack.c.bf16 %v2637_v62, %v2637_v62 }
0x3ab6   :  { %2641 = vrot.lane.b32.xlu1 %v2639_v17, %s4205_s15 }
0x3b28   :  { %v2642_v21 = vpop.permute.xlu1 %2641 }
0x3b29   :  { %3825 = vmatmul.mubr.msk.bf16.vlgmr.msra.gmra.mrb[68].mxu0 %vm207_vm0, %v2642_v21 }
0x3b2a   :  { %3837 = vmatpush3.bf16.msra.mxu0 %v4900_v29  ;;  %3840 = vmatprep.mubr.msk.bf16.mxu0 %vm4203_vm1, %v4202_v30 }
0x3b2b   :  { %3838 = vmatprep.subr.bf16.mxu0 %v4202_v30 }
0x3b2e   :  { %3839 = vmatpush3.bf16.msra.mxu0 %v4908_v39 }
0x3b2f   :  { %3852 = vmatprep.subr.bf16.mxu0 %v4202_v30 }
0x3bfc   :  { %v2680_v1 = vpop.f32.mrb[68].mxu0 }
0x3bfd   :  { %v2686_v59 = vadd.f32 %v2680_v1, %v2054_v9  ;;  %v3826_v19 = vpop.f32.mrb[69].mxu0 }
0x3bfe   :  { %v2683_v22 = vpop.f32.mrb[70].mxu0 }
0x3bff   :  { %4126 = vtanh.f32 %v2686_v59  ;;  %v3827_v25 = vpop.f32.mrb[71].mxu0  ;;  %v3472_v40 = vmul.f32 -1.442695, %v2686_v59 }
0x3c01   :  { %4128 = vpow2.f32 %v3472_v40 }
0x3c09   :  { %v4127_v27 = vpop.eup %4126 }
0x3c0a   :  { %2696 = vrot.lane.b32.xlu0 %v4127_v27, %s4204_s14 }
0x3c0b   :  { %v4129_v57 = vpop.eup %4128 }
0x3c0c   :  { %v2690_v55 = vadd.f32 1.0, %v4129_v57 }
0x3c0e   :  { %4130 = vrcp.f32 %v2690_v55 }
0x3c18   :  { %v4131_v52 = vpop.eup %4130 }
0x3c19   :  { %v2694_v44 = vmul.f32 %v4131_v52, %v2636_v50 }
0x3c7c   :  { %v2697_v14 = vpop.permute.xlu0 %2696 }
0x3c7d   :  { %v2699_v36 = vmul.f32 %v4131_v52, %v2697_v14 }
0x3c7f   :  { %2701 = vrot.lane.b32.xlu1 %v2699_v36, %s4204_s14 }
0x3cf1   :  { %v2702_v32 = vpop.permute.xlu1 %2701 }
0x3cf2   :  { %v2704_v5 = vadd.f32 %v2702_v32, %v2694_v44 }
0x3cf4   :  { %4132 = vtanh.f32 %v2704_v5  ;;  %v2711_v51 = vsel %vm1296_vm5, %v2704_v5, %v2636_v50 }
0x3cfe   :  { %v4133_v26 = vpop.eup %4132 }
0x3cff   :  { %2707 = vrot.lane.b32.xlu0 %v4133_v26, %s4204_s14 }
0x3d71   :  { %v2708_v7 = vpop.permute.xlu0 %2707 }
0x3d72   :  { %v2710_v12 = vmul.f32 %v4131_v52, %v2708_v7 }
0x3d74   :  { %v2712_v28 = vsel %vm1296_vm5, %v2710_v12, %v2637_v62  ;;  %vm3341_vm5 = vcmask 31744  }
0x3d75   :  { %v2714_v58 = vpack.c.bf16 %v2712_v28, %v2712_v28 }
0x3d77   :  { %2716 = vrot.lane.b32.xlu1 %v2714_v58, %s4205_s15 }
0x3de9   :  { %v2717_v35 = vpop.permute.xlu1 %2716 }
0x3dea   :  { %3833 = vmatmul.mubr.msk.bf16.vlgmr.msra.gmra.mrb[84].mxu1 %vm207_vm0, %v2717_v35 }
0x3deb   :  { %3845 = vmatpush3.bf16.msra.mxu1 %v4900_v29  ;;  %3848 = vmatprep.mubr.msk.bf16.mxu1 %vm4203_vm1, %v4202_v30 }
0x3dec   :  { %3846 = vmatprep.subr.bf16.mxu1 %v4202_v30 }
0x3def   :  { %3847 = vmatpush3.bf16.msra.mxu1 %v4908_v39 }
0x3df0   :  { %3860 = vmatprep.subr.bf16.mxu1 %v4202_v30 }
0x3ebd   :  { %v2755_v37 = vpop.f32.mrb[84].mxu1 }
0x3ebe   :  { %v2761_v60 = vadd.f32 %v2755_v37, %v2059_v42  ;;  %v3834_v16 = vpop.f32.mrb[85].mxu1 }
0x3ebf   :  { %v2758_v61 = vpop.f32.mrb[86].mxu1 }
0x3ec0   :  { %4134 = vtanh.f32 %v2761_v60  ;;  %v3835_v8 = vpop.f32.mrb[87].mxu1  ;;  %v3474_v20 = vmul.f32 -1.442695, %v2761_v60 }
0x3ec2   :  { %4136 = vpow2.f32 %v3474_v20 }
0x3eca   :  { %v4135_v63 = vpop.eup %4134 }
0x3ecb   :  { %2771 = vrot.lane.b32.xlu0 %v4135_v63, %s4204_s14 }
0x3ecc   :  { %v4137_v11 = vpop.eup %4136 }
0x3ecd   :  { %v2765_v13 = vadd.f32 1.0, %v4137_v11 }
0x3ecf   :  { %4138 = vrcp.f32 %v2765_v13 }
0x3ed9   :  { %v4139_v48 = vpop.eup %4138 }
0x3eda   :  { %v2769_v47 = vmul.f32 %v4139_v48, %v2711_v51 }
0x3f3d   :  { %v2772_v46 = vpop.permute.xlu0 %2771 }
0x3f3e   :  { %v2774_v18 = vmul.f32 %v4139_v48, %v2772_v46 }
0x3f40   :  { %2776 = vrot.lane.b32.xlu1 %v2774_v18, %s4204_s14 }
0x3fb2   :  { %v2777_v38 = vpop.permute.xlu1 %2776 }
0x3fb3   :  { %v2779_v6 = vadd.f32 %v2777_v38, %v2769_v47 }
0x3fb5   :  { %4140 = vtanh.f32 %v2779_v6  ;;  %v2786_v33 = vsel %vm1384_vm9, %v2779_v6, %v2711_v51 }
0x3fbf   :  { %v4141_v2 = vpop.eup %4140 }
0x3fc0   :  { %2782 = vrot.lane.b32.xlu0 %v4141_v2, %s4204_s14 }
0x4032   :  { %v2783_v24 = vpop.permute.xlu0 %2782 }
0x4033   :  { %v2785_v62 = vmul.f32 %v4139_v48, %v2783_v24  ;;  %v4198_v24 = vld [vmem:[%s5301_s6 + $0x18] sm:$0xff]  }
0x4035   :  { %v2787_v17 = vsel %vm1384_vm9, %v2785_v62, %v2712_v28  ;;  %v2070_v62 = vadd.f32 %v5086_v49, %v4936_v54 }
0x4036   :  { %v2789_v21 = vpack.c.bf16 %v2787_v17, %v2787_v17 }
0x4038   :  { %2791 = vrot.lane.b32.xlu1 %v2789_v21, %s4205_s15 }
0x40aa   :  { %v2792_v9 = vpop.permute.xlu1 %2791 }
0x40ab   :  { %3841 = vmatmul.mubr.msk.bf16.vlgmr.msra.gmra.mrb[72].mxu0 %vm207_vm0, %v2792_v9 }
0x40ac   :  { %3853 = vmatpush3.bf16.msra.mxu0 %v4900_v29  ;;  %3856 = vmatprep.mubr.msk.bf16.mxu0 %vm4203_vm1, %v4202_v30 }
0x40ad   :  { %3854 = vmatprep.subr.bf16.mxu0 %v4202_v30 }
0x40b0   :  { %3855 = vmatpush3.bf16.msra.mxu0 %v4908_v39 }
0x40b1   :  { %3868 = vmatprep.subr.bf16.mxu0 %v4202_v30 }
0x417e   :  { %v2830_v1 = vpop.f32.mrb[72].mxu0 }
0x417f   :  { %v2836_v59 = vadd.f32 %v2830_v1, %v2062_v15  ;;  %v3842_v19 = vpop.f32.mrb[73].mxu0 }
0x4180   :  { %v2833_v22 = vpop.f32.mrb[74].mxu0 }
0x4181   :  { %4142 = vtanh.f32 %v2836_v59  ;;  %v3843_v25 = vpop.f32.mrb[75].mxu0  ;;  %v3476_v40 = vmul.f32 -1.442695, %v2836_v59 }
0x4183   :  { %4144 = vpow2.f32 %v3476_v40 }
0x418b   :  { %v4143_v27 = vpop.eup %4142 }
0x418c   :  { %2846 = vrot.lane.b32.xlu0 %v4143_v27, %s4204_s14 }
0x418d   :  { %v4145_v57 = vpop.eup %4144 }
0x418e   :  { %v2840_v55 = vadd.f32 1.0, %v4145_v57 }
0x4190   :  { %4146 = vrcp.f32 %v2840_v55 }
0x419a   :  { %v4147_v52 = vpop.eup %4146 }
0x419b   :  { %v2844_v50 = vmul.f32 %v4147_v52, %v2786_v33 }
0x41fe   :  { %v2847_v14 = vpop.permute.xlu0 %2846 }
0x41ff   :  { %v2849_v36 = vmul.f32 %v4147_v52, %v2847_v14 }
0x4201   :  { %2851 = vrot.lane.b32.xlu1 %v2849_v36, %s4204_s14 }
0x4273   :  { %v2852_v44 = vpop.permute.xlu1 %2851 }
0x4274   :  { %v2854_v32 = vadd.f32 %v2852_v44, %v2844_v50 }
0x4276   :  { %4148 = vtanh.f32 %v2854_v32  ;;  %v2861_v3 = vsel %vm1472_vm13, %v2854_v32, %v2786_v33 }
0x4280   :  { %v4149_v5 = vpop.eup %4148 }
0x4281   :  { %2857 = vrot.lane.b32.xlu0 %v4149_v5, %s4204_s14  ;;  %v2075_v5 = vadd.f32 %v5236_v10, %v5092_v4 }
0x42f3   :  { %v2858_v26 = vpop.permute.xlu0 %2857 }
0x42f4   :  { %v2860_v7 = vmul.f32 %v4147_v52, %v2858_v26 }
0x42f6   :  { %v2862_v12 = vsel %vm1472_vm13, %v2860_v7, %v2787_v17 }
0x42f7   :  { %v2864_v28 = vpack.c.bf16 %v2862_v12, %v2862_v12 }
0x42f9   :  { %2866 = vrot.lane.b32.xlu1 %v2864_v28, %s4205_s15 }
0x436b   :  { %v2867_v58 = vpop.permute.xlu1 %2866 }
0x436c   :  { %3849 = vmatmul.mubr.msk.bf16.vlgmr.msra.gmra.mrb[88].mxu1 %vm207_vm0, %v2867_v58 }
0x436d   :  { %3861 = vmatpush3.bf16.msra.mxu1 %v4900_v29  ;;  %3864 = vmatprep.mubr.msk.bf16.mxu1 %vm4203_vm1, %v4202_v30 }
0x436e   :  { %3862 = vmatprep.subr.bf16.mxu1 %v4202_v30 }
0x4371   :  { %3863 = vmatpush3.bf16.msra.mxu1 %v4908_v39 }
0x4372   :  { %3876 = vmatprep.subr.bf16.mxu1 %v4202_v30 }
0x443f   :  { %v2905_v35 = vpop.f32.mrb[88].mxu1 }
0x4440   :  { %v2911_v42 = vadd.f32 %v2905_v35, %v2067_v56  ;;  %v3850_v37 = vpop.f32.mrb[89].mxu1 }
0x4441   :  { %v2908_v60 = vpop.f32.mrb[90].mxu1 }
0x4442   :  { %4150 = vtanh.f32 %v2911_v42  ;;  %v3851_v16 = vpop.f32.mrb[91].mxu1  ;;  %v3478_v29 = vmul.f32 -1.442695, %v2911_v42 }
0x4444   :  { %4152 = vpow2.f32 %v3478_v29 }
0x444c   :  { %v4151_v61 = vpop.eup %4150 }
0x444d   :  { %2921 = vrot.lane.b32.xlu0 %v4151_v61, %s4204_s14 }
0x444e   :  { %v4153_v8 = vpop.eup %4152 }
0x444f   :  { %v2915_v63 = vadd.f32 1.0, %v4153_v8 }
0x4451   :  { %4154 = vrcp.f32 %v2915_v63 }
0x445b   :  { %v4155_v39 = vpop.eup %4154 }
0x445c   :  { %v2919_v13 = vmul.f32 %v4155_v39, %v2861_v3 }
0x44bf   :  { %v2922_v20 = vpop.permute.xlu0 %2921 }
0x44c0   :  { %v2924_v11 = vmul.f32 %v4155_v39, %v2922_v20 }
0x44c2   :  { %2926 = vrot.lane.b32.xlu1 %v2924_v11, %s4204_s14 }
0x4534   :  { %v2927_v48 = vpop.permute.xlu1 %2926 }
0x4535   :  { %v2929_v46 = vadd.f32 %v2927_v48, %v2919_v13 }
0x4537   :  { %4156 = vtanh.f32 %v2929_v46  ;;  %v2936_v54 = vsel %vm1560_vm3, %v2929_v46, %v2861_v3 }
0x4541   :  { %v4157_v18 = vpop.eup %4156 }
0x4542   :  { %2932 = vrot.lane.b32.xlu0 %v4157_v18, %s4204_s14 }
0x45b4   :  { %v2933_v51 = vpop.permute.xlu0 %2932 }
0x45b5   :  { %v2935_v47 = vmul.f32 %v4155_v39, %v2933_v51 }
0x45b7   :  { %v2937_v38 = vsel %vm1560_vm3, %v2935_v47, %v2862_v12 }
0x45b8   :  { %v2939_v6 = vpack.c.bf16 %v2937_v38, %v2937_v38 }
0x45ba   :  { %2941 = vrot.lane.b32.xlu1 %v2939_v6, %s4205_s15 }
0x462c   :  { %v2942_v2 = vpop.permute.xlu1 %2941 }
0x462d   :  { %3857 = vmatmul.mubr.msk.bf16.vlgmr.msra.gmra.mrb[76].mxu0 %vm207_vm0, %v2942_v2 }
0x462e   :  { %3869 = vmatpush3.bf16.msra.mxu0 %v4197_v45  ;;  %3872 = vmatprep.mubr.msk.bf16.mxu0 %vm4203_vm1, %v4202_v30 }
0x462f   :  { %3870 = vmatprep.subr.bf16.mxu0 %v4202_v30 }
0x4632   :  { %3871 = vmatpush3.bf16.msra.mxu0 %v4198_v24 }
0x4700   :  { %v2980_v17 = vpop.f32.mrb[76].mxu0 }
0x4701   :  { %v2986_v21 = vadd.f32 %v2980_v17, %v2070_v62  ;;  %v3858_v9 = vpop.f32.mrb[77].mxu0 }
0x4702   :  { %v2983_v15 = vpop.f32.mrb[78].mxu0 }
0x4703   :  { %4158 = vtanh.f32 %v2986_v21  ;;  %v3859_v1 = vpop.f32.mrb[79].mxu0  ;;  %v3480_v19 = vmul.f32 -1.442695, %v2986_v21 }
0x4705   :  { %4160 = vpow2.f32 %v3480_v19 }
0x470d   :  { %v4159_v59 = vpop.eup %4158 }
0x470e   :  { %2996 = vrot.lane.b32.xlu0 %v4159_v59, %s4204_s14 }
0x470f   :  { %v4161_v22 = vpop.eup %4160 }
0x4710   :  { %v2990_v25 = vadd.f32 1.0, %v4161_v22 }
0x4712   :  { %4162 = vrcp.f32 %v2990_v25 }
0x471c   :  { %v4163_v27 = vpop.eup %4162 }
0x471d   :  { %v2994_v49 = vmul.f32 %v4163_v27, %v2936_v54 }
0x4780   :  { %v2997_v40 = vpop.permute.xlu0 %2996 }
0x4781   :  { %v2999_v57 = vmul.f32 %v4163_v27, %v2997_v40 }
0x4783   :  { %3001 = vrot.lane.b32.xlu1 %v2999_v57, %s4204_s14 }
0x47f5   :  { %v3002_v55 = vpop.permute.xlu1 %3001 }
0x47f6   :  { %v3004_v52 = vadd.f32 %v3002_v55, %v2994_v49  ;;  %v2083_v55 = vadd.f32 %v5236_v10, %v5090_v31 }
0x47f8   :  { %4164 = vtanh.f32 %v3004_v52  ;;  %v3011_v4 = vsel %vm1648_vm11, %v3004_v52, %v2936_v54 }
0x4802   :  { %v4165_v14 = vpop.eup %4164 }
0x4803   :  { %3007 = vrot.lane.b32.xlu0 %v4165_v14, %s4204_s14 }
0x4875   :  { %v3008_v36 = vpop.permute.xlu0 %3007 }
0x4876   :  { %v3010_v33 = vmul.f32 %v4163_v27, %v3008_v36 }
0x4878   :  { %v3012_v50 = vsel %vm1648_vm11, %v3010_v33, %v2937_v38 }
0x4879   :  { %v3014_v44 = vpack.c.bf16 %v3012_v50, %v3012_v50 }
0x487b   :  { %3016 = vrot.lane.b32.xlu1 %v3014_v44, %s4205_s15 }
0x48ed   :  { %v3017_v32 = vpop.permute.xlu1 %3016 }
0x48ee   :  { %3865 = vmatmul.mubr.msk.bf16.vlgmr.msra.gmra.mrb[92].mxu1 %vm207_vm0, %v3017_v32 }
0x48ef   :  { %3877 = vmatpush3.bf16.msra.mxu1 %v4197_v45  ;;  %3880 = vmatprep.mubr.msk.bf16.mxu1 %vm4203_vm1, %v4202_v30 }
0x48f0   :  { %3878 = vmatprep.subr.bf16.mxu1 %v4202_v30 }
0x48f3   :  { %3879 = vmatpush3.bf16.msra.mxu1 %v4198_v24 }
0x49c1   :  { %v3055_v26 = vpop.f32.mrb[92].mxu1 }
0x49c2   :  { %v3061_v7 = vadd.f32 %v3055_v26, %v2075_v5  ;;  %v3866_v12 = vpop.f32.mrb[93].mxu1 }
0x49c3   :  { %v3058_v28 = vpop.f32.mrb[94].mxu1 }
0x49c4   :  { %4166 = vtanh.f32 %v3061_v7  ;;  %v3867_v58 = vpop.f32.mrb[95].mxu1  ;;  %v3482_v35 = vmul.f32 -1.442695, %v3061_v7 }
0x49c6   :  { %4168 = vpow2.f32 %v3482_v35 }
0x49ce   :  { %v4167_v56 = vpop.eup %4166 }
0x49cf   :  { %3071 = vrot.lane.b32.xlu0 %v4167_v56, %s4204_s14 }
0x49d0   :  { %v4169_v42 = vpop.eup %4168 }
0x49d1   :  { %v3065_v37 = vadd.f32 1.0, %v4169_v42 }
0x49d3   :  { %4170 = vrcp.f32 %v3065_v37 }
0x49dd   :  { %v4171_v60 = vpop.eup %4170 }
0x49de   :  { %v3069_v29 = vmul.f32 %v4171_v60, %v3011_v4 }
0x4a41   :  { %v3072_v16 = vpop.permute.xlu0 %3071 }
0x4a42   :  { %v3074_v61 = vmul.f32 %v4171_v60, %v3072_v16  ;;  %v4206_v16 = vmov 0.0|0.0  }
0x4a43   :  { %3895 = vmatprep.subr.bf16.mxu0 %v4206_v16 }
0x4a44   :  { %3076 = vrot.lane.b32.xlu1 %v3074_v61, %s4204_s14  ;;  %v3256_v61 = vld [vmem:[%s5306_s8 + $0x8] sm:$0xff] }
0x4ab6   :  { %v3077_v8 = vpop.permute.xlu1 %3076 }
0x4ab7   :  { %v3079_v63 = vadd.f32 %v3077_v8, %v3069_v29  ;;  %v3258_v29 = vld [vmem:[%s5306_s8 + $0x18] sm:$0xff] }
0x4ab9   :  { %4172 = vtanh.f32 %v3079_v63  ;;  %v3086_v23 = vsel %vm1736_vm7, %v3079_v63, %v3011_v4  ;;  %v3257_v4 = vld [vmem:[%s5306_s8 + $0x10] sm:$0xff] }
0x4aba   :  { %v3899_v8 = vpack.c.bf16 %v3258_v29, %v3257_v4 }
0x4ac3   :  { %v4173_v39 = vpop.eup %4172 }
0x4ac4   :  { %3082 = vrot.lane.b32.xlu0 %v4173_v39, %s4204_s14 }
0x4b36   :  { %v3083_v20 = vpop.permute.xlu0 %3082 }
0x4b37   :  { %v3085_v11 = vmul.f32 %v4171_v60, %v3083_v20 }
0x4b39   :  { %v3087_v3 = vsel %vm1736_vm7, %v3085_v11, %v3012_v50 }
0x4b3a   :  { %v3089_v13 = vpack.c.bf16 %v3087_v3, %v3087_v3 }
0x4b3c   :  { %3091 = vrot.lane.b32.xlu1 %v3089_v13, %s4205_s15 }
0x4bae   :  { %v3092_v48 = vpop.permute.xlu1 %3091 }
0x4baf   :  { %3873 = vmatmul.mubr.msk.bf16.vlgmr.msra.gmra.mrb[80].mxu0 %vm207_vm0, %v3092_v48 }
0x4bb0   :  { %3892 = vmatprep.mubr.msk.f32.mxu0 %vm4203_vm1, %v4202_v30  ;;  %vm3237_vm1 = vcmask 7168  }
0x4bb1   :  { %v3238_v40 = vsel %vm3237_vm1, %v4200_v34, 2147483648 }
0x4bb2   :  { %v3239_v57 = vrot.slane %v3238_v40, 4 }
0x4bb4   :  { %vm3240_vm8 = vcmp.gt.s32.totalorder %v3238_v40, %v3239_v57 }
0x4bb5   :  { %v3241_v54 = vsel %vm3240_vm8, %v3238_v40, %v3239_v57 }
0x4bb6   :  { %v3242_v49 = vrot.slane %v3241_v54, 2 }
0x4bb8   :  { %vm3243_vm10 = vcmp.gt.s32.totalorder %v3241_v54, %v3242_v49 }
0x4bb9   :  { %v3244_v52 = vsel %vm3243_vm10, %v3241_v54, %v3242_v49 }
0x4bba   :  { %v3245_v44 = vrot.slane %v3244_v52, 1 }
0x4bbc   :  { %vm3246_vm12 = vcmp.gt.s32.totalorder %v3244_v52, %v3245_v44 }
0x4bbd   :  { %v3247_v5 = vsel %vm3246_vm12, %v3244_v52, %v3245_v44 }
0x4bbe   :  { %vm3248_vm14 = vcmp.eq.s32.totalorder %v4200_v34, %v3247_v5 }
0x4bbf   :  { %v3249_v7 = vsel %vm3248_vm14, 1, %v4201_v0  ;;  %v3255_v0 = vld [vmem:[%s5306_s8] sm:$0xff] }
0x4bc0   :  { %v3896_v53 = vpack.c.bf16 %v3256_v61, %v3255_v0 }
0x4bc2   :  { %3897 = vmatpush3.bf16.msra.mxu0 %v3896_v53 }
0x4bc3   :  { %3898 = vmatprep.subr.bf16.mxu0 %v4206_v16 }
0x4bc6   :  { %3900 = vmatpush3.bf16.msra.mxu0 %v3899_v8 }
0x4c82   :  { %v3130_v46 = vpop.f32.mrb[80].mxu0 }
0x4c83   :  { %v3136_v18 = vadd.f32 %v3130_v46, %v2078_v41  ;;  %v3874_v51 = vpop.f32.mrb[81].mxu0  ;;  %v3487_v41 = vld [vmem:[%s5307_s9] ss:$0 sm:$0xff] }
0x4c84   :  { %v3133_v47 = vpop.f32.mrb[82].mxu0 }
0x4c85   :  { %4174 = vtanh.f32 %v3136_v18  ;;  %v3875_v38 = vpop.f32.mrb[83].mxu0  ;;  %v3484_v2 = vmul.f32 -1.442695, %v3136_v18 }
0x4c87   :  { %4176 = vpow2.f32 %v3484_v2 }
0x4c8f   :  { %v4175_v6 = vpop.eup %4174 }
0x4c90   :  { %3146 = vrot.lane.b32.xlu0 %v4175_v6, %s4204_s14 }
0x4c91   :  { %v4177_v45 = vpop.eup %4176 }
0x4c92   :  { %v3140_v24 = vadd.f32 1.0, %v4177_v45 }
0x4c94   :  { %4178 = vrcp.f32 %v3140_v24 }
0x4c9e   :  { %v4179_v62 = vpop.eup %4178 }
0x4c9f   :  { %v3144_v21 = vmul.f32 %v4179_v62, %v3086_v23 }
0x4d02   :  { %v3147_v17 = vpop.permute.xlu0 %3146 }
0x4d03   :  { %v3149_v30 = vmul.f32 %v4179_v62, %v3147_v17 }
0x4d05   :  { %3151 = vrot.lane.b32.xlu1 %v3149_v30, %s4204_s14 }
0x4d77   :  { %v3152_v9 = vpop.permute.xlu1 %3151 }
0x4d78   :  { %v3154_v15 = vadd.f32 %v3152_v9, %v3144_v21 }
0x4d7a   :  { %4180 = vtanh.f32 %v3154_v15  ;;  %v3161_v35 = vsel %vm1824_vm15, %v3154_v15, %v3086_v23 }
0x4d84   :  { %v4181_v1 = vpop.eup %4180 }
0x4d85   :  { %3157 = vrot.lane.b32.xlu0 %v4181_v1, %s4204_s14 }
0x4df7   :  { %v3158_v59 = vpop.permute.xlu0 %3157 }
0x4df8   :  { %v3160_v19 = vmul.f32 %v4179_v62, %v3158_v59 }
0x4dfa   :  { %v3162_v22 = vsel %vm1824_vm15, %v3160_v19, %v3087_v3 }
0x4dfb   :  { %v3164_v25 = vpack.c.bf16 %v3162_v22, %v3162_v22 }
0x4dfd   :  { %3166 = vrot.lane.b32.xlu1 %v3164_v25, %s4205_s15 }
0x4e6f   :  { %v3167_v27 = vpop.permute.xlu1 %3166 }
0x4e70   :  { %3881 = vmatmul.mubr.msk.bf16.vlgmr.msra.gmra.mrb[96].mxu1 %vm207_vm0, %v3167_v27 }
0x4f43   :  { %v3205_v14 = vpop.f32.mrb[96].mxu1 }
0x4f44   :  { %v3211_v36 = vadd.f32 %v3205_v14, %v2083_v55  ;;  %v3882_v33 = vpop.f32.mrb[97].mxu1 }
0x4f45   :  { %v3208_v50 = vpop.f32.mrb[98].mxu1 }
0x4f46   :  { %4182 = vtanh.f32 %v3211_v36  ;;  %v3883_v32 = vpop.f32.mrb[99].mxu1  ;;  %v3486_v12 = vmul.f32 -1.442695, %v3211_v36 }
0x4f48   :  { %4184 = vpow2.f32 %v3486_v12 }
0x4f50   :  { %v4183_v26 = vpop.eup %4182 }
0x4f51   :  { %3221 = vrot.lane.b32.xlu0 %v4183_v26, %s4204_s14 }
0x4f52   :  { %v4185_v31 = vpop.eup %4184 }
0x4f53   :  { %v3215_v10 = vadd.f32 1.0, %v4185_v31 }
0x4f55   :  { %3251 = vperm.xlu0 %3908, %v3249_v7   ;;  %4186 = vrcp.f32 %v3215_v10 }
0x4f5f   :  { %v4187_v28 = vpop.eup %4186 }
0x4f60   :  { %v3219_v42 = vmul.f32 %v4187_v28, %v3161_v35 }
0x4fc3   :  { %v3222_v58 = vpop.permute.xlu0 %3221 }
0x4fc4   :  { %v3224_v56 = vmul.f32 %v4187_v28, %v3222_v58 }
0x4fc6   :  { %3226 = vrot.lane.b32.xlu1 %v3224_v56, %s4204_s14 }
0x4fd4   :  { %v3252_v39 = vpop.permute.xlu0 %3251 }
0x4fd5   :  { %vm3253_vm2 = vcmp.eq.s32.totalorder %v3252_v39, 1 }
0x5038   :  { %v3227_v37 = vpop.permute.xlu1 %3226 }
0x5039   :  { %v3229_v60 = vadd.f32 %v3227_v37, %v3219_v42 }
0x503b   :  { %4188 = vtanh.f32 %v3229_v60 }
0x5045   :  { %v4189_v63 = vpop.eup %4188 }
0x5046   :  { %3232 = vrot.lane.b32.xlu1 %v4189_v63, %s4204_s14 }
0x50b8   :  { %v3233_v20 = vpop.permute.xlu1 %3232 }
0x50b9   :  { %v3235_v11 = vmul.f32 %v4187_v28, %v3233_v20 }
0x50bb   :  { %v3236_v3 = vsel %vm1912_vm6, %v3235_v11, %v3162_v22 }
0x50bc   :  { %v3254_v13 = vsel %vm3253_vm2, %v3236_v3, 0.0 }
0x50bd   :  { %3267 = vrot.lane.b32.xlu0 %v3254_v13, %s4205_s15 }
0x512f   :  { %v3268_v48 = vpop.permute.xlu0 %3267 }
0x5130   :  { %3893 = vmatmul.mubr.msk.f32.vlgmr.msra.gmra.mrb[84].mxu0 %vm207_vm0, %v3268_v48 }
0x5203   :  { %v3337_v46 = vpop.f32.mrb[84].mxu0 }
0x5204   :  { %v3338_v18 = vadd.f32 %v3487_v41, %v3337_v46  ;;  %v3894_v51 = vpop.f32.mrb[85].mxu0 }
0x5206   :  { %v3342_v47 = vsel %vm3341_vm5, %v3338_v18, -inf }
0x5207   :  { %3343 = vmax.xlane.f32.xlu1 %v3342_v47 }
0x5294   :  { %v3344_v38 = vpop.xlane.xlu1 %3343 }
0x5295   :  { %v3345_v43 = vsub.f32 %v3338_v18, %v3344_v38 }
0x5297   :  { %v3346_v6 = vmul.f32 1.442695, %v3345_v43 }
0x5299   :  { %4190 = vpow2.f32 %v3346_v6 }
0x52a3   :  { %v4191_v2 = vpop.eup %4190 }
0x52a4   :  { %v3348_v45 = vsel %vm3341_vm5, %v4191_v2, 0.0 }
0x52a5   :  { %3349 = vadd.xlane.f32.xlu0 %v3348_v45 }
0x5332   :  { %v3350_v24 = vpop.xlane.xlu0 %3349 }
0x5333   :  { %4192 = vrcp.f32 %v3350_v24 }
0x533d   :  { %v4193_v62 = vpop.eup %4192 }
0x533e   :  { %v3352_v17 = vmul.f32 %v4193_v62, %v4191_v2 }
0x5340   :  { %3353 = vst.msk [vmem:[%s5308_s10] sm:$0xff] %vm3341_vm5, %v3352_v17 }

</bundles_post_ra>
